<compile_context>
chip_gen: v6e
topology: v6e:2x2x1
jax: 0.10.0
libtpu: 0.0.40
codegen_flags: <defaults>
</compile_context>

<pallas_src>
import numpy as np
import jax
import jax.numpy as jnp
from jax import lax
from jax.experimental import pallas as pl
from jax.experimental.pallas import tpu as pltpu

CONV_L_K = 16  # convLarge kernel size (fixed by the module)


# ----------------------------------------------------------------------------
# Single fused kernel: conv trunk + wavefront multi-layer LSTM + fused heads
# ----------------------------------------------------------------------------
def song_kernel(x_ref, ws0_ref, ws1_ref, bs_ref, wl_ref, bl_ref,
                wcat_ref, b_ref, wend_ref, bend_ref,
                y_ref,
                feat_ref, seq_ref):
    L = x_ref.shape[0]
    H = feat_ref.shape[1]
    NL = wcat_ref.shape[0]

    # ---- conv trunk (fused; runs once at the start of the kernel) ----------
    # convSmol: kernel_size=2, padding='same' -> pad (left=0, right=1)
    x = x_ref[...]                                            # (L, 1)
    x_next = jnp.concatenate(
        [x[1:, :], jnp.zeros((1, 1), x.dtype)], axis=0)       # x[t+1], 0-padded
    a1 = jnp.maximum(
        x * ws0_ref[...] + x_next * ws1_ref[...] + bs_ref[...], 0.0)  # (L, H)

    # convLarge: kernel_size=16, padding='same' -> pad (left=7, right=8)
    a1p = jnp.concatenate(
        [jnp.zeros((7, H), a1.dtype), a1, jnp.zeros((8, H), a1.dtype)], axis=0)
    # im2col: 16 shifted (L, H) views stacked along lanes -> one MXU matmul.
    # TODO(synk): for long L on v7x (64 MiB VMEM), tile the time axis with a
    # 15-row halo so the (L,16H) im2col slab and (L,H) scratch stay bounded.
    cols = jnp.concatenate([a1p[j:j + L, :] for j in range(CONV_L_K)], axis=1)
    feat_ref[...] = jnp.maximum(
        jnp.dot(cols, wl_ref[...], preferred_element_type=jnp.float32)
        + bl_ref[...], 0.0)

    # ---- multi-layer LSTM as a (layer, time) wavefront ----------------------
    # Invariant entering diagonal step d: h_stack[l] / c_stack[l] hold layer
    # l's state after time (d-1) - l (zeros before the layer starts, frozen at
    # its last step once done).  Layer l's input at step d is layer (l-1)'s
    # hidden at time d - l, which is exactly h_stack[l-1]; layer 0 reads
    # feat[d].
    b = b_ref[...]                                            # (NL, 4H)
    layer_idx = lax.broadcasted_iota(jnp.int32, (NL, H), 0)   # (NL, H)
    n_diag = L + NL - 1

    def step(d, carry):
        h_stack, c_stack = carry                              # (NL, H) each
        t0 = jnp.minimum(d, L - 1)                            # clamped; masked when d >= L
        feat_row = feat_ref[pl.ds(t0, 1), :]                  # (1, H)

        # Per-layer fused [input | h] @ [W_ih ; W_hh]: NL independent matmuls
        # within one diagonal step -> they pipeline through the MXU.
        # TODO(synk): W_cat could be pinned in MXU weight regs via
        # pltpu.matmul_push_rhs / matmul_acc_lhs / matmul_pop to avoid
        # re-streaming the RHS every diagonal step.
        gate_rows = []
        for l in range(NL):
            prev_h = feat_row if l == 0 else h_stack[l - 1:l, :]
            z_l = jnp.concatenate([prev_h, h_stack[l:l + 1, :]], axis=1)  # (1, 2H)
            gate_rows.append(
                jnp.dot(z_l, wcat_ref[l], preferred_element_type=jnp.float32))
        gates = jnp.concatenate(gate_rows, axis=0) + b        # (NL, 4H) packed

        # gate order (i, f, o, g): one sigmoid over a contiguous 3H slice,
        # one tanh over the g slice, one tanh over c (3 EUP pushes per step).
        s = jax.nn.sigmoid(gates[:, 0:3 * H])
        g_g = jnp.tanh(gates[:, 3 * H:4 * H])
        i_g = s[:, 0:H]
        f_g = s[:, H:2 * H]
        o_g = s[:, 2 * H:3 * H]
        c_new = f_g * c_stack + i_g * g_g
        h_new = o_g * jnp.tanh(c_new)

        # Only layers on the active anti-diagonal (0 <= d - l < L) advance.
        t_of_l = d - layer_idx                                # (NL, H)
        valid = jnp.logical_and(t_of_l >= 0, t_of_l < L)
        h_stack = jnp.where(valid, h_new, h_stack)
        c_stack = jnp.where(valid, c_new, c_stack)

        # The last layer emits the output row for time d - (NL - 1).
        @pl.when(d >= NL - 1)
        def _():
            seq_ref[pl.ds(d - (NL - 1), 1), :] = h_stack[NL - 1:NL, :]

        return (h_stack, c_stack)

    init = (jnp.zeros((NL, H), jnp.float32), jnp.zeros((NL, H), jnp.float32))
    # Fully unroll the short, static diagonal loop (scheduler visibility).
    unroll = n_diag if n_diag <= 64 else 8
    lax.fori_loop(0, n_diag, step, init, unroll=unroll)

    # fused linear heads (endNote1 | endNote2) over the whole sequence.
    y_ref[...] = (jnp.dot(seq_ref[...], wend_ref[...],
                          preferred_element_type=jnp.float32) + bend_ref[...])


# ----------------------------------------------------------------------------
# Wrapper (plain-JAX glue: weight re-layout + single pallas_call)
# ----------------------------------------------------------------------------
def song_forward(x, p):
    H = p["conv_s_w"].shape[0]
    NL = p["lstm_wih"].shape[0]
    L = x.shape[0]

    # conv weights -> kernel layout
    ws0 = p["conv_s_w"][:, 0, 0].reshape(1, H)
    ws1 = p["conv_s_w"][:, 0, 1].reshape(1, H)
    bs = p["conv_s_b"].reshape(1, H)
    # (H_out, H_in, K) -> (K, H_in, H_out) -> (K*H_in, H_out), matching the
    # im2col column order (offset-major, then input channel).
    wl = jnp.transpose(p["conv_l_w"], (2, 1, 0)).reshape(CONV_L_K * H, H)
    bl = p["conv_l_b"].reshape(1, H)

    # LSTM weights: PyTorch layout (NL, 4H, H) with gate order (i, f, g, o).
    # Fuse gates along the output dim with order (i, f, o, g) and stack
    # [W_ih ; W_hh] along the contraction dim -> (NL, 2H, 4H).
    # NOTE: assumes every layer's input width equals H (true here: layer 0
    # consumes the H-wide conv output).
    gate_perm = jnp.array([0, 1, 3, 2], dtype=jnp.int32)      # i, f, o, g

    def fuse_w(w):                                            # (NL, 4H, H_in)
        w4 = w.reshape(NL, 4, H, H)[:, gate_perm]             # (NL, 4, Hout, Hin)
        return jnp.transpose(w4, (0, 3, 1, 2)).reshape(NL, H, 4 * H)

    wcat = jnp.concatenate([fuse_w(p["lstm_wih"]), fuse_w(p["lstm_whh"])],
                           axis=1)                            # (NL, 2H, 4H)
    b = (p["lstm_bih"] + p["lstm_bhh"]).reshape(NL, 4, H)[:, gate_perm]
    b = b.reshape(NL, 4 * H)

    # fused heads: (H, 2) weight, (1, 2) bias -> single (L, 2) output
    wend = jnp.concatenate([p["end1_w"].T, p["end2_w"].T], axis=1)   # (H, 2)
    bend = jnp.concatenate([p["end1_b"], p["end2_b"]]).reshape(1, 2)

    grid_spec = pltpu.PrefetchScalarGridSpec(
        num_scalar_prefetch=0,
        grid=(1,),
        in_specs=[
            pl.BlockSpec((L, 1), lambda i: (0, 0)),                    # x
            pl.BlockSpec((1, H), lambda i: (0, 0)),                    # convSmol w0
            pl.BlockSpec((1, H), lambda i: (0, 0)),                    # convSmol w1
            pl.BlockSpec((1, H), lambda i: (0, 0)),                    # convSmol b
            pl.BlockSpec((CONV_L_K * H, H), lambda i: (0, 0)),         # convLarge W
            pl.BlockSpec((1, H), lambda i: (0, 0)),                    # convLarge b
            pl.BlockSpec((NL, 2 * H, 4 * H), lambda i: (0, 0, 0)),     # [Wih;Whh]
            pl.BlockSpec((NL, 4 * H), lambda i: (0, 0)),               # fused bias
            pl.BlockSpec((H, 2), lambda i: (0, 0)),                    # heads W
            pl.BlockSpec((1, 2), lambda i: (0, 0)),                    # heads b
        ],
        out_specs=pl.BlockSpec((L, 2), lambda i: (0, 0)),
        scratch_shapes=[
            pltpu.VMEM((L, H), jnp.float32),    # conv features (layer-0 input)
            pltpu.VMEM((L, H), jnp.float32),    # last layer's hidden sequence
        ],
    )

    # VMEM budget: estimate resident footprint and clamp to the actual chip.
    f32 = 4
    est = f32 * (CONV_L_K * H * H            # convLarge weight
                 + NL * 2 * H * 4 * H        # fused LSTM weights
                 + 2 * L * H                 # feat + seq scratch
                 + CONV_L_K * L * H          # im2col slab (transient)
                 + L * H                     # conv activations
                 + 8 * NL * H                # h/c carries + packed gates
                 + 4 * L + 32 * H)           # heads, output, biases, slack
    try:
        vmem_cap = int(pltpu.get_tpu_info().vmem_capacity_bytes)
    except Exception:
        vmem_cap = 64 * 1024 * 1024          # conservative (v7x-sized) default
    vmem_limit = int(min(max(2 * est, 16 * 1024 * 1024),
                         vmem_cap - vmem_cap // 8))

    # TODO(synk): with several independent sequences, add a leading 'parallel'
    # grid axis so v7x's second TensorCore gets work; a single sequence only
    # exposes the wavefront parallelism used here.
    y = pl.pallas_call(
        song_kernel,
        out_shape=jax.ShapeDtypeStruct((L, 2), jnp.float32),
        grid_spec=grid_spec,
        compiler_params=pltpu.CompilerParams(
            dimension_semantics=("arbitrary",),
            vmem_limit_bytes=vmem_limit,
        ),
    )(x, ws0, ws1, bs, wl, bl, wcat, b, wend, bend)

    return y[:, 0:1], y[:, 1:2]


# ----------------------------------------------------------------------------
# Pure-JAX reference (mirrors PyTorch semantics) for a sanity check
# ----------------------------------------------------------------------------
def reference_forward(x, p):
    H = p["conv_s_w"].shape[0]
    NL = p["lstm_wih"].shape[0]
    L = x.shape[0]

    xc = x[:, 0]
    xp = jnp.concatenate([xc, jnp.zeros((1,), jnp.float32)])          # right pad 1
    a1 = (xp[:L, None] * p["conv_s_w"][:, 0, 0][None, :]
          + xp[1:L + 1, None] * p["conv_s_w"][:, 0, 1][None, :]
          + p["conv_s_b"][None, :])
    a1 = jnp.maximum(a1, 0.0)

    a1p = jnp.pad(a1, ((7, 8), (0, 0)))                               # 'same' for k=16
    acc = jnp.zeros((L, H), jnp.float32)
    for j in range(CONV_L_K):
        acc = acc + a1p[j:j + L, :] @ p["conv_l_w"][:, :, j].T
    feat = jnp.maximum(acc + p["conv_l_b"][None, :], 0.0)

    seq = feat
    for l in range(NL):
        Wih, Whh = p["lstm_wih"][l], p["lstm_whh"][l]
        bih, bhh = p["lstm_bih"][l], p["lstm_bhh"][l]

        def step(carry, x_t):
            h, c = carry
            gates = Wih @ x_t + bih + Whh @ h + bhh
            i, f, g, o = jnp.split(gates, 4)
            i, f, o = jax.nn.sigmoid(i), jax.nn.sigmoid(f), jax.nn.sigmoid(o)
            g = jnp.tanh(g)
            c = f * c + i * g
            h = o * jnp.tanh(c)
            return (h, c), h

        (_, _), seq = lax.scan(step, (jnp.zeros((H,)), jnp.zeros((H,))), seq)

    y1 = seq @ p["end1_w"].T + p["end1_b"]
    y2 = seq @ p["end2_w"].T + p["end2_b"]
    return y1, y2


if __name__ == "__main__":
    L, H, NL, IN = 16, 32, 3, 1   # small shapes: seq=16, hidden=32, layers=3

    key = jax.random.PRNGKey(0)
    keys = jax.random.split(key, 16)

    def u(k, shape, fan_in):
        bound = 1.0 / np.sqrt(fan_in)
        return jax.random.uniform(k, shape, jnp.float32, -bound, bound)

    params = {
        "conv_s_w": u(keys[0], (H, IN, 2), IN * 2),
        "conv_s_b": u(keys[1], (H,), IN * 2),
        "conv_l_w": u(keys[2], (H, H, CONV_L_K), H * CONV_L_K),
        "conv_l_b": u(keys[3], (H,), H * CONV_L_K),
        "lstm_wih": u(keys[4], (NL, 4 * H, H), H),
        "lstm_whh": u(keys[5], (NL, 4 * H, H), H),
        "lstm_bih": u(keys[6], (NL, 4 * H), H),
        "lstm_bhh": u(keys[7], (NL, 4 * H), H),
        "end1_w": u(keys[8], (1, H), H),
        "end1_b": u(keys[9], (1,), H),
        "end2_w": u(keys[10], (1, H), H),
        "end2_b": u(keys[11], (1,), H),
    }

    x = jax.random.normal(keys[12], (L, IN), jnp.float32)

    y1, y2 = jax.jit(song_forward)(x, params)
    jax.block_until_ready((y1, y2))

    r1, r2 = reference_forward(x, params)
    np.testing.assert_allclose(np.asarray(y1), np.asarray(r1), rtol=1e-3, atol=1e-3)
    np.testing.assert_allclose(np.asarray(y2), np.asarray(r2), rtol=1e-3, atol=1e-3)
    assert y1.shape == (L, 1) and y2.shape == (L, 1)

    print("KERNEL_OK")
</pallas_src>

<mosaic_0001>
module attributes {stable_mosaic.version = 11 : i64} {
  func.func @song_kernel(%arg0: i32, %arg1: memref<16x1xf32, #tpu.memory_space<vmem>>, %arg2: memref<1x32xf32, #tpu.memory_space<vmem>>, %arg3: memref<1x32xf32, #tpu.memory_space<vmem>>, %arg4: memref<1x32xf32, #tpu.memory_space<vmem>>, %arg5: memref<512x32xf32, #tpu.memory_space<vmem>>, %arg6: memref<1x32xf32, #tpu.memory_space<vmem>>, %arg7: memref<3x64x128xf32, #tpu.memory_space<vmem>>, %arg8: memref<3x128xf32, #tpu.memory_space<vmem>>, %arg9: memref<32x2xf32, #tpu.memory_space<vmem>>, %arg10: memref<1x2xf32, #tpu.memory_space<vmem>>, %arg11: memref<16x2xf32, #tpu.memory_space<vmem>>, %arg12: memref<16x32xf32, #tpu.memory_space<vmem>>, %arg13: memref<16x32xf32, #tpu.memory_space<vmem>>) attributes {dimension_semantics = [#tpu.dimension_semantics<arbitrary>], iteration_bounds = array<i64: 1>, scalar_prefetch = 0 : i64, scratch_operands = 2 : i64, tpu.core_type = #tpu.core_type<tc>, window_params = [{pipeline_mode = #tpu.pipeline_mode<synchronous>, transform_indices = @transform_0, window_bounds = array<i64: 16, 1>}, {pipeline_mode = #tpu.pipeline_mode<synchronous>, transform_indices = @transform_1, window_bounds = array<i64: 1, 32>}, {pipeline_mode = #tpu.pipeline_mode<synchronous>, transform_indices = @transform_2, window_bounds = array<i64: 1, 32>}, {pipeline_mode = #tpu.pipeline_mode<synchronous>, transform_indices = @transform_3, window_bounds = array<i64: 1, 32>}, {pipeline_mode = #tpu.pipeline_mode<synchronous>, transform_indices = @transform_4, window_bounds = array<i64: 512, 32>}, {pipeline_mode = #tpu.pipeline_mode<synchronous>, transform_indices = @transform_5, window_bounds = array<i64: 1, 32>}, {pipeline_mode = #tpu.pipeline_mode<synchronous>, transform_indices = @transform_6, window_bounds = array<i64: 3, 64, 128>}, {pipeline_mode = #tpu.pipeline_mode<synchronous>, transform_indices = @transform_7, window_bounds = array<i64: 3, 128>}, {pipeline_mode = #tpu.pipeline_mode<synchronous>, transform_indices = @transform_8, window_bounds = array<i64: 32, 2>}, {pipeline_mode = #tpu.pipeline_mode<synchronous>, transform_indices = @transform_9, window_bounds = array<i64: 1, 2>}, {pipeline_mode = #tpu.pipeline_mode<synchronous>, transform_indices = @transform_10, window_bounds = array<i64: 16, 2>}]} {
    %c0 = arith.constant 0 : index
    %c0_0 = arith.constant 0 : index
    %0 = vector.load %arg1[%c0, %c0_0] : memref<16x1xf32, #tpu.memory_space<vmem>>, vector<16x1xf32>
    %1 = vector.extract_strided_slice %0 {offsets = [1, 0], sizes = [15, 1], strides = [1, 1]} : vector<16x1xf32> to vector<15x1xf32>
    %cst = arith.constant 0.000000e+00 : f32
    %2 = vector.broadcast %cst : f32 to vector<1x1xf32>
    %3 = tpu.concatenate %1, %2 in 0 : vector<15x1xf32>, vector<1x1xf32> -> vector<16x1xf32>
    %c0_1 = arith.constant 0 : index
    %c0_2 = arith.constant 0 : index
    %4 = vector.load %arg2[%c0_1, %c0_2] : memref<1x32xf32, #tpu.memory_space<vmem>>, vector<1x32xf32>
    %5 = vector.broadcast %0 : vector<16x1xf32> to vector<16x32xf32>
    %6 = vector.broadcast %4 : vector<1x32xf32> to vector<16x32xf32>
    %7 = arith.mulf %5, %6 : vector<16x32xf32>
    %c0_3 = arith.constant 0 : index
    %c0_4 = arith.constant 0 : index
    %8 = vector.load %arg3[%c0_3, %c0_4] : memref<1x32xf32, #tpu.memory_space<vmem>>, vector<1x32xf32>
    %9 = vector.broadcast %3 : vector<16x1xf32> to vector<16x32xf32>
    %10 = vector.broadcast %8 : vector<1x32xf32> to vector<16x32xf32>
    %11 = arith.mulf %9, %10 : vector<16x32xf32>
    %12 = arith.addf %7, %11 : vector<16x32xf32>
    %c0_5 = arith.constant 0 : index
    %c0_6 = arith.constant 0 : index
    %13 = vector.load %arg4[%c0_5, %c0_6] : memref<1x32xf32, #tpu.memory_space<vmem>>, vector<1x32xf32>
    %14 = vector.broadcast %13 : vector<1x32xf32> to vector<16x32xf32>
    %15 = arith.addf %12, %14 : vector<16x32xf32>
    %cst_7 = arith.constant 0.000000e+00 : f32
    %16 = vector.broadcast %cst_7 : f32 to vector<16x32xf32>
    %17 = arith.maximumf %15, %16 : vector<16x32xf32>
    %cst_8 = arith.constant 0.000000e+00 : f32
    %18 = vector.broadcast %cst_8 : f32 to vector<7x32xf32>
    %cst_9 = arith.constant 0.000000e+00 : f32
    %19 = vector.broadcast %cst_9 : f32 to vector<8x32xf32>
    %20 = tpu.concatenate %18, %17, %19 in 0 : vector<7x32xf32>, vector<16x32xf32>, vector<8x32xf32> -> vector<31x32xf32>
    %21 = vector.extract_strided_slice %20 {offsets = [0, 0], sizes = [16, 32], strides = [1, 1]} : vector<31x32xf32> to vector<16x32xf32>
    %22 = vector.extract_strided_slice %20 {offsets = [1, 0], sizes = [16, 32], strides = [1, 1]} : vector<31x32xf32> to vector<16x32xf32>
    %23 = vector.extract_strided_slice %20 {offsets = [2, 0], sizes = [16, 32], strides = [1, 1]} : vector<31x32xf32> to vector<16x32xf32>
    %24 = vector.extract_strided_slice %20 {offsets = [3, 0], sizes = [16, 32], strides = [1, 1]} : vector<31x32xf32> to vector<16x32xf32>
    %25 = vector.extract_strided_slice %20 {offsets = [4, 0], sizes = [16, 32], strides = [1, 1]} : vector<31x32xf32> to vector<16x32xf32>
    %26 = vector.extract_strided_slice %20 {offsets = [5, 0], sizes = [16, 32], strides = [1, 1]} : vector<31x32xf32> to vector<16x32xf32>
    %27 = vector.extract_strided_slice %20 {offsets = [6, 0], sizes = [16, 32], strides = [1, 1]} : vector<31x32xf32> to vector<16x32xf32>
    %28 = vector.extract_strided_slice %20 {offsets = [7, 0], sizes = [16, 32], strides = [1, 1]} : vector<31x32xf32> to vector<16x32xf32>
    %29 = vector.extract_strided_slice %20 {offsets = [8, 0], sizes = [16, 32], strides = [1, 1]} : vector<31x32xf32> to vector<16x32xf32>
    %30 = vector.extract_strided_slice %20 {offsets = [9, 0], sizes = [16, 32], strides = [1, 1]} : vector<31x32xf32> to vector<16x32xf32>
    %31 = vector.extract_strided_slice %20 {offsets = [10, 0], sizes = [16, 32], strides = [1, 1]} : vector<31x32xf32> to vector<16x32xf32>
    %32 = vector.extract_strided_slice %20 {offsets = [11, 0], sizes = [16, 32], strides = [1, 1]} : vector<31x32xf32> to vector<16x32xf32>
    %33 = vector.extract_strided_slice %20 {offsets = [12, 0], sizes = [16, 32], strides = [1, 1]} : vector<31x32xf32> to vector<16x32xf32>
    %34 = vector.extract_strided_slice %20 {offsets = [13, 0], sizes = [16, 32], strides = [1, 1]} : vector<31x32xf32> to vector<16x32xf32>
    %35 = vector.extract_strided_slice %20 {offsets = [14, 0], sizes = [16, 32], strides = [1, 1]} : vector<31x32xf32> to vector<16x32xf32>
    %36 = vector.extract_strided_slice %20 {offsets = [15, 0], sizes = [16, 32], strides = [1, 1]} : vector<31x32xf32> to vector<16x32xf32>
    %37 = tpu.concatenate %21, %22, %23, %24, %25, %26, %27, %28, %29, %30, %31, %32, %33, %34, %35, %36 in 1 : vector<16x32xf32>, vector<16x32xf32>, vector<16x32xf32>, vector<16x32xf32>, vector<16x32xf32>, vector<16x32xf32>, vector<16x32xf32>, vector<16x32xf32>, vector<16x32xf32>, vector<16x32xf32>, vector<16x32xf32>, vector<16x32xf32>, vector<16x32xf32>, vector<16x32xf32>, vector<16x32xf32>, vector<16x32xf32> -> vector<16x512xf32>
    %c0_10 = arith.constant 0 : index
    %c0_11 = arith.constant 0 : index
    %38 = vector.load %arg5[%c0_10, %c0_11] : memref<512x32xf32, #tpu.memory_space<vmem>>, vector<512x32xf32>
    %cst_12 = arith.constant dense<0.000000e+00> : vector<16x32xf32>
    %39 = tpu.matmul %37, %38, %cst_12 {dimension_numbers = #tpu.dot_dimension_numbers<[1], [0], [0], [1], [0, 0, 1, 1], [], []>} : vector<16x512xf32>, vector<512x32xf32>, vector<16x32xf32> -> vector<16x32xf32>
    %c0_13 = arith.constant 0 : index
    %c0_14 = arith.constant 0 : index
    %40 = vector.load %arg6[%c0_13, %c0_14] : memref<1x32xf32, #tpu.memory_space<vmem>>, vector<1x32xf32>
    %41 = vector.broadcast %40 : vector<1x32xf32> to vector<16x32xf32>
    %42 = arith.addf %39, %41 : vector<16x32xf32>
    %cst_15 = arith.constant 0.000000e+00 : f32
    %43 = vector.broadcast %cst_15 : f32 to vector<16x32xf32>
    %44 = arith.maximumf %42, %43 : vector<16x32xf32>
    %c0_16 = arith.constant 0 : index
    %c0_17 = arith.constant 0 : index
    %45 = vector.load %arg12[%c0_16, %c0_17] : memref<16x32xf32, #tpu.memory_space<vmem>>, vector<16x32xf32>
    tpu.vector_store %arg12[%c0_16, %c0_17], %44 {strides = array<i32>} : memref<16x32xf32, #tpu.memory_space<vmem>>, vector<16x32xf32>,
    %c0_18 = arith.constant 0 : index
    %c0_19 = arith.constant 0 : index
    %46 = vector.load %arg8[%c0_18, %c0_19] : memref<3x128xf32, #tpu.memory_space<vmem>>, vector<3x128xf32>
    %47 = tpu.iota {dimensions = array<i32: 0>} : vector<3x32xi32>
    %cst_20 = arith.constant 0.000000e+00 : f32
    %48 = vector.broadcast %cst_20 : f32 to vector<3x32xf32>
    %cst_21 = arith.constant 0.000000e+00 : f32
    %49 = vector.broadcast %cst_21 : f32 to vector<3x32xf32>
    %c0_i32 = arith.constant 0 : i32
    %c15_i32 = arith.constant 15 : i32
    %50 = arith.minsi %c0_i32, %c15_i32 : i32
    %51 = arith.index_cast %50 : i32 to index
    %c0_22 = arith.constant 0 : index
    %52 = vector.load %arg12[%51, %c0_22] : memref<16x32xf32, #tpu.memory_space<vmem>>, vector<1x32xf32>
    %53 = vector.extract_strided_slice %48 {offsets = [0, 0], sizes = [1, 32], strides = [1, 1]} : vector<3x32xf32> to vector<1x32xf32>
    %54 = tpu.concatenate %52, %53 in 1 : vector<1x32xf32>, vector<1x32xf32> -> vector<1x64xf32>
    %c0_23 = arith.constant 0 : index
    %c0_24 = arith.constant 0 : index
    %c0_25 = arith.constant 0 : index
    %55 = vector.load %arg7[%c0_23, %c0_24, %c0_25] : memref<3x64x128xf32, #tpu.memory_space<vmem>>, vector<1x64x128xf32>
    %56 = vector.shape_cast %55 : vector<1x64x128xf32> to vector<64x128xf32>
    %cst_26 = arith.constant dense<0.000000e+00> : vector<1x128xf32>
    %57 = tpu.matmul %54, %56, %cst_26 {dimension_numbers = #tpu.dot_dimension_numbers<[1], [0], [0], [1], [0, 0, 1, 1], [], []>} : vector<1x64xf32>, vector<64x128xf32>, vector<1x128xf32> -> vector<1x128xf32>
    %58 = vector.extract_strided_slice %48 {offsets = [0, 0], sizes = [1, 32], strides = [1, 1]} : vector<3x32xf32> to vector<1x32xf32>
    %59 = vector.extract_strided_slice %48 {offsets = [1, 0], sizes = [1, 32], strides = [1, 1]} : vector<3x32xf32> to vector<1x32xf32>
    %60 = tpu.concatenate %58, %59 in 1 : vector<1x32xf32>, vector<1x32xf32> -> vector<1x64xf32>
    %c1 = arith.constant 1 : index
    %c0_27 = arith.constant 0 : index
    %c0_28 = arith.constant 0 : index
    %61 = vector.load %arg7[%c1, %c0_27, %c0_28] : memref<3x64x128xf32, #tpu.memory_space<vmem>>, vector<1x64x128xf32>
    %62 = vector.shape_cast %61 : vector<1x64x128xf32> to vector<64x128xf32>
    %cst_29 = arith.constant dense<0.000000e+00> : vector<1x128xf32>
    %63 = tpu.matmul %60, %62, %cst_29 {dimension_numbers = #tpu.dot_dimension_numbers<[1], [0], [0], [1], [0, 0, 1, 1], [], []>} : vector<1x64xf32>, vector<64x128xf32>, vector<1x128xf32> -> vector<1x128xf32>
    %64 = vector.extract_strided_slice %48 {offsets = [1, 0], sizes = [1, 32], strides = [1, 1]} : vector<3x32xf32> to vector<1x32xf32>
    %65 = vector.extract_strided_slice %48 {offsets = [2, 0], sizes = [1, 32], strides = [1, 1]} : vector<3x32xf32> to vector<1x32xf32>
    %66 = tpu.concatenate %64, %65 in 1 : vector<1x32xf32>, vector<1x32xf32> -> vector<1x64xf32>
    %c2 = arith.constant 2 : index
    %c0_30 = arith.constant 0 : index
    %c0_31 = arith.constant 0 : index
    %67 = vector.load %arg7[%c2, %c0_30, %c0_31] : memref<3x64x128xf32, #tpu.memory_space<vmem>>, vector<1x64x128xf32>
    %68 = vector.shape_cast %67 : vector<1x64x128xf32> to vector<64x128xf32>
    %cst_32 = arith.constant dense<0.000000e+00> : vector<1x128xf32>
    %69 = tpu.matmul %66, %68, %cst_32 {dimension_numbers = #tpu.dot_dimension_numbers<[1], [0], [0], [1], [0, 0, 1, 1], [], []>} : vector<1x64xf32>, vector<64x128xf32>, vector<1x128xf32> -> vector<1x128xf32>
    %70 = tpu.concatenate %57, %63, %69 in 0 : vector<1x128xf32>, vector<1x128xf32>, vector<1x128xf32> -> vector<3x128xf32>
    %71 = arith.addf %70, %46 : vector<3x128xf32>
    %72 = vector.extract_strided_slice %71 {offsets = [0, 0], sizes = [3, 96], strides = [1, 1]} : vector<3x128xf32> to vector<3x96xf32>
    %73 = arith.negf %72 : vector<3x96xf32>
    %74 = math.exp %73 : vector<3x96xf32>
    %cst_33 = arith.constant 1.000000e+00 : f32
    %75 = vector.broadcast %cst_33 : f32 to vector<3x96xf32>
    %76 = arith.addf %75, %74 : vector<3x96xf32>
    %77 = arith.divf %75, %76 : vector<3x96xf32>
    %78 = vector.extract_strided_slice %71 {offsets = [0, 96], sizes = [3, 32], strides = [1, 1]} : vector<3x128xf32> to vector<3x32xf32>
    %79 = math.tanh %78 : vector<3x32xf32>
    %80 = vector.extract_strided_slice %77 {offsets = [0, 0], sizes = [3, 32], strides = [1, 1]} : vector<3x96xf32> to vector<3x32xf32>
    %81 = vector.extract_strided_slice %77 {offsets = [0, 32], sizes = [3, 32], strides = [1, 1]} : vector<3x96xf32> to vector<3x32xf32>
    %82 = vector.extract_strided_slice %77 {offsets = [0, 64], sizes = [3, 32], strides = [1, 1]} : vector<3x96xf32> to vector<3x32xf32>
    %83 = arith.mulf %81, %49 : vector<3x32xf32>
    %84 = arith.mulf %80, %79 : vector<3x32xf32>
    %85 = arith.addf %83, %84 : vector<3x32xf32>
    %86 = math.tanh %85 : vector<3x32xf32>
    %87 = arith.mulf %82, %86 : vector<3x32xf32>
    %88 = vector.broadcast %c0_i32 : i32 to vector<3x32xi32>
    %89 = arith.subi %88, %47 : vector<3x32xi32>
    %c0_i32_34 = arith.constant 0 : i32
    %90 = vector.broadcast %c0_i32_34 : i32 to vector<3x32xi32>
    %91 = arith.cmpi sge, %89, %90 : vector<3x32xi32>
    %c16_i32 = arith.constant 16 : i32
    %92 = vector.broadcast %c16_i32 : i32 to vector<3x32xi32>
    %93 = arith.cmpi slt, %89, %92 : vector<3x32xi32>
    %94 = arith.andi %91, %93 : vector<3x32xi1>
    %95 = arith.select %94, %87, %48 : vector<3x32xi1>, vector<3x32xf32>
    %96 = arith.select %94, %85, %49 : vector<3x32xi1>, vector<3x32xf32>
    %c2_i32 = arith.constant 2 : i32
    %97 = arith.cmpi sge, %c0_i32, %c2_i32 : i32
    %98 = arith.extui %97 : i1 to i32
    %c0_i32_35 = arith.constant 0 : i32
    %99 = arith.cmpi ne, %98, %c0_i32_35 : i32
    scf.if %99 {
      %957 = vector.extract_strided_slice %95 {offsets = [2, 0], sizes = [1, 32], strides = [1, 1]} : vector<3x32xf32> to vector<1x32xf32>
      %c2_i32_371 = arith.constant 2 : i32
      %958 = arith.subi %c0_i32, %c2_i32_371 : i32
      %959 = arith.index_cast %958 : i32 to index
      %c0_372 = arith.constant 0 : index
      %960 = vector.load %arg13[%959, %c0_372] : memref<16x32xf32, #tpu.memory_space<vmem>>, vector<1x32xf32>
      tpu.vector_store %arg13[%959, %c0_372], %957 {strides = array<i32>} : memref<16x32xf32, #tpu.memory_space<vmem>>, vector<1x32xf32>,
    } else {
    }
    %c1_i32 = arith.constant 1 : i32
    %c15_i32_36 = arith.constant 15 : i32
    %100 = arith.minsi %c1_i32, %c15_i32_36 : i32
    %101 = arith.index_cast %100 : i32 to index
    %c0_37 = arith.constant 0 : index
    %102 = vector.load %arg12[%101, %c0_37] : memref<16x32xf32, #tpu.memory_space<vmem>>, vector<1x32xf32>
    %103 = vector.extract_strided_slice %95 {offsets = [0, 0], sizes = [1, 32], strides = [1, 1]} : vector<3x32xf32> to vector<1x32xf32>
    %104 = tpu.concatenate %102, %103 in 1 : vector<1x32xf32>, vector<1x32xf32> -> vector<1x64xf32>
    %c0_38 = arith.constant 0 : index
    %c0_39 = arith.constant 0 : index
    %c0_40 = arith.constant 0 : index
    %105 = vector.load %arg7[%c0_38, %c0_39, %c0_40] : memref<3x64x128xf32, #tpu.memory_space<vmem>>, vector<1x64x128xf32>
    %106 = vector.shape_cast %105 : vector<1x64x128xf32> to vector<64x128xf32>
    %cst_41 = arith.constant dense<0.000000e+00> : vector<1x128xf32>
    %107 = tpu.matmul %104, %106, %cst_41 {dimension_numbers = #tpu.dot_dimension_numbers<[1], [0], [0], [1], [0, 0, 1, 1], [], []>} : vector<1x64xf32>, vector<64x128xf32>, vector<1x128xf32> -> vector<1x128xf32>
    %108 = vector.extract_strided_slice %95 {offsets = [0, 0], sizes = [1, 32], strides = [1, 1]} : vector<3x32xf32> to vector<1x32xf32>
    %109 = vector.extract_strided_slice %95 {offsets = [1, 0], sizes = [1, 32], strides = [1, 1]} : vector<3x32xf32> to vector<1x32xf32>
    %110 = tpu.concatenate %108, %109 in 1 : vector<1x32xf32>, vector<1x32xf32> -> vector<1x64xf32>
    %c1_42 = arith.constant 1 : index
    %c0_43 = arith.constant 0 : index
    %c0_44 = arith.constant 0 : index
    %111 = vector.load %arg7[%c1_42, %c0_43, %c0_44] : memref<3x64x128xf32, #tpu.memory_space<vmem>>, vector<1x64x128xf32>
    %112 = vector.shape_cast %111 : vector<1x64x128xf32> to vector<64x128xf32>
    %cst_45 = arith.constant dense<0.000000e+00> : vector<1x128xf32>
    %113 = tpu.matmul %110, %112, %cst_45 {dimension_numbers = #tpu.dot_dimension_numbers<[1], [0], [0], [1], [0, 0, 1, 1], [], []>} : vector<1x64xf32>, vector<64x128xf32>, vector<1x128xf32> -> vector<1x128xf32>
    %114 = vector.extract_strided_slice %95 {offsets = [1, 0], sizes = [1, 32], strides = [1, 1]} : vector<3x32xf32> to vector<1x32xf32>
    %115 = vector.extract_strided_slice %95 {offsets = [2, 0], sizes = [1, 32], strides = [1, 1]} : vector<3x32xf32> to vector<1x32xf32>
    %116 = tpu.concatenate %114, %115 in 1 : vector<1x32xf32>, vector<1x32xf32> -> vector<1x64xf32>
    %c2_46 = arith.constant 2 : index
    %c0_47 = arith.constant 0 : index
    %c0_48 = arith.constant 0 : index
    %117 = vector.load %arg7[%c2_46, %c0_47, %c0_48] : memref<3x64x128xf32, #tpu.memory_space<vmem>>, vector<1x64x128xf32>
    %118 = vector.shape_cast %117 : vector<1x64x128xf32> to vector<64x128xf32>
    %cst_49 = arith.constant dense<0.000000e+00> : vector<1x128xf32>
    %119 = tpu.matmul %116, %118, %cst_49 {dimension_numbers = #tpu.dot_dimension_numbers<[1], [0], [0], [1], [0, 0, 1, 1], [], []>} : vector<1x64xf32>, vector<64x128xf32>, vector<1x128xf32> -> vector<1x128xf32>
    %120 = tpu.concatenate %107, %113, %119 in 0 : vector<1x128xf32>, vector<1x128xf32>, vector<1x128xf32> -> vector<3x128xf32>
    %121 = arith.addf %120, %46 : vector<3x128xf32>
    %122 = vector.extract_strided_slice %121 {offsets = [0, 0], sizes = [3, 96], strides = [1, 1]} : vector<3x128xf32> to vector<3x96xf32>
    %123 = arith.negf %122 : vector<3x96xf32>
    %124 = math.exp %123 : vector<3x96xf32>
    %cst_50 = arith.constant 1.000000e+00 : f32
    %125 = vector.broadcast %cst_50 : f32 to vector<3x96xf32>
    %126 = arith.addf %125, %124 : vector<3x96xf32>
    %127 = arith.divf %125, %126 : vector<3x96xf32>
    %128 = vector.extract_strided_slice %121 {offsets = [0, 96], sizes = [3, 32], strides = [1, 1]} : vector<3x128xf32> to vector<3x32xf32>
    %129 = math.tanh %128 : vector<3x32xf32>
    %130 = vector.extract_strided_slice %127 {offsets = [0, 0], sizes = [3, 32], strides = [1, 1]} : vector<3x96xf32> to vector<3x32xf32>
    %131 = vector.extract_strided_slice %127 {offsets = [0, 32], sizes = [3, 32], strides = [1, 1]} : vector<3x96xf32> to vector<3x32xf32>
    %132 = vector.extract_strided_slice %127 {offsets = [0, 64], sizes = [3, 32], strides = [1, 1]} : vector<3x96xf32> to vector<3x32xf32>
    %133 = arith.mulf %131, %96 : vector<3x32xf32>
    %134 = arith.mulf %130, %129 : vector<3x32xf32>
    %135 = arith.addf %133, %134 : vector<3x32xf32>
    %136 = math.tanh %135 : vector<3x32xf32>
    %137 = arith.mulf %132, %136 : vector<3x32xf32>
    %138 = vector.broadcast %c1_i32 : i32 to vector<3x32xi32>
    %139 = arith.subi %138, %47 : vector<3x32xi32>
    %c0_i32_51 = arith.constant 0 : i32
    %140 = vector.broadcast %c0_i32_51 : i32 to vector<3x32xi32>
    %141 = arith.cmpi sge, %139, %140 : vector<3x32xi32>
    %c16_i32_52 = arith.constant 16 : i32
    %142 = vector.broadcast %c16_i32_52 : i32 to vector<3x32xi32>
    %143 = arith.cmpi slt, %139, %142 : vector<3x32xi32>
    %144 = arith.andi %141, %143 : vector<3x32xi1>
    %145 = arith.select %144, %137, %95 : vector<3x32xi1>, vector<3x32xf32>
    %146 = arith.select %144, %135, %96 : vector<3x32xi1>, vector<3x32xf32>
    %c2_i32_53 = arith.constant 2 : i32
    %147 = arith.cmpi sge, %c1_i32, %c2_i32_53 : i32
    %148 = arith.extui %147 : i1 to i32
    %c0_i32_54 = arith.constant 0 : i32
    %149 = arith.cmpi ne, %148, %c0_i32_54 : i32
    scf.if %149 {
      %957 = vector.extract_strided_slice %145 {offsets = [2, 0], sizes = [1, 32], strides = [1, 1]} : vector<3x32xf32> to vector<1x32xf32>
      %c2_i32_371 = arith.constant 2 : i32
      %958 = arith.subi %c1_i32, %c2_i32_371 : i32
      %959 = arith.index_cast %958 : i32 to index
      %c0_372 = arith.constant 0 : index
      %960 = vector.load %arg13[%959, %c0_372] : memref<16x32xf32, #tpu.memory_space<vmem>>, vector<1x32xf32>
      tpu.vector_store %arg13[%959, %c0_372], %957 {strides = array<i32>} : memref<16x32xf32, #tpu.memory_space<vmem>>, vector<1x32xf32>,
    } else {
    }
    %c2_i32_55 = arith.constant 2 : i32
    %c15_i32_56 = arith.constant 15 : i32
    %150 = arith.minsi %c2_i32_55, %c15_i32_56 : i32
    %151 = arith.index_cast %150 : i32 to index
    %c0_57 = arith.constant 0 : index
    %152 = vector.load %arg12[%151, %c0_57] : memref<16x32xf32, #tpu.memory_space<vmem>>, vector<1x32xf32>
    %153 = vector.extract_strided_slice %145 {offsets = [0, 0], sizes = [1, 32], strides = [1, 1]} : vector<3x32xf32> to vector<1x32xf32>
    %154 = tpu.concatenate %152, %153 in 1 : vector<1x32xf32>, vector<1x32xf32> -> vector<1x64xf32>
    %c0_58 = arith.constant 0 : index
    %c0_59 = arith.constant 0 : index
    %c0_60 = arith.constant 0 : index
    %155 = vector.load %arg7[%c0_58, %c0_59, %c0_60] : memref<3x64x128xf32, #tpu.memory_space<vmem>>, vector<1x64x128xf32>
    %156 = vector.shape_cast %155 : vector<1x64x128xf32> to vector<64x128xf32>
    %cst_61 = arith.constant dense<0.000000e+00> : vector<1x128xf32>
    %157 = tpu.matmul %154, %156, %cst_61 {dimension_numbers = #tpu.dot_dimension_numbers<[1], [0], [0], [1], [0, 0, 1, 1], [], []>} : vector<1x64xf32>, vector<64x128xf32>, vector<1x128xf32> -> vector<1x128xf32>
    %158 = vector.extract_strided_slice %145 {offsets = [0, 0], sizes = [1, 32], strides = [1, 1]} : vector<3x32xf32> to vector<1x32xf32>
    %159 = vector.extract_strided_slice %145 {offsets = [1, 0], sizes = [1, 32], strides = [1, 1]} : vector<3x32xf32> to vector<1x32xf32>
    %160 = tpu.concatenate %158, %159 in 1 : vector<1x32xf32>, vector<1x32xf32> -> vector<1x64xf32>
    %c1_62 = arith.constant 1 : index
    %c0_63 = arith.constant 0 : index
    %c0_64 = arith.constant 0 : index
    %161 = vector.load %arg7[%c1_62, %c0_63, %c0_64] : memref<3x64x128xf32, #tpu.memory_space<vmem>>, vector<1x64x128xf32>
    %162 = vector.shape_cast %161 : vector<1x64x128xf32> to vector<64x128xf32>
    %cst_65 = arith.constant dense<0.000000e+00> : vector<1x128xf32>
    %163 = tpu.matmul %160, %162, %cst_65 {dimension_numbers = #tpu.dot_dimension_numbers<[1], [0], [0], [1], [0, 0, 1, 1], [], []>} : vector<1x64xf32>, vector<64x128xf32>, vector<1x128xf32> -> vector<1x128xf32>
    %164 = vector.extract_strided_slice %145 {offsets = [1, 0], sizes = [1, 32], strides = [1, 1]} : vector<3x32xf32> to vector<1x32xf32>
    %165 = vector.extract_strided_slice %145 {offsets = [2, 0], sizes = [1, 32], strides = [1, 1]} : vector<3x32xf32> to vector<1x32xf32>
    %166 = tpu.concatenate %164, %165 in 1 : vector<1x32xf32>, vector<1x32xf32> -> vector<1x64xf32>
    %c2_66 = arith.constant 2 : index
    %c0_67 = arith.constant 0 : index
    %c0_68 = arith.constant 0 : index
    %167 = vector.load %arg7[%c2_66, %c0_67, %c0_68] : memref<3x64x128xf32, #tpu.memory_space<vmem>>, vector<1x64x128xf32>
    %168 = vector.shape_cast %167 : vector<1x64x128xf32> to vector<64x128xf32>
    %cst_69 = arith.constant dense<0.000000e+00> : vector<1x128xf32>
    %169 = tpu.matmul %166, %168, %cst_69 {dimension_numbers = #tpu.dot_dimension_numbers<[1], [0], [0], [1], [0, 0, 1, 1], [], []>} : vector<1x64xf32>, vector<64x128xf32>, vector<1x128xf32> -> vector<1x128xf32>
    %170 = tpu.concatenate %157, %163, %169 in 0 : vector<1x128xf32>, vector<1x128xf32>, vector<1x128xf32> -> vector<3x128xf32>
    %171 = arith.addf %170, %46 : vector<3x128xf32>
    %172 = vector.extract_strided_slice %171 {offsets = [0, 0], sizes = [3, 96], strides = [1, 1]} : vector<3x128xf32> to vector<3x96xf32>
    %173 = arith.negf %172 : vector<3x96xf32>
    %174 = math.exp %173 : vector<3x96xf32>
    %cst_70 = arith.constant 1.000000e+00 : f32
    %175 = vector.broadcast %cst_70 : f32 to vector<3x96xf32>
    %176 = arith.addf %175, %174 : vector<3x96xf32>
    %177 = arith.divf %175, %176 : vector<3x96xf32>
    %178 = vector.extract_strided_slice %171 {offsets = [0, 96], sizes = [3, 32], strides = [1, 1]} : vector<3x128xf32> to vector<3x32xf32>
    %179 = math.tanh %178 : vector<3x32xf32>
    %180 = vector.extract_strided_slice %177 {offsets = [0, 0], sizes = [3, 32], strides = [1, 1]} : vector<3x96xf32> to vector<3x32xf32>
    %181 = vector.extract_strided_slice %177 {offsets = [0, 32], sizes = [3, 32], strides = [1, 1]} : vector<3x96xf32> to vector<3x32xf32>
    %182 = vector.extract_strided_slice %177 {offsets = [0, 64], sizes = [3, 32], strides = [1, 1]} : vector<3x96xf32> to vector<3x32xf32>
    %183 = arith.mulf %181, %146 : vector<3x32xf32>
    %184 = arith.mulf %180, %179 : vector<3x32xf32>
    %185 = arith.addf %183, %184 : vector<3x32xf32>
    %186 = math.tanh %185 : vector<3x32xf32>
    %187 = arith.mulf %182, %186 : vector<3x32xf32>
    %188 = vector.broadcast %c2_i32_55 : i32 to vector<3x32xi32>
    %189 = arith.subi %188, %47 : vector<3x32xi32>
    %c0_i32_71 = arith.constant 0 : i32
    %190 = vector.broadcast %c0_i32_71 : i32 to vector<3x32xi32>
    %191 = arith.cmpi sge, %189, %190 : vector<3x32xi32>
    %c16_i32_72 = arith.constant 16 : i32
    %192 = vector.broadcast %c16_i32_72 : i32 to vector<3x32xi32>
    %193 = arith.cmpi slt, %189, %192 : vector<3x32xi32>
    %194 = arith.andi %191, %193 : vector<3x32xi1>
    %195 = arith.select %194, %187, %145 : vector<3x32xi1>, vector<3x32xf32>
    %196 = arith.select %194, %185, %146 : vector<3x32xi1>, vector<3x32xf32>
    %c2_i32_73 = arith.constant 2 : i32
    %197 = arith.cmpi sge, %c2_i32_55, %c2_i32_73 : i32
    %198 = arith.extui %197 : i1 to i32
    %c0_i32_74 = arith.constant 0 : i32
    %199 = arith.cmpi ne, %198, %c0_i32_74 : i32
    scf.if %199 {
      %957 = vector.extract_strided_slice %195 {offsets = [2, 0], sizes = [1, 32], strides = [1, 1]} : vector<3x32xf32> to vector<1x32xf32>
      %c2_i32_371 = arith.constant 2 : i32
      %958 = arith.subi %c2_i32_55, %c2_i32_371 : i32
      %959 = arith.index_cast %958 : i32 to index
      %c0_372 = arith.constant 0 : index
      %960 = vector.load %arg13[%959, %c0_372] : memref<16x32xf32, #tpu.memory_space<vmem>>, vector<1x32xf32>
      tpu.vector_store %arg13[%959, %c0_372], %957 {strides = array<i32>} : memref<16x32xf32, #tpu.memory_space<vmem>>, vector<1x32xf32>,
    } else {
    }
    %c3_i32 = arith.constant 3 : i32
    %c15_i32_75 = arith.constant 15 : i32
    %200 = arith.minsi %c3_i32, %c15_i32_75 : i32
    %201 = arith.index_cast %200 : i32 to index
    %c0_76 = arith.constant 0 : index
    %202 = vector.load %arg12[%201, %c0_76] : memref<16x32xf32, #tpu.memory_space<vmem>>, vector<1x32xf32>
    %203 = vector.extract_strided_slice %195 {offsets = [0, 0], sizes = [1, 32], strides = [1, 1]} : vector<3x32xf32> to vector<1x32xf32>
    %204 = tpu.concatenate %202, %203 in 1 : vector<1x32xf32>, vector<1x32xf32> -> vector<1x64xf32>
    %c0_77 = arith.constant 0 : index
    %c0_78 = arith.constant 0 : index
    %c0_79 = arith.constant 0 : index
    %205 = vector.load %arg7[%c0_77, %c0_78, %c0_79] : memref<3x64x128xf32, #tpu.memory_space<vmem>>, vector<1x64x128xf32>
    %206 = vector.shape_cast %205 : vector<1x64x128xf32> to vector<64x128xf32>
    %cst_80 = arith.constant dense<0.000000e+00> : vector<1x128xf32>
    %207 = tpu.matmul %204, %206, %cst_80 {dimension_numbers = #tpu.dot_dimension_numbers<[1], [0], [0], [1], [0, 0, 1, 1], [], []>} : vector<1x64xf32>, vector<64x128xf32>, vector<1x128xf32> -> vector<1x128xf32>
    %208 = vector.extract_strided_slice %195 {offsets = [0, 0], sizes = [1, 32], strides = [1, 1]} : vector<3x32xf32> to vector<1x32xf32>
    %209 = vector.extract_strided_slice %195 {offsets = [1, 0], sizes = [1, 32], strides = [1, 1]} : vector<3x32xf32> to vector<1x32xf32>
    %210 = tpu.concatenate %208, %209 in 1 : vector<1x32xf32>, vector<1x32xf32> -> vector<1x64xf32>
    %c1_81 = arith.constant 1 : index
    %c0_82 = arith.constant 0 : index
    %c0_83 = arith.constant 0 : index
    %211 = vector.load %arg7[%c1_81, %c0_82, %c0_83] : memref<3x64x128xf32, #tpu.memory_space<vmem>>, vector<1x64x128xf32>
    %212 = vector.shape_cast %211 : vector<1x64x128xf32> to vector<64x128xf32>
    %cst_84 = arith.constant dense<0.000000e+00> : vector<1x128xf32>
    %213 = tpu.matmul %210, %212, %cst_84 {dimension_numbers = #tpu.dot_dimension_numbers<[1], [0], [0], [1], [0, 0, 1, 1], [], []>} : vector<1x64xf32>, vector<64x128xf32>, vector<1x128xf32> -> vector<1x128xf32>
    %214 = vector.extract_strided_slice %195 {offsets = [1, 0], sizes = [1, 32], strides = [1, 1]} : vector<3x32xf32> to vector<1x32xf32>
    %215 = vector.extract_strided_slice %195 {offsets = [2, 0], sizes = [1, 32], strides = [1, 1]} : vector<3x32xf32> to vector<1x32xf32>
    %216 = tpu.concatenate %214, %215 in 1 : vector<1x32xf32>, vector<1x32xf32> -> vector<1x64xf32>
    %c2_85 = arith.constant 2 : index
    %c0_86 = arith.constant 0 : index
    %c0_87 = arith.constant 0 : index
    %217 = vector.load %arg7[%c2_85, %c0_86, %c0_87] : memref<3x64x128xf32, #tpu.memory_space<vmem>>, vector<1x64x128xf32>
    %218 = vector.shape_cast %217 : vector<1x64x128xf32> to vector<64x128xf32>
    %cst_88 = arith.constant dense<0.000000e+00> : vector<1x128xf32>
    %219 = tpu.matmul %216, %218, %cst_88 {dimension_numbers = #tpu.dot_dimension_numbers<[1], [0], [0], [1], [0, 0, 1, 1], [], []>} : vector<1x64xf32>, vector<64x128xf32>, vector<1x128xf32> -> vector<1x128xf32>
    %220 = tpu.concatenate %207, %213, %219 in 0 : vector<1x128xf32>, vector<1x128xf32>, vector<1x128xf32> -> vector<3x128xf32>
    %221 = arith.addf %220, %46 : vector<3x128xf32>
    %222 = vector.extract_strided_slice %221 {offsets = [0, 0], sizes = [3, 96], strides = [1, 1]} : vector<3x128xf32> to vector<3x96xf32>
    %223 = arith.negf %222 : vector<3x96xf32>
    %224 = math.exp %223 : vector<3x96xf32>
    %cst_89 = arith.constant 1.000000e+00 : f32
    %225 = vector.broadcast %cst_89 : f32 to vector<3x96xf32>
    %226 = arith.addf %225, %224 : vector<3x96xf32>
    %227 = arith.divf %225, %226 : vector<3x96xf32>
    %228 = vector.extract_strided_slice %221 {offsets = [0, 96], sizes = [3, 32], strides = [1, 1]} : vector<3x128xf32> to vector<3x32xf32>
    %229 = math.tanh %228 : vector<3x32xf32>
    %230 = vector.extract_strided_slice %227 {offsets = [0, 0], sizes = [3, 32], strides = [1, 1]} : vector<3x96xf32> to vector<3x32xf32>
    %231 = vector.extract_strided_slice %227 {offsets = [0, 32], sizes = [3, 32], strides = [1, 1]} : vector<3x96xf32> to vector<3x32xf32>
    %232 = vector.extract_strided_slice %227 {offsets = [0, 64], sizes = [3, 32], strides = [1, 1]} : vector<3x96xf32> to vector<3x32xf32>
    %233 = arith.mulf %231, %196 : vector<3x32xf32>
    %234 = arith.mulf %230, %229 : vector<3x32xf32>
    %235 = arith.addf %233, %234 : vector<3x32xf32>
    %236 = math.tanh %235 : vector<3x32xf32>
    %237 = arith.mulf %232, %236 : vector<3x32xf32>
    %238 = vector.broadcast %c3_i32 : i32 to vector<3x32xi32>
    %239 = arith.subi %238, %47 : vector<3x32xi32>
    %c0_i32_90 = arith.constant 0 : i32
    %240 = vector.broadcast %c0_i32_90 : i32 to vector<3x32xi32>
    %241 = arith.cmpi sge, %239, %240 : vector<3x32xi32>
    %c16_i32_91 = arith.constant 16 : i32
    %242 = vector.broadcast %c16_i32_91 : i32 to vector<3x32xi32>
    %243 = arith.cmpi slt, %239, %242 : vector<3x32xi32>
    %244 = arith.andi %241, %243 : vector<3x32xi1>
    %245 = arith.select %244, %237, %195 : vector<3x32xi1>, vector<3x32xf32>
    %246 = arith.select %244, %235, %196 : vector<3x32xi1>, vector<3x32xf32>
    %c2_i32_92 = arith.constant 2 : i32
    %247 = arith.cmpi sge, %c3_i32, %c2_i32_92 : i32
    %248 = arith.extui %247 : i1 to i32
    %c0_i32_93 = arith.constant 0 : i32
    %249 = arith.cmpi ne, %248, %c0_i32_93 : i32
    scf.if %249 {
      %957 = vector.extract_strided_slice %245 {offsets = [2, 0], sizes = [1, 32], strides = [1, 1]} : vector<3x32xf32> to vector<1x32xf32>
      %c2_i32_371 = arith.constant 2 : i32
      %958 = arith.subi %c3_i32, %c2_i32_371 : i32
      %959 = arith.index_cast %958 : i32 to index
      %c0_372 = arith.constant 0 : index
      %960 = vector.load %arg13[%959, %c0_372] : memref<16x32xf32, #tpu.memory_space<vmem>>, vector<1x32xf32>
      tpu.vector_store %arg13[%959, %c0_372], %957 {strides = array<i32>} : memref<16x32xf32, #tpu.memory_space<vmem>>, vector<1x32xf32>,
    } else {
    }
    %c4_i32 = arith.constant 4 : i32
    %c15_i32_94 = arith.constant 15 : i32
    %250 = arith.minsi %c4_i32, %c15_i32_94 : i32
    %251 = arith.index_cast %250 : i32 to index
    %c0_95 = arith.constant 0 : index
    %252 = vector.load %arg12[%251, %c0_95] : memref<16x32xf32, #tpu.memory_space<vmem>>, vector<1x32xf32>
    %253 = vector.extract_strided_slice %245 {offsets = [0, 0], sizes = [1, 32], strides = [1, 1]} : vector<3x32xf32> to vector<1x32xf32>
    %254 = tpu.concatenate %252, %253 in 1 : vector<1x32xf32>, vector<1x32xf32> -> vector<1x64xf32>
    %c0_96 = arith.constant 0 : index
    %c0_97 = arith.constant 0 : index
    %c0_98 = arith.constant 0 : index
    %255 = vector.load %arg7[%c0_96, %c0_97, %c0_98] : memref<3x64x128xf32, #tpu.memory_space<vmem>>, vector<1x64x128xf32>
    %256 = vector.shape_cast %255 : vector<1x64x128xf32> to vector<64x128xf32>
    %cst_99 = arith.constant dense<0.000000e+00> : vector<1x128xf32>
    %257 = tpu.matmul %254, %256, %cst_99 {dimension_numbers = #tpu.dot_dimension_numbers<[1], [0], [0], [1], [0, 0, 1, 1], [], []>} : vector<1x64xf32>, vector<64x128xf32>, vector<1x128xf32> -> vector<1x128xf32>
    %258 = vector.extract_strided_slice %245 {offsets = [0, 0], sizes = [1, 32], strides = [1, 1]} : vector<3x32xf32> to vector<1x32xf32>
    %259 = vector.extract_strided_slice %245 {offsets = [1, 0], sizes = [1, 32], strides = [1, 1]} : vector<3x32xf32> to vector<1x32xf32>
    %260 = tpu.concatenate %258, %259 in 1 : vector<1x32xf32>, vector<1x32xf32> -> vector<1x64xf32>
    %c1_100 = arith.constant 1 : index
    %c0_101 = arith.constant 0 : index
    %c0_102 = arith.constant 0 : index
    %261 = vector.load %arg7[%c1_100, %c0_101, %c0_102] : memref<3x64x128xf32, #tpu.memory_space<vmem>>, vector<1x64x128xf32>
    %262 = vector.shape_cast %261 : vector<1x64x128xf32> to vector<64x128xf32>
    %cst_103 = arith.constant dense<0.000000e+00> : vector<1x128xf32>
    %263 = tpu.matmul %260, %262, %cst_103 {dimension_numbers = #tpu.dot_dimension_numbers<[1], [0], [0], [1], [0, 0, 1, 1], [], []>} : vector<1x64xf32>, vector<64x128xf32>, vector<1x128xf32> -> vector<1x128xf32>
    %264 = vector.extract_strided_slice %245 {offsets = [1, 0], sizes = [1, 32], strides = [1, 1]} : vector<3x32xf32> to vector<1x32xf32>
    %265 = vector.extract_strided_slice %245 {offsets = [2, 0], sizes = [1, 32], strides = [1, 1]} : vector<3x32xf32> to vector<1x32xf32>
    %266 = tpu.concatenate %264, %265 in 1 : vector<1x32xf32>, vector<1x32xf32> -> vector<1x64xf32>
    %c2_104 = arith.constant 2 : index
    %c0_105 = arith.constant 0 : index
    %c0_106 = arith.constant 0 : index
    %267 = vector.load %arg7[%c2_104, %c0_105, %c0_106] : memref<3x64x128xf32, #tpu.memory_space<vmem>>, vector<1x64x128xf32>
    %268 = vector.shape_cast %267 : vector<1x64x128xf32> to vector<64x128xf32>
    %cst_107 = arith.constant dense<0.000000e+00> : vector<1x128xf32>
    %269 = tpu.matmul %266, %268, %cst_107 {dimension_numbers = #tpu.dot_dimension_numbers<[1], [0], [0], [1], [0, 0, 1, 1], [], []>} : vector<1x64xf32>, vector<64x128xf32>, vector<1x128xf32> -> vector<1x128xf32>
    %270 = tpu.concatenate %257, %263, %269 in 0 : vector<1x128xf32>, vector<1x128xf32>, vector<1x128xf32> -> vector<3x128xf32>
    %271 = arith.addf %270, %46 : vector<3x128xf32>
    %272 = vector.extract_strided_slice %271 {offsets = [0, 0], sizes = [3, 96], strides = [1, 1]} : vector<3x128xf32> to vector<3x96xf32>
    %273 = arith.negf %272 : vector<3x96xf32>
    %274 = math.exp %273 : vector<3x96xf32>
    %cst_108 = arith.constant 1.000000e+00 : f32
    %275 = vector.broadcast %cst_108 : f32 to vector<3x96xf32>
    %276 = arith.addf %275, %274 : vector<3x96xf32>
    %277 = arith.divf %275, %276 : vector<3x96xf32>
    %278 = vector.extract_strided_slice %271 {offsets = [0, 96], sizes = [3, 32], strides = [1, 1]} : vector<3x128xf32> to vector<3x32xf32>
    %279 = math.tanh %278 : vector<3x32xf32>
    %280 = vector.extract_strided_slice %277 {offsets = [0, 0], sizes = [3, 32], strides = [1, 1]} : vector<3x96xf32> to vector<3x32xf32>
    %281 = vector.extract_strided_slice %277 {offsets = [0, 32], sizes = [3, 32], strides = [1, 1]} : vector<3x96xf32> to vector<3x32xf32>
    %282 = vector.extract_strided_slice %277 {offsets = [0, 64], sizes = [3, 32], strides = [1, 1]} : vector<3x96xf32> to vector<3x32xf32>
    %283 = arith.mulf %281, %246 : vector<3x32xf32>
    %284 = arith.mulf %280, %279 : vector<3x32xf32>
    %285 = arith.addf %283, %284 : vector<3x32xf32>
    %286 = math.tanh %285 : vector<3x32xf32>
    %287 = arith.mulf %282, %286 : vector<3x32xf32>
    %288 = vector.broadcast %c4_i32 : i32 to vector<3x32xi32>
    %289 = arith.subi %288, %47 : vector<3x32xi32>
    %c0_i32_109 = arith.constant 0 : i32
    %290 = vector.broadcast %c0_i32_109 : i32 to vector<3x32xi32>
    %291 = arith.cmpi sge, %289, %290 : vector<3x32xi32>
    %c16_i32_110 = arith.constant 16 : i32
    %292 = vector.broadcast %c16_i32_110 : i32 to vector<3x32xi32>
    %293 = arith.cmpi slt, %289, %292 : vector<3x32xi32>
    %294 = arith.andi %291, %293 : vector<3x32xi1>
    %295 = arith.select %294, %287, %245 : vector<3x32xi1>, vector<3x32xf32>
    %296 = arith.select %294, %285, %246 : vector<3x32xi1>, vector<3x32xf32>
    %c2_i32_111 = arith.constant 2 : i32
    %297 = arith.cmpi sge, %c4_i32, %c2_i32_111 : i32
    %298 = arith.extui %297 : i1 to i32
    %c0_i32_112 = arith.constant 0 : i32
    %299 = arith.cmpi ne, %298, %c0_i32_112 : i32
    scf.if %299 {
      %957 = vector.extract_strided_slice %295 {offsets = [2, 0], sizes = [1, 32], strides = [1, 1]} : vector<3x32xf32> to vector<1x32xf32>
      %c2_i32_371 = arith.constant 2 : i32
      %958 = arith.subi %c4_i32, %c2_i32_371 : i32
      %959 = arith.index_cast %958 : i32 to index
      %c0_372 = arith.constant 0 : index
      %960 = vector.load %arg13[%959, %c0_372] : memref<16x32xf32, #tpu.memory_space<vmem>>, vector<1x32xf32>
      tpu.vector_store %arg13[%959, %c0_372], %957 {strides = array<i32>} : memref<16x32xf32, #tpu.memory_space<vmem>>, vector<1x32xf32>,
    } else {
    }
    %c5_i32 = arith.constant 5 : i32
    %c15_i32_113 = arith.constant 15 : i32
    %300 = arith.minsi %c5_i32, %c15_i32_113 : i32
    %301 = arith.index_cast %300 : i32 to index
    %c0_114 = arith.constant 0 : index
    %302 = vector.load %arg12[%301, %c0_114] : memref<16x32xf32, #tpu.memory_space<vmem>>, vector<1x32xf32>
    %303 = vector.extract_strided_slice %295 {offsets = [0, 0], sizes = [1, 32], strides = [1, 1]} : vector<3x32xf32> to vector<1x32xf32>
    %304 = tpu.concatenate %302, %303 in 1 : vector<1x32xf32>, vector<1x32xf32> -> vector<1x64xf32>
    %c0_115 = arith.constant 0 : index
    %c0_116 = arith.constant 0 : index
    %c0_117 = arith.constant 0 : index
    %305 = vector.load %arg7[%c0_115, %c0_116, %c0_117] : memref<3x64x128xf32, #tpu.memory_space<vmem>>, vector<1x64x128xf32>
    %306 = vector.shape_cast %305 : vector<1x64x128xf32> to vector<64x128xf32>
    %cst_118 = arith.constant dense<0.000000e+00> : vector<1x128xf32>
    %307 = tpu.matmul %304, %306, %cst_118 {dimension_numbers = #tpu.dot_dimension_numbers<[1], [0], [0], [1], [0, 0, 1, 1], [], []>} : vector<1x64xf32>, vector<64x128xf32>, vector<1x128xf32> -> vector<1x128xf32>
    %308 = vector.extract_strided_slice %295 {offsets = [0, 0], sizes = [1, 32], strides = [1, 1]} : vector<3x32xf32> to vector<1x32xf32>
    %309 = vector.extract_strided_slice %295 {offsets = [1, 0], sizes = [1, 32], strides = [1, 1]} : vector<3x32xf32> to vector<1x32xf32>
    %310 = tpu.concatenate %308, %309 in 1 : vector<1x32xf32>, vector<1x32xf32> -> vector<1x64xf32>
    %c1_119 = arith.constant 1 : index
    %c0_120 = arith.constant 0 : index
    %c0_121 = arith.constant 0 : index
    %311 = vector.load %arg7[%c1_119, %c0_120, %c0_121] : memref<3x64x128xf32, #tpu.memory_space<vmem>>, vector<1x64x128xf32>
    %312 = vector.shape_cast %311 : vector<1x64x128xf32> to vector<64x128xf32>
    %cst_122 = arith.constant dense<0.000000e+00> : vector<1x128xf32>
    %313 = tpu.matmul %310, %312, %cst_122 {dimension_numbers = #tpu.dot_dimension_numbers<[1], [0], [0], [1], [0, 0, 1, 1], [], []>} : vector<1x64xf32>, vector<64x128xf32>, vector<1x128xf32> -> vector<1x128xf32>
    %314 = vector.extract_strided_slice %295 {offsets = [1, 0], sizes = [1, 32], strides = [1, 1]} : vector<3x32xf32> to vector<1x32xf32>
    %315 = vector.extract_strided_slice %295 {offsets = [2, 0], sizes = [1, 32], strides = [1, 1]} : vector<3x32xf32> to vector<1x32xf32>
    %316 = tpu.concatenate %314, %315 in 1 : vector<1x32xf32>, vector<1x32xf32> -> vector<1x64xf32>
    %c2_123 = arith.constant 2 : index
    %c0_124 = arith.constant 0 : index
    %c0_125 = arith.constant 0 : index
    %317 = vector.load %arg7[%c2_123, %c0_124, %c0_125] : memref<3x64x128xf32, #tpu.memory_space<vmem>>, vector<1x64x128xf32>
    %318 = vector.shape_cast %317 : vector<1x64x128xf32> to vector<64x128xf32>
    %cst_126 = arith.constant dense<0.000000e+00> : vector<1x128xf32>
    %319 = tpu.matmul %316, %318, %cst_126 {dimension_numbers = #tpu.dot_dimension_numbers<[1], [0], [0], [1], [0, 0, 1, 1], [], []>} : vector<1x64xf32>, vector<64x128xf32>, vector<1x128xf32> -> vector<1x128xf32>
    %320 = tpu.concatenate %307, %313, %319 in 0 : vector<1x128xf32>, vector<1x128xf32>, vector<1x128xf32> -> vector<3x128xf32>
    %321 = arith.addf %320, %46 : vector<3x128xf32>
    %322 = vector.extract_strided_slice %321 {offsets = [0, 0], sizes = [3, 96], strides = [1, 1]} : vector<3x128xf32> to vector<3x96xf32>
    %323 = arith.negf %322 : vector<3x96xf32>
    %324 = math.exp %323 : vector<3x96xf32>
    %cst_127 = arith.constant 1.000000e+00 : f32
    %325 = vector.broadcast %cst_127 : f32 to vector<3x96xf32>
    %326 = arith.addf %325, %324 : vector<3x96xf32>
    %327 = arith.divf %325, %326 : vector<3x96xf32>
    %328 = vector.extract_strided_slice %321 {offsets = [0, 96], sizes = [3, 32], strides = [1, 1]} : vector<3x128xf32> to vector<3x32xf32>
    %329 = math.tanh %328 : vector<3x32xf32>
    %330 = vector.extract_strided_slice %327 {offsets = [0, 0], sizes = [3, 32], strides = [1, 1]} : vector<3x96xf32> to vector<3x32xf32>
    %331 = vector.extract_strided_slice %327 {offsets = [0, 32], sizes = [3, 32], strides = [1, 1]} : vector<3x96xf32> to vector<3x32xf32>
    %332 = vector.extract_strided_slice %327 {offsets = [0, 64], sizes = [3, 32], strides = [1, 1]} : vector<3x96xf32> to vector<3x32xf32>
    %333 = arith.mulf %331, %296 : vector<3x32xf32>
    %334 = arith.mulf %330, %329 : vector<3x32xf32>
    %335 = arith.addf %333, %334 : vector<3x32xf32>
    %336 = math.tanh %335 : vector<3x32xf32>
    %337 = arith.mulf %332, %336 : vector<3x32xf32>
    %338 = vector.broadcast %c5_i32 : i32 to vector<3x32xi32>
    %339 = arith.subi %338, %47 : vector<3x32xi32>
    %c0_i32_128 = arith.constant 0 : i32
    %340 = vector.broadcast %c0_i32_128 : i32 to vector<3x32xi32>
    %341 = arith.cmpi sge, %339, %340 : vector<3x32xi32>
    %c16_i32_129 = arith.constant 16 : i32
    %342 = vector.broadcast %c16_i32_129 : i32 to vector<3x32xi32>
    %343 = arith.cmpi slt, %339, %342 : vector<3x32xi32>
    %344 = arith.andi %341, %343 : vector<3x32xi1>
    %345 = arith.select %344, %337, %295 : vector<3x32xi1>, vector<3x32xf32>
    %346 = arith.select %344, %335, %296 : vector<3x32xi1>, vector<3x32xf32>
    %c2_i32_130 = arith.constant 2 : i32
    %347 = arith.cmpi sge, %c5_i32, %c2_i32_130 : i32
    %348 = arith.extui %347 : i1 to i32
    %c0_i32_131 = arith.constant 0 : i32
    %349 = arith.cmpi ne, %348, %c0_i32_131 : i32
    scf.if %349 {
      %957 = vector.extract_strided_slice %345 {offsets = [2, 0], sizes = [1, 32], strides = [1, 1]} : vector<3x32xf32> to vector<1x32xf32>
      %c2_i32_371 = arith.constant 2 : i32
      %958 = arith.subi %c5_i32, %c2_i32_371 : i32
      %959 = arith.index_cast %958 : i32 to index
      %c0_372 = arith.constant 0 : index
      %960 = vector.load %arg13[%959, %c0_372] : memref<16x32xf32, #tpu.memory_space<vmem>>, vector<1x32xf32>
      tpu.vector_store %arg13[%959, %c0_372], %957 {strides = array<i32>} : memref<16x32xf32, #tpu.memory_space<vmem>>, vector<1x32xf32>,
    } else {
    }
    %c6_i32 = arith.constant 6 : i32
    %c15_i32_132 = arith.constant 15 : i32
    %350 = arith.minsi %c6_i32, %c15_i32_132 : i32
    %351 = arith.index_cast %350 : i32 to index
    %c0_133 = arith.constant 0 : index
    %352 = vector.load %arg12[%351, %c0_133] : memref<16x32xf32, #tpu.memory_space<vmem>>, vector<1x32xf32>
    %353 = vector.extract_strided_slice %345 {offsets = [0, 0], sizes = [1, 32], strides = [1, 1]} : vector<3x32xf32> to vector<1x32xf32>
    %354 = tpu.concatenate %352, %353 in 1 : vector<1x32xf32>, vector<1x32xf32> -> vector<1x64xf32>
    %c0_134 = arith.constant 0 : index
    %c0_135 = arith.constant 0 : index
    %c0_136 = arith.constant 0 : index
    %355 = vector.load %arg7[%c0_134, %c0_135, %c0_136] : memref<3x64x128xf32, #tpu.memory_space<vmem>>, vector<1x64x128xf32>
    %356 = vector.shape_cast %355 : vector<1x64x128xf32> to vector<64x128xf32>
    %cst_137 = arith.constant dense<0.000000e+00> : vector<1x128xf32>
    %357 = tpu.matmul %354, %356, %cst_137 {dimension_numbers = #tpu.dot_dimension_numbers<[1], [0], [0], [1], [0, 0, 1, 1], [], []>} : vector<1x64xf32>, vector<64x128xf32>, vector<1x128xf32> -> vector<1x128xf32>
    %358 = vector.extract_strided_slice %345 {offsets = [0, 0], sizes = [1, 32], strides = [1, 1]} : vector<3x32xf32> to vector<1x32xf32>
    %359 = vector.extract_strided_slice %345 {offsets = [1, 0], sizes = [1, 32], strides = [1, 1]} : vector<3x32xf32> to vector<1x32xf32>
    %360 = tpu.concatenate %358, %359 in 1 : vector<1x32xf32>, vector<1x32xf32> -> vector<1x64xf32>
    %c1_138 = arith.constant 1 : index
    %c0_139 = arith.constant 0 : index
    %c0_140 = arith.constant 0 : index
    %361 = vector.load %arg7[%c1_138, %c0_139, %c0_140] : memref<3x64x128xf32, #tpu.memory_space<vmem>>, vector<1x64x128xf32>
    %362 = vector.shape_cast %361 : vector<1x64x128xf32> to vector<64x128xf32>
    %cst_141 = arith.constant dense<0.000000e+00> : vector<1x128xf32>
    %363 = tpu.matmul %360, %362, %cst_141 {dimension_numbers = #tpu.dot_dimension_numbers<[1], [0], [0], [1], [0, 0, 1, 1], [], []>} : vector<1x64xf32>, vector<64x128xf32>, vector<1x128xf32> -> vector<1x128xf32>
    %364 = vector.extract_strided_slice %345 {offsets = [1, 0], sizes = [1, 32], strides = [1, 1]} : vector<3x32xf32> to vector<1x32xf32>
    %365 = vector.extract_strided_slice %345 {offsets = [2, 0], sizes = [1, 32], strides = [1, 1]} : vector<3x32xf32> to vector<1x32xf32>
    %366 = tpu.concatenate %364, %365 in 1 : vector<1x32xf32>, vector<1x32xf32> -> vector<1x64xf32>
    %c2_142 = arith.constant 2 : index
    %c0_143 = arith.constant 0 : index
    %c0_144 = arith.constant 0 : index
    %367 = vector.load %arg7[%c2_142, %c0_143, %c0_144] : memref<3x64x128xf32, #tpu.memory_space<vmem>>, vector<1x64x128xf32>
    %368 = vector.shape_cast %367 : vector<1x64x128xf32> to vector<64x128xf32>
    %cst_145 = arith.constant dense<0.000000e+00> : vector<1x128xf32>
    %369 = tpu.matmul %366, %368, %cst_145 {dimension_numbers = #tpu.dot_dimension_numbers<[1], [0], [0], [1], [0, 0, 1, 1], [], []>} : vector<1x64xf32>, vector<64x128xf32>, vector<1x128xf32> -> vector<1x128xf32>
    %370 = tpu.concatenate %357, %363, %369 in 0 : vector<1x128xf32>, vector<1x128xf32>, vector<1x128xf32> -> vector<3x128xf32>
    %371 = arith.addf %370, %46 : vector<3x128xf32>
    %372 = vector.extract_strided_slice %371 {offsets = [0, 0], sizes = [3, 96], strides = [1, 1]} : vector<3x128xf32> to vector<3x96xf32>
    %373 = arith.negf %372 : vector<3x96xf32>
    %374 = math.exp %373 : vector<3x96xf32>
    %cst_146 = arith.constant 1.000000e+00 : f32
    %375 = vector.broadcast %cst_146 : f32 to vector<3x96xf32>
    %376 = arith.addf %375, %374 : vector<3x96xf32>
    %377 = arith.divf %375, %376 : vector<3x96xf32>
    %378 = vector.extract_strided_slice %371 {offsets = [0, 96], sizes = [3, 32], strides = [1, 1]} : vector<3x128xf32> to vector<3x32xf32>
    %379 = math.tanh %378 : vector<3x32xf32>
    %380 = vector.extract_strided_slice %377 {offsets = [0, 0], sizes = [3, 32], strides = [1, 1]} : vector<3x96xf32> to vector<3x32xf32>
    %381 = vector.extract_strided_slice %377 {offsets = [0, 32], sizes = [3, 32], strides = [1, 1]} : vector<3x96xf32> to vector<3x32xf32>
    %382 = vector.extract_strided_slice %377 {offsets = [0, 64], sizes = [3, 32], strides = [1, 1]} : vector<3x96xf32> to vector<3x32xf32>
    %383 = arith.mulf %381, %346 : vector<3x32xf32>
    %384 = arith.mulf %380, %379 : vector<3x32xf32>
    %385 = arith.addf %383, %384 : vector<3x32xf32>
    %386 = math.tanh %385 : vector<3x32xf32>
    %387 = arith.mulf %382, %386 : vector<3x32xf32>
    %388 = vector.broadcast %c6_i32 : i32 to vector<3x32xi32>
    %389 = arith.subi %388, %47 : vector<3x32xi32>
    %c0_i32_147 = arith.constant 0 : i32
    %390 = vector.broadcast %c0_i32_147 : i32 to vector<3x32xi32>
    %391 = arith.cmpi sge, %389, %390 : vector<3x32xi32>
    %c16_i32_148 = arith.constant 16 : i32
    %392 = vector.broadcast %c16_i32_148 : i32 to vector<3x32xi32>
    %393 = arith.cmpi slt, %389, %392 : vector<3x32xi32>
    %394 = arith.andi %391, %393 : vector<3x32xi1>
    %395 = arith.select %394, %387, %345 : vector<3x32xi1>, vector<3x32xf32>
    %396 = arith.select %394, %385, %346 : vector<3x32xi1>, vector<3x32xf32>
    %c2_i32_149 = arith.constant 2 : i32
    %397 = arith.cmpi sge, %c6_i32, %c2_i32_149 : i32
    %398 = arith.extui %397 : i1 to i32
    %c0_i32_150 = arith.constant 0 : i32
    %399 = arith.cmpi ne, %398, %c0_i32_150 : i32
    scf.if %399 {
      %957 = vector.extract_strided_slice %395 {offsets = [2, 0], sizes = [1, 32], strides = [1, 1]} : vector<3x32xf32> to vector<1x32xf32>
      %c2_i32_371 = arith.constant 2 : i32
      %958 = arith.subi %c6_i32, %c2_i32_371 : i32
      %959 = arith.index_cast %958 : i32 to index
      %c0_372 = arith.constant 0 : index
      %960 = vector.load %arg13[%959, %c0_372] : memref<16x32xf32, #tpu.memory_space<vmem>>, vector<1x32xf32>
      tpu.vector_store %arg13[%959, %c0_372], %957 {strides = array<i32>} : memref<16x32xf32, #tpu.memory_space<vmem>>, vector<1x32xf32>,
    } else {
    }
    %c7_i32 = arith.constant 7 : i32
    %c15_i32_151 = arith.constant 15 : i32
    %400 = arith.minsi %c7_i32, %c15_i32_151 : i32
    %401 = arith.index_cast %400 : i32 to index
    %c0_152 = arith.constant 0 : index
    %402 = vector.load %arg12[%401, %c0_152] : memref<16x32xf32, #tpu.memory_space<vmem>>, vector<1x32xf32>
    %403 = vector.extract_strided_slice %395 {offsets = [0, 0], sizes = [1, 32], strides = [1, 1]} : vector<3x32xf32> to vector<1x32xf32>
    %404 = tpu.concatenate %402, %403 in 1 : vector<1x32xf32>, vector<1x32xf32> -> vector<1x64xf32>
    %c0_153 = arith.constant 0 : index
    %c0_154 = arith.constant 0 : index
    %c0_155 = arith.constant 0 : index
    %405 = vector.load %arg7[%c0_153, %c0_154, %c0_155] : memref<3x64x128xf32, #tpu.memory_space<vmem>>, vector<1x64x128xf32>
    %406 = vector.shape_cast %405 : vector<1x64x128xf32> to vector<64x128xf32>
    %cst_156 = arith.constant dense<0.000000e+00> : vector<1x128xf32>
    %407 = tpu.matmul %404, %406, %cst_156 {dimension_numbers = #tpu.dot_dimension_numbers<[1], [0], [0], [1], [0, 0, 1, 1], [], []>} : vector<1x64xf32>, vector<64x128xf32>, vector<1x128xf32> -> vector<1x128xf32>
    %408 = vector.extract_strided_slice %395 {offsets = [0, 0], sizes = [1, 32], strides = [1, 1]} : vector<3x32xf32> to vector<1x32xf32>
    %409 = vector.extract_strided_slice %395 {offsets = [1, 0], sizes = [1, 32], strides = [1, 1]} : vector<3x32xf32> to vector<1x32xf32>
    %410 = tpu.concatenate %408, %409 in 1 : vector<1x32xf32>, vector<1x32xf32> -> vector<1x64xf32>
    %c1_157 = arith.constant 1 : index
    %c0_158 = arith.constant 0 : index
    %c0_159 = arith.constant 0 : index
    %411 = vector.load %arg7[%c1_157, %c0_158, %c0_159] : memref<3x64x128xf32, #tpu.memory_space<vmem>>, vector<1x64x128xf32>
    %412 = vector.shape_cast %411 : vector<1x64x128xf32> to vector<64x128xf32>
    %cst_160 = arith.constant dense<0.000000e+00> : vector<1x128xf32>
    %413 = tpu.matmul %410, %412, %cst_160 {dimension_numbers = #tpu.dot_dimension_numbers<[1], [0], [0], [1], [0, 0, 1, 1], [], []>} : vector<1x64xf32>, vector<64x128xf32>, vector<1x128xf32> -> vector<1x128xf32>
    %414 = vector.extract_strided_slice %395 {offsets = [1, 0], sizes = [1, 32], strides = [1, 1]} : vector<3x32xf32> to vector<1x32xf32>
    %415 = vector.extract_strided_slice %395 {offsets = [2, 0], sizes = [1, 32], strides = [1, 1]} : vector<3x32xf32> to vector<1x32xf32>
    %416 = tpu.concatenate %414, %415 in 1 : vector<1x32xf32>, vector<1x32xf32> -> vector<1x64xf32>
    %c2_161 = arith.constant 2 : index
    %c0_162 = arith.constant 0 : index
    %c0_163 = arith.constant 0 : index
    %417 = vector.load %arg7[%c2_161, %c0_162, %c0_163] : memref<3x64x128xf32, #tpu.memory_space<vmem>>, vector<1x64x128xf32>
    %418 = vector.shape_cast %417 : vector<1x64x128xf32> to vector<64x128xf32>
    %cst_164 = arith.constant dense<0.000000e+00> : vector<1x128xf32>
    %419 = tpu.matmul %416, %418, %cst_164 {dimension_numbers = #tpu.dot_dimension_numbers<[1], [0], [0], [1], [0, 0, 1, 1], [], []>} : vector<1x64xf32>, vector<64x128xf32>, vector<1x128xf32> -> vector<1x128xf32>
    %420 = tpu.concatenate %407, %413, %419 in 0 : vector<1x128xf32>, vector<1x128xf32>, vector<1x128xf32> -> vector<3x128xf32>
    %421 = arith.addf %420, %46 : vector<3x128xf32>
    %422 = vector.extract_strided_slice %421 {offsets = [0, 0], sizes = [3, 96], strides = [1, 1]} : vector<3x128xf32> to vector<3x96xf32>
    %423 = arith.negf %422 : vector<3x96xf32>
    %424 = math.exp %423 : vector<3x96xf32>
    %cst_165 = arith.constant 1.000000e+00 : f32
    %425 = vector.broadcast %cst_165 : f32 to vector<3x96xf32>
    %426 = arith.addf %425, %424 : vector<3x96xf32>
    %427 = arith.divf %425, %426 : vector<3x96xf32>
    %428 = vector.extract_strided_slice %421 {offsets = [0, 96], sizes = [3, 32], strides = [1, 1]} : vector<3x128xf32> to vector<3x32xf32>
    %429 = math.tanh %428 : vector<3x32xf32>
    %430 = vector.extract_strided_slice %427 {offsets = [0, 0], sizes = [3, 32], strides = [1, 1]} : vector<3x96xf32> to vector<3x32xf32>
    %431 = vector.extract_strided_slice %427 {offsets = [0, 32], sizes = [3, 32], strides = [1, 1]} : vector<3x96xf32> to vector<3x32xf32>
    %432 = vector.extract_strided_slice %427 {offsets = [0, 64], sizes = [3, 32], strides = [1, 1]} : vector<3x96xf32> to vector<3x32xf32>
    %433 = arith.mulf %431, %396 : vector<3x32xf32>
    %434 = arith.mulf %430, %429 : vector<3x32xf32>
    %435 = arith.addf %433, %434 : vector<3x32xf32>
    %436 = math.tanh %435 : vector<3x32xf32>
    %437 = arith.mulf %432, %436 : vector<3x32xf32>
    %438 = vector.broadcast %c7_i32 : i32 to vector<3x32xi32>
    %439 = arith.subi %438, %47 : vector<3x32xi32>
    %c0_i32_166 = arith.constant 0 : i32
    %440 = vector.broadcast %c0_i32_166 : i32 to vector<3x32xi32>
    %441 = arith.cmpi sge, %439, %440 : vector<3x32xi32>
    %c16_i32_167 = arith.constant 16 : i32
    %442 = vector.broadcast %c16_i32_167 : i32 to vector<3x32xi32>
    %443 = arith.cmpi slt, %439, %442 : vector<3x32xi32>
    %444 = arith.andi %441, %443 : vector<3x32xi1>
    %445 = arith.select %444, %437, %395 : vector<3x32xi1>, vector<3x32xf32>
    %446 = arith.select %444, %435, %396 : vector<3x32xi1>, vector<3x32xf32>
    %c2_i32_168 = arith.constant 2 : i32
    %447 = arith.cmpi sge, %c7_i32, %c2_i32_168 : i32
    %448 = arith.extui %447 : i1 to i32
    %c0_i32_169 = arith.constant 0 : i32
    %449 = arith.cmpi ne, %448, %c0_i32_169 : i32
    scf.if %449 {
      %957 = vector.extract_strided_slice %445 {offsets = [2, 0], sizes = [1, 32], strides = [1, 1]} : vector<3x32xf32> to vector<1x32xf32>
      %c2_i32_371 = arith.constant 2 : i32
      %958 = arith.subi %c7_i32, %c2_i32_371 : i32
      %959 = arith.index_cast %958 : i32 to index
      %c0_372 = arith.constant 0 : index
      %960 = vector.load %arg13[%959, %c0_372] : memref<16x32xf32, #tpu.memory_space<vmem>>, vector<1x32xf32>
      tpu.vector_store %arg13[%959, %c0_372], %957 {strides = array<i32>} : memref<16x32xf32, #tpu.memory_space<vmem>>, vector<1x32xf32>,
    } else {
    }
    %c8_i32 = arith.constant 8 : i32
    %c15_i32_170 = arith.constant 15 : i32
    %450 = arith.minsi %c8_i32, %c15_i32_170 : i32
    %451 = arith.index_cast %450 : i32 to index
    %c0_171 = arith.constant 0 : index
    %452 = vector.load %arg12[%451, %c0_171] : memref<16x32xf32, #tpu.memory_space<vmem>>, vector<1x32xf32>
    %453 = vector.extract_strided_slice %445 {offsets = [0, 0], sizes = [1, 32], strides = [1, 1]} : vector<3x32xf32> to vector<1x32xf32>
    %454 = tpu.concatenate %452, %453 in 1 : vector<1x32xf32>, vector<1x32xf32> -> vector<1x64xf32>
    %c0_172 = arith.constant 0 : index
    %c0_173 = arith.constant 0 : index
    %c0_174 = arith.constant 0 : index
    %455 = vector.load %arg7[%c0_172, %c0_173, %c0_174] : memref<3x64x128xf32, #tpu.memory_space<vmem>>, vector<1x64x128xf32>
    %456 = vector.shape_cast %455 : vector<1x64x128xf32> to vector<64x128xf32>
    %cst_175 = arith.constant dense<0.000000e+00> : vector<1x128xf32>
    %457 = tpu.matmul %454, %456, %cst_175 {dimension_numbers = #tpu.dot_dimension_numbers<[1], [0], [0], [1], [0, 0, 1, 1], [], []>} : vector<1x64xf32>, vector<64x128xf32>, vector<1x128xf32> -> vector<1x128xf32>
    %458 = vector.extract_strided_slice %445 {offsets = [0, 0], sizes = [1, 32], strides = [1, 1]} : vector<3x32xf32> to vector<1x32xf32>
    %459 = vector.extract_strided_slice %445 {offsets = [1, 0], sizes = [1, 32], strides = [1, 1]} : vector<3x32xf32> to vector<1x32xf32>
    %460 = tpu.concatenate %458, %459 in 1 : vector<1x32xf32>, vector<1x32xf32> -> vector<1x64xf32>
    %c1_176 = arith.constant 1 : index
    %c0_177 = arith.constant 0 : index
    %c0_178 = arith.constant 0 : index
    %461 = vector.load %arg7[%c1_176, %c0_177, %c0_178] : memref<3x64x128xf32, #tpu.memory_space<vmem>>, vector<1x64x128xf32>
    %462 = vector.shape_cast %461 : vector<1x64x128xf32> to vector<64x128xf32>
    %cst_179 = arith.constant dense<0.000000e+00> : vector<1x128xf32>
    %463 = tpu.matmul %460, %462, %cst_179 {dimension_numbers = #tpu.dot_dimension_numbers<[1], [0], [0], [1], [0, 0, 1, 1], [], []>} : vector<1x64xf32>, vector<64x128xf32>, vector<1x128xf32> -> vector<1x128xf32>
    %464 = vector.extract_strided_slice %445 {offsets = [1, 0], sizes = [1, 32], strides = [1, 1]} : vector<3x32xf32> to vector<1x32xf32>
    %465 = vector.extract_strided_slice %445 {offsets = [2, 0], sizes = [1, 32], strides = [1, 1]} : vector<3x32xf32> to vector<1x32xf32>
    %466 = tpu.concatenate %464, %465 in 1 : vector<1x32xf32>, vector<1x32xf32> -> vector<1x64xf32>
    %c2_180 = arith.constant 2 : index
    %c0_181 = arith.constant 0 : index
    %c0_182 = arith.constant 0 : index
    %467 = vector.load %arg7[%c2_180, %c0_181, %c0_182] : memref<3x64x128xf32, #tpu.memory_space<vmem>>, vector<1x64x128xf32>
    %468 = vector.shape_cast %467 : vector<1x64x128xf32> to vector<64x128xf32>
    %cst_183 = arith.constant dense<0.000000e+00> : vector<1x128xf32>
    %469 = tpu.matmul %466, %468, %cst_183 {dimension_numbers = #tpu.dot_dimension_numbers<[1], [0], [0], [1], [0, 0, 1, 1], [], []>} : vector<1x64xf32>, vector<64x128xf32>, vector<1x128xf32> -> vector<1x128xf32>
    %470 = tpu.concatenate %457, %463, %469 in 0 : vector<1x128xf32>, vector<1x128xf32>, vector<1x128xf32> -> vector<3x128xf32>
    %471 = arith.addf %470, %46 : vector<3x128xf32>
    %472 = vector.extract_strided_slice %471 {offsets = [0, 0], sizes = [3, 96], strides = [1, 1]} : vector<3x128xf32> to vector<3x96xf32>
    %473 = arith.negf %472 : vector<3x96xf32>
    %474 = math.exp %473 : vector<3x96xf32>
    %cst_184 = arith.constant 1.000000e+00 : f32
    %475 = vector.broadcast %cst_184 : f32 to vector<3x96xf32>
    %476 = arith.addf %475, %474 : vector<3x96xf32>
    %477 = arith.divf %475, %476 : vector<3x96xf32>
    %478 = vector.extract_strided_slice %471 {offsets = [0, 96], sizes = [3, 32], strides = [1, 1]} : vector<3x128xf32> to vector<3x32xf32>
    %479 = math.tanh %478 : vector<3x32xf32>
    %480 = vector.extract_strided_slice %477 {offsets = [0, 0], sizes = [3, 32], strides = [1, 1]} : vector<3x96xf32> to vector<3x32xf32>
    %481 = vector.extract_strided_slice %477 {offsets = [0, 32], sizes = [3, 32], strides = [1, 1]} : vector<3x96xf32> to vector<3x32xf32>
    %482 = vector.extract_strided_slice %477 {offsets = [0, 64], sizes = [3, 32], strides = [1, 1]} : vector<3x96xf32> to vector<3x32xf32>
    %483 = arith.mulf %481, %446 : vector<3x32xf32>
    %484 = arith.mulf %480, %479 : vector<3x32xf32>
    %485 = arith.addf %483, %484 : vector<3x32xf32>
    %486 = math.tanh %485 : vector<3x32xf32>
    %487 = arith.mulf %482, %486 : vector<3x32xf32>
    %488 = vector.broadcast %c8_i32 : i32 to vector<3x32xi32>
    %489 = arith.subi %488, %47 : vector<3x32xi32>
    %c0_i32_185 = arith.constant 0 : i32
    %490 = vector.broadcast %c0_i32_185 : i32 to vector<3x32xi32>
    %491 = arith.cmpi sge, %489, %490 : vector<3x32xi32>
    %c16_i32_186 = arith.constant 16 : i32
    %492 = vector.broadcast %c16_i32_186 : i32 to vector<3x32xi32>
    %493 = arith.cmpi slt, %489, %492 : vector<3x32xi32>
    %494 = arith.andi %491, %493 : vector<3x32xi1>
    %495 = arith.select %494, %487, %445 : vector<3x32xi1>, vector<3x32xf32>
    %496 = arith.select %494, %485, %446 : vector<3x32xi1>, vector<3x32xf32>
    %c2_i32_187 = arith.constant 2 : i32
    %497 = arith.cmpi sge, %c8_i32, %c2_i32_187 : i32
    %498 = arith.extui %497 : i1 to i32
    %c0_i32_188 = arith.constant 0 : i32
    %499 = arith.cmpi ne, %498, %c0_i32_188 : i32
    scf.if %499 {
      %957 = vector.extract_strided_slice %495 {offsets = [2, 0], sizes = [1, 32], strides = [1, 1]} : vector<3x32xf32> to vector<1x32xf32>
      %c2_i32_371 = arith.constant 2 : i32
      %958 = arith.subi %c8_i32, %c2_i32_371 : i32
      %959 = arith.index_cast %958 : i32 to index
      %c0_372 = arith.constant 0 : index
      %960 = vector.load %arg13[%959, %c0_372] : memref<16x32xf32, #tpu.memory_space<vmem>>, vector<1x32xf32>
      tpu.vector_store %arg13[%959, %c0_372], %957 {strides = array<i32>} : memref<16x32xf32, #tpu.memory_space<vmem>>, vector<1x32xf32>,
    } else {
    }
    %c9_i32 = arith.constant 9 : i32
    %c15_i32_189 = arith.constant 15 : i32
    %500 = arith.minsi %c9_i32, %c15_i32_189 : i32
    %501 = arith.index_cast %500 : i32 to index
    %c0_190 = arith.constant 0 : index
    %502 = vector.load %arg12[%501, %c0_190] : memref<16x32xf32, #tpu.memory_space<vmem>>, vector<1x32xf32>
    %503 = vector.extract_strided_slice %495 {offsets = [0, 0], sizes = [1, 32], strides = [1, 1]} : vector<3x32xf32> to vector<1x32xf32>
    %504 = tpu.concatenate %502, %503 in 1 : vector<1x32xf32>, vector<1x32xf32> -> vector<1x64xf32>
    %c0_191 = arith.constant 0 : index
    %c0_192 = arith.constant 0 : index
    %c0_193 = arith.constant 0 : index
    %505 = vector.load %arg7[%c0_191, %c0_192, %c0_193] : memref<3x64x128xf32, #tpu.memory_space<vmem>>, vector<1x64x128xf32>
    %506 = vector.shape_cast %505 : vector<1x64x128xf32> to vector<64x128xf32>
    %cst_194 = arith.constant dense<0.000000e+00> : vector<1x128xf32>
    %507 = tpu.matmul %504, %506, %cst_194 {dimension_numbers = #tpu.dot_dimension_numbers<[1], [0], [0], [1], [0, 0, 1, 1], [], []>} : vector<1x64xf32>, vector<64x128xf32>, vector<1x128xf32> -> vector<1x128xf32>
    %508 = vector.extract_strided_slice %495 {offsets = [0, 0], sizes = [1, 32], strides = [1, 1]} : vector<3x32xf32> to vector<1x32xf32>
    %509 = vector.extract_strided_slice %495 {offsets = [1, 0], sizes = [1, 32], strides = [1, 1]} : vector<3x32xf32> to vector<1x32xf32>
    %510 = tpu.concatenate %508, %509 in 1 : vector<1x32xf32>, vector<1x32xf32> -> vector<1x64xf32>
    %c1_195 = arith.constant 1 : index
    %c0_196 = arith.constant 0 : index
    %c0_197 = arith.constant 0 : index
    %511 = vector.load %arg7[%c1_195, %c0_196, %c0_197] : memref<3x64x128xf32, #tpu.memory_space<vmem>>, vector<1x64x128xf32>
    %512 = vector.shape_cast %511 : vector<1x64x128xf32> to vector<64x128xf32>
    %cst_198 = arith.constant dense<0.000000e+00> : vector<1x128xf32>
    %513 = tpu.matmul %510, %512, %cst_198 {dimension_numbers = #tpu.dot_dimension_numbers<[1], [0], [0], [1], [0, 0, 1, 1], [], []>} : vector<1x64xf32>, vector<64x128xf32>, vector<1x128xf32> -> vector<1x128xf32>
    %514 = vector.extract_strided_slice %495 {offsets = [1, 0], sizes = [1, 32], strides = [1, 1]} : vector<3x32xf32> to vector<1x32xf32>
    %515 = vector.extract_strided_slice %495 {offsets = [2, 0], sizes = [1, 32], strides = [1, 1]} : vector<3x32xf32> to vector<1x32xf32>
    %516 = tpu.concatenate %514, %515 in 1 : vector<1x32xf32>, vector<1x32xf32> -> vector<1x64xf32>
    %c2_199 = arith.constant 2 : index
    %c0_200 = arith.constant 0 : index
    %c0_201 = arith.constant 0 : index
    %517 = vector.load %arg7[%c2_199, %c0_200, %c0_201] : memref<3x64x128xf32, #tpu.memory_space<vmem>>, vector<1x64x128xf32>
    %518 = vector.shape_cast %517 : vector<1x64x128xf32> to vector<64x128xf32>
    %cst_202 = arith.constant dense<0.000000e+00> : vector<1x128xf32>
    %519 = tpu.matmul %516, %518, %cst_202 {dimension_numbers = #tpu.dot_dimension_numbers<[1], [0], [0], [1], [0, 0, 1, 1], [], []>} : vector<1x64xf32>, vector<64x128xf32>, vector<1x128xf32> -> vector<1x128xf32>
    %520 = tpu.concatenate %507, %513, %519 in 0 : vector<1x128xf32>, vector<1x128xf32>, vector<1x128xf32> -> vector<3x128xf32>
    %521 = arith.addf %520, %46 : vector<3x128xf32>
    %522 = vector.extract_strided_slice %521 {offsets = [0, 0], sizes = [3, 96], strides = [1, 1]} : vector<3x128xf32> to vector<3x96xf32>
    %523 = arith.negf %522 : vector<3x96xf32>
    %524 = math.exp %523 : vector<3x96xf32>
    %cst_203 = arith.constant 1.000000e+00 : f32
    %525 = vector.broadcast %cst_203 : f32 to vector<3x96xf32>
    %526 = arith.addf %525, %524 : vector<3x96xf32>
    %527 = arith.divf %525, %526 : vector<3x96xf32>
    %528 = vector.extract_strided_slice %521 {offsets = [0, 96], sizes = [3, 32], strides = [1, 1]} : vector<3x128xf32> to vector<3x32xf32>
    %529 = math.tanh %528 : vector<3x32xf32>
    %530 = vector.extract_strided_slice %527 {offsets = [0, 0], sizes = [3, 32], strides = [1, 1]} : vector<3x96xf32> to vector<3x32xf32>
    %531 = vector.extract_strided_slice %527 {offsets = [0, 32], sizes = [3, 32], strides = [1, 1]} : vector<3x96xf32> to vector<3x32xf32>
    %532 = vector.extract_strided_slice %527 {offsets = [0, 64], sizes = [3, 32], strides = [1, 1]} : vector<3x96xf32> to vector<3x32xf32>
    %533 = arith.mulf %531, %496 : vector<3x32xf32>
    %534 = arith.mulf %530, %529 : vector<3x32xf32>
    %535 = arith.addf %533, %534 : vector<3x32xf32>
    %536 = math.tanh %535 : vector<3x32xf32>
    %537 = arith.mulf %532, %536 : vector<3x32xf32>
    %538 = vector.broadcast %c9_i32 : i32 to vector<3x32xi32>
    %539 = arith.subi %538, %47 : vector<3x32xi32>
    %c0_i32_204 = arith.constant 0 : i32
    %540 = vector.broadcast %c0_i32_204 : i32 to vector<3x32xi32>
    %541 = arith.cmpi sge, %539, %540 : vector<3x32xi32>
    %c16_i32_205 = arith.constant 16 : i32
    %542 = vector.broadcast %c16_i32_205 : i32 to vector<3x32xi32>
    %543 = arith.cmpi slt, %539, %542 : vector<3x32xi32>
    %544 = arith.andi %541, %543 : vector<3x32xi1>
    %545 = arith.select %544, %537, %495 : vector<3x32xi1>, vector<3x32xf32>
    %546 = arith.select %544, %535, %496 : vector<3x32xi1>, vector<3x32xf32>
    %c2_i32_206 = arith.constant 2 : i32
    %547 = arith.cmpi sge, %c9_i32, %c2_i32_206 : i32
    %548 = arith.extui %547 : i1 to i32
    %c0_i32_207 = arith.constant 0 : i32
    %549 = arith.cmpi ne, %548, %c0_i32_207 : i32
    scf.if %549 {
      %957 = vector.extract_strided_slice %545 {offsets = [2, 0], sizes = [1, 32], strides = [1, 1]} : vector<3x32xf32> to vector<1x32xf32>
      %c2_i32_371 = arith.constant 2 : i32
      %958 = arith.subi %c9_i32, %c2_i32_371 : i32
      %959 = arith.index_cast %958 : i32 to index
      %c0_372 = arith.constant 0 : index
      %960 = vector.load %arg13[%959, %c0_372] : memref<16x32xf32, #tpu.memory_space<vmem>>, vector<1x32xf32>
      tpu.vector_store %arg13[%959, %c0_372], %957 {strides = array<i32>} : memref<16x32xf32, #tpu.memory_space<vmem>>, vector<1x32xf32>,
    } else {
    }
    %c10_i32 = arith.constant 10 : i32
    %c15_i32_208 = arith.constant 15 : i32
    %550 = arith.minsi %c10_i32, %c15_i32_208 : i32
    %551 = arith.index_cast %550 : i32 to index
    %c0_209 = arith.constant 0 : index
    %552 = vector.load %arg12[%551, %c0_209] : memref<16x32xf32, #tpu.memory_space<vmem>>, vector<1x32xf32>
    %553 = vector.extract_strided_slice %545 {offsets = [0, 0], sizes = [1, 32], strides = [1, 1]} : vector<3x32xf32> to vector<1x32xf32>
    %554 = tpu.concatenate %552, %553 in 1 : vector<1x32xf32>, vector<1x32xf32> -> vector<1x64xf32>
    %c0_210 = arith.constant 0 : index
    %c0_211 = arith.constant 0 : index
    %c0_212 = arith.constant 0 : index
    %555 = vector.load %arg7[%c0_210, %c0_211, %c0_212] : memref<3x64x128xf32, #tpu.memory_space<vmem>>, vector<1x64x128xf32>
    %556 = vector.shape_cast %555 : vector<1x64x128xf32> to vector<64x128xf32>
    %cst_213 = arith.constant dense<0.000000e+00> : vector<1x128xf32>
    %557 = tpu.matmul %554, %556, %cst_213 {dimension_numbers = #tpu.dot_dimension_numbers<[1], [0], [0], [1], [0, 0, 1, 1], [], []>} : vector<1x64xf32>, vector<64x128xf32>, vector<1x128xf32> -> vector<1x128xf32>
    %558 = vector.extract_strided_slice %545 {offsets = [0, 0], sizes = [1, 32], strides = [1, 1]} : vector<3x32xf32> to vector<1x32xf32>
    %559 = vector.extract_strided_slice %545 {offsets = [1, 0], sizes = [1, 32], strides = [1, 1]} : vector<3x32xf32> to vector<1x32xf32>
    %560 = tpu.concatenate %558, %559 in 1 : vector<1x32xf32>, vector<1x32xf32> -> vector<1x64xf32>
    %c1_214 = arith.constant 1 : index
    %c0_215 = arith.constant 0 : index
    %c0_216 = arith.constant 0 : index
    %561 = vector.load %arg7[%c1_214, %c0_215, %c0_216] : memref<3x64x128xf32, #tpu.memory_space<vmem>>, vector<1x64x128xf32>
    %562 = vector.shape_cast %561 : vector<1x64x128xf32> to vector<64x128xf32>
    %cst_217 = arith.constant dense<0.000000e+00> : vector<1x128xf32>
    %563 = tpu.matmul %560, %562, %cst_217 {dimension_numbers = #tpu.dot_dimension_numbers<[1], [0], [0], [1], [0, 0, 1, 1], [], []>} : vector<1x64xf32>, vector<64x128xf32>, vector<1x128xf32> -> vector<1x128xf32>
    %564 = vector.extract_strided_slice %545 {offsets = [1, 0], sizes = [1, 32], strides = [1, 1]} : vector<3x32xf32> to vector<1x32xf32>
    %565 = vector.extract_strided_slice %545 {offsets = [2, 0], sizes = [1, 32], strides = [1, 1]} : vector<3x32xf32> to vector<1x32xf32>
    %566 = tpu.concatenate %564, %565 in 1 : vector<1x32xf32>, vector<1x32xf32> -> vector<1x64xf32>
    %c2_218 = arith.constant 2 : index
    %c0_219 = arith.constant 0 : index
    %c0_220 = arith.constant 0 : index
    %567 = vector.load %arg7[%c2_218, %c0_219, %c0_220] : memref<3x64x128xf32, #tpu.memory_space<vmem>>, vector<1x64x128xf32>
    %568 = vector.shape_cast %567 : vector<1x64x128xf32> to vector<64x128xf32>
    %cst_221 = arith.constant dense<0.000000e+00> : vector<1x128xf32>
    %569 = tpu.matmul %566, %568, %cst_221 {dimension_numbers = #tpu.dot_dimension_numbers<[1], [0], [0], [1], [0, 0, 1, 1], [], []>} : vector<1x64xf32>, vector<64x128xf32>, vector<1x128xf32> -> vector<1x128xf32>
    %570 = tpu.concatenate %557, %563, %569 in 0 : vector<1x128xf32>, vector<1x128xf32>, vector<1x128xf32> -> vector<3x128xf32>
    %571 = arith.addf %570, %46 : vector<3x128xf32>
    %572 = vector.extract_strided_slice %571 {offsets = [0, 0], sizes = [3, 96], strides = [1, 1]} : vector<3x128xf32> to vector<3x96xf32>
    %573 = arith.negf %572 : vector<3x96xf32>
    %574 = math.exp %573 : vector<3x96xf32>
    %cst_222 = arith.constant 1.000000e+00 : f32
    %575 = vector.broadcast %cst_222 : f32 to vector<3x96xf32>
    %576 = arith.addf %575, %574 : vector<3x96xf32>
    %577 = arith.divf %575, %576 : vector<3x96xf32>
    %578 = vector.extract_strided_slice %571 {offsets = [0, 96], sizes = [3, 32], strides = [1, 1]} : vector<3x128xf32> to vector<3x32xf32>
    %579 = math.tanh %578 : vector<3x32xf32>
    %580 = vector.extract_strided_slice %577 {offsets = [0, 0], sizes = [3, 32], strides = [1, 1]} : vector<3x96xf32> to vector<3x32xf32>
    %581 = vector.extract_strided_slice %577 {offsets = [0, 32], sizes = [3, 32], strides = [1, 1]} : vector<3x96xf32> to vector<3x32xf32>
    %582 = vector.extract_strided_slice %577 {offsets = [0, 64], sizes = [3, 32], strides = [1, 1]} : vector<3x96xf32> to vector<3x32xf32>
    %583 = arith.mulf %581, %546 : vector<3x32xf32>
    %584 = arith.mulf %580, %579 : vector<3x32xf32>
    %585 = arith.addf %583, %584 : vector<3x32xf32>
    %586 = math.tanh %585 : vector<3x32xf32>
    %587 = arith.mulf %582, %586 : vector<3x32xf32>
    %588 = vector.broadcast %c10_i32 : i32 to vector<3x32xi32>
    %589 = arith.subi %588, %47 : vector<3x32xi32>
    %c0_i32_223 = arith.constant 0 : i32
    %590 = vector.broadcast %c0_i32_223 : i32 to vector<3x32xi32>
    %591 = arith.cmpi sge, %589, %590 : vector<3x32xi32>
    %c16_i32_224 = arith.constant 16 : i32
    %592 = vector.broadcast %c16_i32_224 : i32 to vector<3x32xi32>
    %593 = arith.cmpi slt, %589, %592 : vector<3x32xi32>
    %594 = arith.andi %591, %593 : vector<3x32xi1>
    %595 = arith.select %594, %587, %545 : vector<3x32xi1>, vector<3x32xf32>
    %596 = arith.select %594, %585, %546 : vector<3x32xi1>, vector<3x32xf32>
    %c2_i32_225 = arith.constant 2 : i32
    %597 = arith.cmpi sge, %c10_i32, %c2_i32_225 : i32
    %598 = arith.extui %597 : i1 to i32
    %c0_i32_226 = arith.constant 0 : i32
    %599 = arith.cmpi ne, %598, %c0_i32_226 : i32
    scf.if %599 {
      %957 = vector.extract_strided_slice %595 {offsets = [2, 0], sizes = [1, 32], strides = [1, 1]} : vector<3x32xf32> to vector<1x32xf32>
      %c2_i32_371 = arith.constant 2 : i32
      %958 = arith.subi %c10_i32, %c2_i32_371 : i32
      %959 = arith.index_cast %958 : i32 to index
      %c0_372 = arith.constant 0 : index
      %960 = vector.load %arg13[%959, %c0_372] : memref<16x32xf32, #tpu.memory_space<vmem>>, vector<1x32xf32>
      tpu.vector_store %arg13[%959, %c0_372], %957 {strides = array<i32>} : memref<16x32xf32, #tpu.memory_space<vmem>>, vector<1x32xf32>,
    } else {
    }
    %c11_i32 = arith.constant 11 : i32
    %c15_i32_227 = arith.constant 15 : i32
    %600 = arith.minsi %c11_i32, %c15_i32_227 : i32
    %601 = arith.index_cast %600 : i32 to index
    %c0_228 = arith.constant 0 : index
    %602 = vector.load %arg12[%601, %c0_228] : memref<16x32xf32, #tpu.memory_space<vmem>>, vector<1x32xf32>
    %603 = vector.extract_strided_slice %595 {offsets = [0, 0], sizes = [1, 32], strides = [1, 1]} : vector<3x32xf32> to vector<1x32xf32>
    %604 = tpu.concatenate %602, %603 in 1 : vector<1x32xf32>, vector<1x32xf32> -> vector<1x64xf32>
    %c0_229 = arith.constant 0 : index
    %c0_230 = arith.constant 0 : index
    %c0_231 = arith.constant 0 : index
    %605 = vector.load %arg7[%c0_229, %c0_230, %c0_231] : memref<3x64x128xf32, #tpu.memory_space<vmem>>, vector<1x64x128xf32>
    %606 = vector.shape_cast %605 : vector<1x64x128xf32> to vector<64x128xf32>
    %cst_232 = arith.constant dense<0.000000e+00> : vector<1x128xf32>
    %607 = tpu.matmul %604, %606, %cst_232 {dimension_numbers = #tpu.dot_dimension_numbers<[1], [0], [0], [1], [0, 0, 1, 1], [], []>} : vector<1x64xf32>, vector<64x128xf32>, vector<1x128xf32> -> vector<1x128xf32>
    %608 = vector.extract_strided_slice %595 {offsets = [0, 0], sizes = [1, 32], strides = [1, 1]} : vector<3x32xf32> to vector<1x32xf32>
    %609 = vector.extract_strided_slice %595 {offsets = [1, 0], sizes = [1, 32], strides = [1, 1]} : vector<3x32xf32> to vector<1x32xf32>
    %610 = tpu.concatenate %608, %609 in 1 : vector<1x32xf32>, vector<1x32xf32> -> vector<1x64xf32>
    %c1_233 = arith.constant 1 : index
    %c0_234 = arith.constant 0 : index
    %c0_235 = arith.constant 0 : index
    %611 = vector.load %arg7[%c1_233, %c0_234, %c0_235] : memref<3x64x128xf32, #tpu.memory_space<vmem>>, vector<1x64x128xf32>
    %612 = vector.shape_cast %611 : vector<1x64x128xf32> to vector<64x128xf32>
    %cst_236 = arith.constant dense<0.000000e+00> : vector<1x128xf32>
    %613 = tpu.matmul %610, %612, %cst_236 {dimension_numbers = #tpu.dot_dimension_numbers<[1], [0], [0], [1], [0, 0, 1, 1], [], []>} : vector<1x64xf32>, vector<64x128xf32>, vector<1x128xf32> -> vector<1x128xf32>
    %614 = vector.extract_strided_slice %595 {offsets = [1, 0], sizes = [1, 32], strides = [1, 1]} : vector<3x32xf32> to vector<1x32xf32>
    %615 = vector.extract_strided_slice %595 {offsets = [2, 0], sizes = [1, 32], strides = [1, 1]} : vector<3x32xf32> to vector<1x32xf32>
    %616 = tpu.concatenate %614, %615 in 1 : vector<1x32xf32>, vector<1x32xf32> -> vector<1x64xf32>
    %c2_237 = arith.constant 2 : index
    %c0_238 = arith.constant 0 : index
    %c0_239 = arith.constant 0 : index
    %617 = vector.load %arg7[%c2_237, %c0_238, %c0_239] : memref<3x64x128xf32, #tpu.memory_space<vmem>>, vector<1x64x128xf32>
    %618 = vector.shape_cast %617 : vector<1x64x128xf32> to vector<64x128xf32>
    %cst_240 = arith.constant dense<0.000000e+00> : vector<1x128xf32>
    %619 = tpu.matmul %616, %618, %cst_240 {dimension_numbers = #tpu.dot_dimension_numbers<[1], [0], [0], [1], [0, 0, 1, 1], [], []>} : vector<1x64xf32>, vector<64x128xf32>, vector<1x128xf32> -> vector<1x128xf32>
    %620 = tpu.concatenate %607, %613, %619 in 0 : vector<1x128xf32>, vector<1x128xf32>, vector<1x128xf32> -> vector<3x128xf32>
    %621 = arith.addf %620, %46 : vector<3x128xf32>
    %622 = vector.extract_strided_slice %621 {offsets = [0, 0], sizes = [3, 96], strides = [1, 1]} : vector<3x128xf32> to vector<3x96xf32>
    %623 = arith.negf %622 : vector<3x96xf32>
    %624 = math.exp %623 : vector<3x96xf32>
    %cst_241 = arith.constant 1.000000e+00 : f32
    %625 = vector.broadcast %cst_241 : f32 to vector<3x96xf32>
    %626 = arith.addf %625, %624 : vector<3x96xf32>
    %627 = arith.divf %625, %626 : vector<3x96xf32>
    %628 = vector.extract_strided_slice %621 {offsets = [0, 96], sizes = [3, 32], strides = [1, 1]} : vector<3x128xf32> to vector<3x32xf32>
    %629 = math.tanh %628 : vector<3x32xf32>
    %630 = vector.extract_strided_slice %627 {offsets = [0, 0], sizes = [3, 32], strides = [1, 1]} : vector<3x96xf32> to vector<3x32xf32>
    %631 = vector.extract_strided_slice %627 {offsets = [0, 32], sizes = [3, 32], strides = [1, 1]} : vector<3x96xf32> to vector<3x32xf32>
    %632 = vector.extract_strided_slice %627 {offsets = [0, 64], sizes = [3, 32], strides = [1, 1]} : vector<3x96xf32> to vector<3x32xf32>
    %633 = arith.mulf %631, %596 : vector<3x32xf32>
    %634 = arith.mulf %630, %629 : vector<3x32xf32>
    %635 = arith.addf %633, %634 : vector<3x32xf32>
    %636 = math.tanh %635 : vector<3x32xf32>
    %637 = arith.mulf %632, %636 : vector<3x32xf32>
    %638 = vector.broadcast %c11_i32 : i32 to vector<3x32xi32>
    %639 = arith.subi %638, %47 : vector<3x32xi32>
    %c0_i32_242 = arith.constant 0 : i32
    %640 = vector.broadcast %c0_i32_242 : i32 to vector<3x32xi32>
    %641 = arith.cmpi sge, %639, %640 : vector<3x32xi32>
    %c16_i32_243 = arith.constant 16 : i32
    %642 = vector.broadcast %c16_i32_243 : i32 to vector<3x32xi32>
    %643 = arith.cmpi slt, %639, %642 : vector<3x32xi32>
    %644 = arith.andi %641, %643 : vector<3x32xi1>
    %645 = arith.select %644, %637, %595 : vector<3x32xi1>, vector<3x32xf32>
    %646 = arith.select %644, %635, %596 : vector<3x32xi1>, vector<3x32xf32>
    %c2_i32_244 = arith.constant 2 : i32
    %647 = arith.cmpi sge, %c11_i32, %c2_i32_244 : i32
    %648 = arith.extui %647 : i1 to i32
    %c0_i32_245 = arith.constant 0 : i32
    %649 = arith.cmpi ne, %648, %c0_i32_245 : i32
    scf.if %649 {
      %957 = vector.extract_strided_slice %645 {offsets = [2, 0], sizes = [1, 32], strides = [1, 1]} : vector<3x32xf32> to vector<1x32xf32>
      %c2_i32_371 = arith.constant 2 : i32
      %958 = arith.subi %c11_i32, %c2_i32_371 : i32
      %959 = arith.index_cast %958 : i32 to index
      %c0_372 = arith.constant 0 : index
      %960 = vector.load %arg13[%959, %c0_372] : memref<16x32xf32, #tpu.memory_space<vmem>>, vector<1x32xf32>
      tpu.vector_store %arg13[%959, %c0_372], %957 {strides = array<i32>} : memref<16x32xf32, #tpu.memory_space<vmem>>, vector<1x32xf32>,
    } else {
    }
    %c12_i32 = arith.constant 12 : i32
    %c15_i32_246 = arith.constant 15 : i32
    %650 = arith.minsi %c12_i32, %c15_i32_246 : i32
    %651 = arith.index_cast %650 : i32 to index
    %c0_247 = arith.constant 0 : index
    %652 = vector.load %arg12[%651, %c0_247] : memref<16x32xf32, #tpu.memory_space<vmem>>, vector<1x32xf32>
    %653 = vector.extract_strided_slice %645 {offsets = [0, 0], sizes = [1, 32], strides = [1, 1]} : vector<3x32xf32> to vector<1x32xf32>
    %654 = tpu.concatenate %652, %653 in 1 : vector<1x32xf32>, vector<1x32xf32> -> vector<1x64xf32>
    %c0_248 = arith.constant 0 : index
    %c0_249 = arith.constant 0 : index
    %c0_250 = arith.constant 0 : index
    %655 = vector.load %arg7[%c0_248, %c0_249, %c0_250] : memref<3x64x128xf32, #tpu.memory_space<vmem>>, vector<1x64x128xf32>
    %656 = vector.shape_cast %655 : vector<1x64x128xf32> to vector<64x128xf32>
    %cst_251 = arith.constant dense<0.000000e+00> : vector<1x128xf32>
    %657 = tpu.matmul %654, %656, %cst_251 {dimension_numbers = #tpu.dot_dimension_numbers<[1], [0], [0], [1], [0, 0, 1, 1], [], []>} : vector<1x64xf32>, vector<64x128xf32>, vector<1x128xf32> -> vector<1x128xf32>
    %658 = vector.extract_strided_slice %645 {offsets = [0, 0], sizes = [1, 32], strides = [1, 1]} : vector<3x32xf32> to vector<1x32xf32>
    %659 = vector.extract_strided_slice %645 {offsets = [1, 0], sizes = [1, 32], strides = [1, 1]} : vector<3x32xf32> to vector<1x32xf32>
    %660 = tpu.concatenate %658, %659 in 1 : vector<1x32xf32>, vector<1x32xf32> -> vector<1x64xf32>
    %c1_252 = arith.constant 1 : index
    %c0_253 = arith.constant 0 : index
    %c0_254 = arith.constant 0 : index
    %661 = vector.load %arg7[%c1_252, %c0_253, %c0_254] : memref<3x64x128xf32, #tpu.memory_space<vmem>>, vector<1x64x128xf32>
    %662 = vector.shape_cast %661 : vector<1x64x128xf32> to vector<64x128xf32>
    %cst_255 = arith.constant dense<0.000000e+00> : vector<1x128xf32>
    %663 = tpu.matmul %660, %662, %cst_255 {dimension_numbers = #tpu.dot_dimension_numbers<[1], [0], [0], [1], [0, 0, 1, 1], [], []>} : vector<1x64xf32>, vector<64x128xf32>, vector<1x128xf32> -> vector<1x128xf32>
    %664 = vector.extract_strided_slice %645 {offsets = [1, 0], sizes = [1, 32], strides = [1, 1]} : vector<3x32xf32> to vector<1x32xf32>
    %665 = vector.extract_strided_slice %645 {offsets = [2, 0], sizes = [1, 32], strides = [1, 1]} : vector<3x32xf32> to vector<1x32xf32>
    %666 = tpu.concatenate %664, %665 in 1 : vector<1x32xf32>, vector<1x32xf32> -> vector<1x64xf32>
    %c2_256 = arith.constant 2 : index
    %c0_257 = arith.constant 0 : index
    %c0_258 = arith.constant 0 : index
    %667 = vector.load %arg7[%c2_256, %c0_257, %c0_258] : memref<3x64x128xf32, #tpu.memory_space<vmem>>, vector<1x64x128xf32>
    %668 = vector.shape_cast %667 : vector<1x64x128xf32> to vector<64x128xf32>
    %cst_259 = arith.constant dense<0.000000e+00> : vector<1x128xf32>
    %669 = tpu.matmul %666, %668, %cst_259 {dimension_numbers = #tpu.dot_dimension_numbers<[1], [0], [0], [1], [0, 0, 1, 1], [], []>} : vector<1x64xf32>, vector<64x128xf32>, vector<1x128xf32> -> vector<1x128xf32>
    %670 = tpu.concatenate %657, %663, %669 in 0 : vector<1x128xf32>, vector<1x128xf32>, vector<1x128xf32> -> vector<3x128xf32>
    %671 = arith.addf %670, %46 : vector<3x128xf32>
    %672 = vector.extract_strided_slice %671 {offsets = [0, 0], sizes = [3, 96], strides = [1, 1]} : vector<3x128xf32> to vector<3x96xf32>
    %673 = arith.negf %672 : vector<3x96xf32>
    %674 = math.exp %673 : vector<3x96xf32>
    %cst_260 = arith.constant 1.000000e+00 : f32
    %675 = vector.broadcast %cst_260 : f32 to vector<3x96xf32>
    %676 = arith.addf %675, %674 : vector<3x96xf32>
    %677 = arith.divf %675, %676 : vector<3x96xf32>
    %678 = vector.extract_strided_slice %671 {offsets = [0, 96], sizes = [3, 32], strides = [1, 1]} : vector<3x128xf32> to vector<3x32xf32>
    %679 = math.tanh %678 : vector<3x32xf32>
    %680 = vector.extract_strided_slice %677 {offsets = [0, 0], sizes = [3, 32], strides = [1, 1]} : vector<3x96xf32> to vector<3x32xf32>
    %681 = vector.extract_strided_slice %677 {offsets = [0, 32], sizes = [3, 32], strides = [1, 1]} : vector<3x96xf32> to vector<3x32xf32>
    %682 = vector.extract_strided_slice %677 {offsets = [0, 64], sizes = [3, 32], strides = [1, 1]} : vector<3x96xf32> to vector<3x32xf32>
    %683 = arith.mulf %681, %646 : vector<3x32xf32>
    %684 = arith.mulf %680, %679 : vector<3x32xf32>
    %685 = arith.addf %683, %684 : vector<3x32xf32>
    %686 = math.tanh %685 : vector<3x32xf32>
    %687 = arith.mulf %682, %686 : vector<3x32xf32>
    %688 = vector.broadcast %c12_i32 : i32 to vector<3x32xi32>
    %689 = arith.subi %688, %47 : vector<3x32xi32>
    %c0_i32_261 = arith.constant 0 : i32
    %690 = vector.broadcast %c0_i32_261 : i32 to vector<3x32xi32>
    %691 = arith.cmpi sge, %689, %690 : vector<3x32xi32>
    %c16_i32_262 = arith.constant 16 : i32
    %692 = vector.broadcast %c16_i32_262 : i32 to vector<3x32xi32>
    %693 = arith.cmpi slt, %689, %692 : vector<3x32xi32>
    %694 = arith.andi %691, %693 : vector<3x32xi1>
    %695 = arith.select %694, %687, %645 : vector<3x32xi1>, vector<3x32xf32>
    %696 = arith.select %694, %685, %646 : vector<3x32xi1>, vector<3x32xf32>
    %c2_i32_263 = arith.constant 2 : i32
    %697 = arith.cmpi sge, %c12_i32, %c2_i32_263 : i32
    %698 = arith.extui %697 : i1 to i32
    %c0_i32_264 = arith.constant 0 : i32
    %699 = arith.cmpi ne, %698, %c0_i32_264 : i32
    scf.if %699 {
      %957 = vector.extract_strided_slice %695 {offsets = [2, 0], sizes = [1, 32], strides = [1, 1]} : vector<3x32xf32> to vector<1x32xf32>
      %c2_i32_371 = arith.constant 2 : i32
      %958 = arith.subi %c12_i32, %c2_i32_371 : i32
      %959 = arith.index_cast %958 : i32 to index
      %c0_372 = arith.constant 0 : index
      %960 = vector.load %arg13[%959, %c0_372] : memref<16x32xf32, #tpu.memory_space<vmem>>, vector<1x32xf32>
      tpu.vector_store %arg13[%959, %c0_372], %957 {strides = array<i32>} : memref<16x32xf32, #tpu.memory_space<vmem>>, vector<1x32xf32>,
    } else {
    }
    %c13_i32 = arith.constant 13 : i32
    %c15_i32_265 = arith.constant 15 : i32
    %700 = arith.minsi %c13_i32, %c15_i32_265 : i32
    %701 = arith.index_cast %700 : i32 to index
    %c0_266 = arith.constant 0 : index
    %702 = vector.load %arg12[%701, %c0_266] : memref<16x32xf32, #tpu.memory_space<vmem>>, vector<1x32xf32>
    %703 = vector.extract_strided_slice %695 {offsets = [0, 0], sizes = [1, 32], strides = [1, 1]} : vector<3x32xf32> to vector<1x32xf32>
    %704 = tpu.concatenate %702, %703 in 1 : vector<1x32xf32>, vector<1x32xf32> -> vector<1x64xf32>
    %c0_267 = arith.constant 0 : index
    %c0_268 = arith.constant 0 : index
    %c0_269 = arith.constant 0 : index
    %705 = vector.load %arg7[%c0_267, %c0_268, %c0_269] : memref<3x64x128xf32, #tpu.memory_space<vmem>>, vector<1x64x128xf32>
    %706 = vector.shape_cast %705 : vector<1x64x128xf32> to vector<64x128xf32>
    %cst_270 = arith.constant dense<0.000000e+00> : vector<1x128xf32>
    %707 = tpu.matmul %704, %706, %cst_270 {dimension_numbers = #tpu.dot_dimension_numbers<[1], [0], [0], [1], [0, 0, 1, 1], [], []>} : vector<1x64xf32>, vector<64x128xf32>, vector<1x128xf32> -> vector<1x128xf32>
    %708 = vector.extract_strided_slice %695 {offsets = [0, 0], sizes = [1, 32], strides = [1, 1]} : vector<3x32xf32> to vector<1x32xf32>
    %709 = vector.extract_strided_slice %695 {offsets = [1, 0], sizes = [1, 32], strides = [1, 1]} : vector<3x32xf32> to vector<1x32xf32>
    %710 = tpu.concatenate %708, %709 in 1 : vector<1x32xf32>, vector<1x32xf32> -> vector<1x64xf32>
    %c1_271 = arith.constant 1 : index
    %c0_272 = arith.constant 0 : index
    %c0_273 = arith.constant 0 : index
    %711 = vector.load %arg7[%c1_271, %c0_272, %c0_273] : memref<3x64x128xf32, #tpu.memory_space<vmem>>, vector<1x64x128xf32>
    %712 = vector.shape_cast %711 : vector<1x64x128xf32> to vector<64x128xf32>
    %cst_274 = arith.constant dense<0.000000e+00> : vector<1x128xf32>
    %713 = tpu.matmul %710, %712, %cst_274 {dimension_numbers = #tpu.dot_dimension_numbers<[1], [0], [0], [1], [0, 0, 1, 1], [], []>} : vector<1x64xf32>, vector<64x128xf32>, vector<1x128xf32> -> vector<1x128xf32>
    %714 = vector.extract_strided_slice %695 {offsets = [1, 0], sizes = [1, 32], strides = [1, 1]} : vector<3x32xf32> to vector<1x32xf32>
    %715 = vector.extract_strided_slice %695 {offsets = [2, 0], sizes = [1, 32], strides = [1, 1]} : vector<3x32xf32> to vector<1x32xf32>
    %716 = tpu.concatenate %714, %715 in 1 : vector<1x32xf32>, vector<1x32xf32> -> vector<1x64xf32>
    %c2_275 = arith.constant 2 : index
    %c0_276 = arith.constant 0 : index
    %c0_277 = arith.constant 0 : index
    %717 = vector.load %arg7[%c2_275, %c0_276, %c0_277] : memref<3x64x128xf32, #tpu.memory_space<vmem>>, vector<1x64x128xf32>
    %718 = vector.shape_cast %717 : vector<1x64x128xf32> to vector<64x128xf32>
    %cst_278 = arith.constant dense<0.000000e+00> : vector<1x128xf32>
    %719 = tpu.matmul %716, %718, %cst_278 {dimension_numbers = #tpu.dot_dimension_numbers<[1], [0], [0], [1], [0, 0, 1, 1], [], []>} : vector<1x64xf32>, vector<64x128xf32>, vector<1x128xf32> -> vector<1x128xf32>
    %720 = tpu.concatenate %707, %713, %719 in 0 : vector<1x128xf32>, vector<1x128xf32>, vector<1x128xf32> -> vector<3x128xf32>
    %721 = arith.addf %720, %46 : vector<3x128xf32>
    %722 = vector.extract_strided_slice %721 {offsets = [0, 0], sizes = [3, 96], strides = [1, 1]} : vector<3x128xf32> to vector<3x96xf32>
    %723 = arith.negf %722 : vector<3x96xf32>
    %724 = math.exp %723 : vector<3x96xf32>
    %cst_279 = arith.constant 1.000000e+00 : f32
    %725 = vector.broadcast %cst_279 : f32 to vector<3x96xf32>
    %726 = arith.addf %725, %724 : vector<3x96xf32>
    %727 = arith.divf %725, %726 : vector<3x96xf32>
    %728 = vector.extract_strided_slice %721 {offsets = [0, 96], sizes = [3, 32], strides = [1, 1]} : vector<3x128xf32> to vector<3x32xf32>
    %729 = math.tanh %728 : vector<3x32xf32>
    %730 = vector.extract_strided_slice %727 {offsets = [0, 0], sizes = [3, 32], strides = [1, 1]} : vector<3x96xf32> to vector<3x32xf32>
    %731 = vector.extract_strided_slice %727 {offsets = [0, 32], sizes = [3, 32], strides = [1, 1]} : vector<3x96xf32> to vector<3x32xf32>
    %732 = vector.extract_strided_slice %727 {offsets = [0, 64], sizes = [3, 32], strides = [1, 1]} : vector<3x96xf32> to vector<3x32xf32>
    %733 = arith.mulf %731, %696 : vector<3x32xf32>
    %734 = arith.mulf %730, %729 : vector<3x32xf32>
    %735 = arith.addf %733, %734 : vector<3x32xf32>
    %736 = math.tanh %735 : vector<3x32xf32>
    %737 = arith.mulf %732, %736 : vector<3x32xf32>
    %738 = vector.broadcast %c13_i32 : i32 to vector<3x32xi32>
    %739 = arith.subi %738, %47 : vector<3x32xi32>
    %c0_i32_280 = arith.constant 0 : i32
    %740 = vector.broadcast %c0_i32_280 : i32 to vector<3x32xi32>
    %741 = arith.cmpi sge, %739, %740 : vector<3x32xi32>
    %c16_i32_281 = arith.constant 16 : i32
    %742 = vector.broadcast %c16_i32_281 : i32 to vector<3x32xi32>
    %743 = arith.cmpi slt, %739, %742 : vector<3x32xi32>
    %744 = arith.andi %741, %743 : vector<3x32xi1>
    %745 = arith.select %744, %737, %695 : vector<3x32xi1>, vector<3x32xf32>
    %746 = arith.select %744, %735, %696 : vector<3x32xi1>, vector<3x32xf32>
    %c2_i32_282 = arith.constant 2 : i32
    %747 = arith.cmpi sge, %c13_i32, %c2_i32_282 : i32
    %748 = arith.extui %747 : i1 to i32
    %c0_i32_283 = arith.constant 0 : i32
    %749 = arith.cmpi ne, %748, %c0_i32_283 : i32
    scf.if %749 {
      %957 = vector.extract_strided_slice %745 {offsets = [2, 0], sizes = [1, 32], strides = [1, 1]} : vector<3x32xf32> to vector<1x32xf32>
      %c2_i32_371 = arith.constant 2 : i32
      %958 = arith.subi %c13_i32, %c2_i32_371 : i32
      %959 = arith.index_cast %958 : i32 to index
      %c0_372 = arith.constant 0 : index
      %960 = vector.load %arg13[%959, %c0_372] : memref<16x32xf32, #tpu.memory_space<vmem>>, vector<1x32xf32>
      tpu.vector_store %arg13[%959, %c0_372], %957 {strides = array<i32>} : memref<16x32xf32, #tpu.memory_space<vmem>>, vector<1x32xf32>,
    } else {
    }
    %c14_i32 = arith.constant 14 : i32
    %c15_i32_284 = arith.constant 15 : i32
    %750 = arith.minsi %c14_i32, %c15_i32_284 : i32
    %751 = arith.index_cast %750 : i32 to index
    %c0_285 = arith.constant 0 : index
    %752 = vector.load %arg12[%751, %c0_285] : memref<16x32xf32, #tpu.memory_space<vmem>>, vector<1x32xf32>
    %753 = vector.extract_strided_slice %745 {offsets = [0, 0], sizes = [1, 32], strides = [1, 1]} : vector<3x32xf32> to vector<1x32xf32>
    %754 = tpu.concatenate %752, %753 in 1 : vector<1x32xf32>, vector<1x32xf32> -> vector<1x64xf32>
    %c0_286 = arith.constant 0 : index
    %c0_287 = arith.constant 0 : index
    %c0_288 = arith.constant 0 : index
    %755 = vector.load %arg7[%c0_286, %c0_287, %c0_288] : memref<3x64x128xf32, #tpu.memory_space<vmem>>, vector<1x64x128xf32>
    %756 = vector.shape_cast %755 : vector<1x64x128xf32> to vector<64x128xf32>
    %cst_289 = arith.constant dense<0.000000e+00> : vector<1x128xf32>
    %757 = tpu.matmul %754, %756, %cst_289 {dimension_numbers = #tpu.dot_dimension_numbers<[1], [0], [0], [1], [0, 0, 1, 1], [], []>} : vector<1x64xf32>, vector<64x128xf32>, vector<1x128xf32> -> vector<1x128xf32>
    %758 = vector.extract_strided_slice %745 {offsets = [0, 0], sizes = [1, 32], strides = [1, 1]} : vector<3x32xf32> to vector<1x32xf32>
    %759 = vector.extract_strided_slice %745 {offsets = [1, 0], sizes = [1, 32], strides = [1, 1]} : vector<3x32xf32> to vector<1x32xf32>
    %760 = tpu.concatenate %758, %759 in 1 : vector<1x32xf32>, vector<1x32xf32> -> vector<1x64xf32>
    %c1_290 = arith.constant 1 : index
    %c0_291 = arith.constant 0 : index
    %c0_292 = arith.constant 0 : index
    %761 = vector.load %arg7[%c1_290, %c0_291, %c0_292] : memref<3x64x128xf32, #tpu.memory_space<vmem>>, vector<1x64x128xf32>
    %762 = vector.shape_cast %761 : vector<1x64x128xf32> to vector<64x128xf32>
    %cst_293 = arith.constant dense<0.000000e+00> : vector<1x128xf32>
    %763 = tpu.matmul %760, %762, %cst_293 {dimension_numbers = #tpu.dot_dimension_numbers<[1], [0], [0], [1], [0, 0, 1, 1], [], []>} : vector<1x64xf32>, vector<64x128xf32>, vector<1x128xf32> -> vector<1x128xf32>
    %764 = vector.extract_strided_slice %745 {offsets = [1, 0], sizes = [1, 32], strides = [1, 1]} : vector<3x32xf32> to vector<1x32xf32>
    %765 = vector.extract_strided_slice %745 {offsets = [2, 0], sizes = [1, 32], strides = [1, 1]} : vector<3x32xf32> to vector<1x32xf32>
    %766 = tpu.concatenate %764, %765 in 1 : vector<1x32xf32>, vector<1x32xf32> -> vector<1x64xf32>
    %c2_294 = arith.constant 2 : index
    %c0_295 = arith.constant 0 : index
    %c0_296 = arith.constant 0 : index
    %767 = vector.load %arg7[%c2_294, %c0_295, %c0_296] : memref<3x64x128xf32, #tpu.memory_space<vmem>>, vector<1x64x128xf32>
    %768 = vector.shape_cast %767 : vector<1x64x128xf32> to vector<64x128xf32>
    %cst_297 = arith.constant dense<0.000000e+00> : vector<1x128xf32>
    %769 = tpu.matmul %766, %768, %cst_297 {dimension_numbers = #tpu.dot_dimension_numbers<[1], [0], [0], [1], [0, 0, 1, 1], [], []>} : vector<1x64xf32>, vector<64x128xf32>, vector<1x128xf32> -> vector<1x128xf32>
    %770 = tpu.concatenate %757, %763, %769 in 0 : vector<1x128xf32>, vector<1x128xf32>, vector<1x128xf32> -> vector<3x128xf32>
    %771 = arith.addf %770, %46 : vector<3x128xf32>
    %772 = vector.extract_strided_slice %771 {offsets = [0, 0], sizes = [3, 96], strides = [1, 1]} : vector<3x128xf32> to vector<3x96xf32>
    %773 = arith.negf %772 : vector<3x96xf32>
    %774 = math.exp %773 : vector<3x96xf32>
    %cst_298 = arith.constant 1.000000e+00 : f32
    %775 = vector.broadcast %cst_298 : f32 to vector<3x96xf32>
    %776 = arith.addf %775, %774 : vector<3x96xf32>
    %777 = arith.divf %775, %776 : vector<3x96xf32>
    %778 = vector.extract_strided_slice %771 {offsets = [0, 96], sizes = [3, 32], strides = [1, 1]} : vector<3x128xf32> to vector<3x32xf32>
    %779 = math.tanh %778 : vector<3x32xf32>
    %780 = vector.extract_strided_slice %777 {offsets = [0, 0], sizes = [3, 32], strides = [1, 1]} : vector<3x96xf32> to vector<3x32xf32>
    %781 = vector.extract_strided_slice %777 {offsets = [0, 32], sizes = [3, 32], strides = [1, 1]} : vector<3x96xf32> to vector<3x32xf32>
    %782 = vector.extract_strided_slice %777 {offsets = [0, 64], sizes = [3, 32], strides = [1, 1]} : vector<3x96xf32> to vector<3x32xf32>
    %783 = arith.mulf %781, %746 : vector<3x32xf32>
    %784 = arith.mulf %780, %779 : vector<3x32xf32>
    %785 = arith.addf %783, %784 : vector<3x32xf32>
    %786 = math.tanh %785 : vector<3x32xf32>
    %787 = arith.mulf %782, %786 : vector<3x32xf32>
    %788 = vector.broadcast %c14_i32 : i32 to vector<3x32xi32>
    %789 = arith.subi %788, %47 : vector<3x32xi32>
    %c0_i32_299 = arith.constant 0 : i32
    %790 = vector.broadcast %c0_i32_299 : i32 to vector<3x32xi32>
    %791 = arith.cmpi sge, %789, %790 : vector<3x32xi32>
    %c16_i32_300 = arith.constant 16 : i32
    %792 = vector.broadcast %c16_i32_300 : i32 to vector<3x32xi32>
    %793 = arith.cmpi slt, %789, %792 : vector<3x32xi32>
    %794 = arith.andi %791, %793 : vector<3x32xi1>
    %795 = arith.select %794, %787, %745 : vector<3x32xi1>, vector<3x32xf32>
    %796 = arith.select %794, %785, %746 : vector<3x32xi1>, vector<3x32xf32>
    %c2_i32_301 = arith.constant 2 : i32
    %797 = arith.cmpi sge, %c14_i32, %c2_i32_301 : i32
    %798 = arith.extui %797 : i1 to i32
    %c0_i32_302 = arith.constant 0 : i32
    %799 = arith.cmpi ne, %798, %c0_i32_302 : i32
    scf.if %799 {
      %957 = vector.extract_strided_slice %795 {offsets = [2, 0], sizes = [1, 32], strides = [1, 1]} : vector<3x32xf32> to vector<1x32xf32>
      %c2_i32_371 = arith.constant 2 : i32
      %958 = arith.subi %c14_i32, %c2_i32_371 : i32
      %959 = arith.index_cast %958 : i32 to index
      %c0_372 = arith.constant 0 : index
      %960 = vector.load %arg13[%959, %c0_372] : memref<16x32xf32, #tpu.memory_space<vmem>>, vector<1x32xf32>
      tpu.vector_store %arg13[%959, %c0_372], %957 {strides = array<i32>} : memref<16x32xf32, #tpu.memory_space<vmem>>, vector<1x32xf32>,
    } else {
    }
    %c15_i32_303 = arith.constant 15 : i32
    %c15_i32_304 = arith.constant 15 : i32
    %800 = arith.minsi %c15_i32_303, %c15_i32_304 : i32
    %801 = arith.index_cast %800 : i32 to index
    %c0_305 = arith.constant 0 : index
    %802 = vector.load %arg12[%801, %c0_305] : memref<16x32xf32, #tpu.memory_space<vmem>>, vector<1x32xf32>
    %803 = vector.extract_strided_slice %795 {offsets = [0, 0], sizes = [1, 32], strides = [1, 1]} : vector<3x32xf32> to vector<1x32xf32>
    %804 = tpu.concatenate %802, %803 in 1 : vector<1x32xf32>, vector<1x32xf32> -> vector<1x64xf32>
    %c0_306 = arith.constant 0 : index
    %c0_307 = arith.constant 0 : index
    %c0_308 = arith.constant 0 : index
    %805 = vector.load %arg7[%c0_306, %c0_307, %c0_308] : memref<3x64x128xf32, #tpu.memory_space<vmem>>, vector<1x64x128xf32>
    %806 = vector.shape_cast %805 : vector<1x64x128xf32> to vector<64x128xf32>
    %cst_309 = arith.constant dense<0.000000e+00> : vector<1x128xf32>
    %807 = tpu.matmul %804, %806, %cst_309 {dimension_numbers = #tpu.dot_dimension_numbers<[1], [0], [0], [1], [0, 0, 1, 1], [], []>} : vector<1x64xf32>, vector<64x128xf32>, vector<1x128xf32> -> vector<1x128xf32>
    %808 = vector.extract_strided_slice %795 {offsets = [0, 0], sizes = [1, 32], strides = [1, 1]} : vector<3x32xf32> to vector<1x32xf32>
    %809 = vector.extract_strided_slice %795 {offsets = [1, 0], sizes = [1, 32], strides = [1, 1]} : vector<3x32xf32> to vector<1x32xf32>
    %810 = tpu.concatenate %808, %809 in 1 : vector<1x32xf32>, vector<1x32xf32> -> vector<1x64xf32>
    %c1_310 = arith.constant 1 : index
    %c0_311 = arith.constant 0 : index
    %c0_312 = arith.constant 0 : index
    %811 = vector.load %arg7[%c1_310, %c0_311, %c0_312] : memref<3x64x128xf32, #tpu.memory_space<vmem>>, vector<1x64x128xf32>
    %812 = vector.shape_cast %811 : vector<1x64x128xf32> to vector<64x128xf32>
    %cst_313 = arith.constant dense<0.000000e+00> : vector<1x128xf32>
    %813 = tpu.matmul %810, %812, %cst_313 {dimension_numbers = #tpu.dot_dimension_numbers<[1], [0], [0], [1], [0, 0, 1, 1], [], []>} : vector<1x64xf32>, vector<64x128xf32>, vector<1x128xf32> -> vector<1x128xf32>
    %814 = vector.extract_strided_slice %795 {offsets = [1, 0], sizes = [1, 32], strides = [1, 1]} : vector<3x32xf32> to vector<1x32xf32>
    %815 = vector.extract_strided_slice %795 {offsets = [2, 0], sizes = [1, 32], strides = [1, 1]} : vector<3x32xf32> to vector<1x32xf32>
    %816 = tpu.concatenate %814, %815 in 1 : vector<1x32xf32>, vector<1x32xf32> -> vector<1x64xf32>
    %c2_314 = arith.constant 2 : index
    %c0_315 = arith.constant 0 : index
    %c0_316 = arith.constant 0 : index
    %817 = vector.load %arg7[%c2_314, %c0_315, %c0_316] : memref<3x64x128xf32, #tpu.memory_space<vmem>>, vector<1x64x128xf32>
    %818 = vector.shape_cast %817 : vector<1x64x128xf32> to vector<64x128xf32>
    %cst_317 = arith.constant dense<0.000000e+00> : vector<1x128xf32>
    %819 = tpu.matmul %816, %818, %cst_317 {dimension_numbers = #tpu.dot_dimension_numbers<[1], [0], [0], [1], [0, 0, 1, 1], [], []>} : vector<1x64xf32>, vector<64x128xf32>, vector<1x128xf32> -> vector<1x128xf32>
    %820 = tpu.concatenate %807, %813, %819 in 0 : vector<1x128xf32>, vector<1x128xf32>, vector<1x128xf32> -> vector<3x128xf32>
    %821 = arith.addf %820, %46 : vector<3x128xf32>
    %822 = vector.extract_strided_slice %821 {offsets = [0, 0], sizes = [3, 96], strides = [1, 1]} : vector<3x128xf32> to vector<3x96xf32>
    %823 = arith.negf %822 : vector<3x96xf32>
    %824 = math.exp %823 : vector<3x96xf32>
    %cst_318 = arith.constant 1.000000e+00 : f32
    %825 = vector.broadcast %cst_318 : f32 to vector<3x96xf32>
    %826 = arith.addf %825, %824 : vector<3x96xf32>
    %827 = arith.divf %825, %826 : vector<3x96xf32>
    %828 = vector.extract_strided_slice %821 {offsets = [0, 96], sizes = [3, 32], strides = [1, 1]} : vector<3x128xf32> to vector<3x32xf32>
    %829 = math.tanh %828 : vector<3x32xf32>
    %830 = vector.extract_strided_slice %827 {offsets = [0, 0], sizes = [3, 32], strides = [1, 1]} : vector<3x96xf32> to vector<3x32xf32>
    %831 = vector.extract_strided_slice %827 {offsets = [0, 32], sizes = [3, 32], strides = [1, 1]} : vector<3x96xf32> to vector<3x32xf32>
    %832 = vector.extract_strided_slice %827 {offsets = [0, 64], sizes = [3, 32], strides = [1, 1]} : vector<3x96xf32> to vector<3x32xf32>
    %833 = arith.mulf %831, %796 : vector<3x32xf32>
    %834 = arith.mulf %830, %829 : vector<3x32xf32>
    %835 = arith.addf %833, %834 : vector<3x32xf32>
    %836 = math.tanh %835 : vector<3x32xf32>
    %837 = arith.mulf %832, %836 : vector<3x32xf32>
    %838 = vector.broadcast %c15_i32_303 : i32 to vector<3x32xi32>
    %839 = arith.subi %838, %47 : vector<3x32xi32>
    %c0_i32_319 = arith.constant 0 : i32
    %840 = vector.broadcast %c0_i32_319 : i32 to vector<3x32xi32>
    %841 = arith.cmpi sge, %839, %840 : vector<3x32xi32>
    %c16_i32_320 = arith.constant 16 : i32
    %842 = vector.broadcast %c16_i32_320 : i32 to vector<3x32xi32>
    %843 = arith.cmpi slt, %839, %842 : vector<3x32xi32>
    %844 = arith.andi %841, %843 : vector<3x32xi1>
    %845 = arith.select %844, %837, %795 : vector<3x32xi1>, vector<3x32xf32>
    %846 = arith.select %844, %835, %796 : vector<3x32xi1>, vector<3x32xf32>
    %c2_i32_321 = arith.constant 2 : i32
    %847 = arith.cmpi sge, %c15_i32_303, %c2_i32_321 : i32
    %848 = arith.extui %847 : i1 to i32
    %c0_i32_322 = arith.constant 0 : i32
    %849 = arith.cmpi ne, %848, %c0_i32_322 : i32
    scf.if %849 {
      %957 = vector.extract_strided_slice %845 {offsets = [2, 0], sizes = [1, 32], strides = [1, 1]} : vector<3x32xf32> to vector<1x32xf32>
      %c2_i32_371 = arith.constant 2 : i32
      %958 = arith.subi %c15_i32_303, %c2_i32_371 : i32
      %959 = arith.index_cast %958 : i32 to index
      %c0_372 = arith.constant 0 : index
      %960 = vector.load %arg13[%959, %c0_372] : memref<16x32xf32, #tpu.memory_space<vmem>>, vector<1x32xf32>
      tpu.vector_store %arg13[%959, %c0_372], %957 {strides = array<i32>} : memref<16x32xf32, #tpu.memory_space<vmem>>, vector<1x32xf32>,
    } else {
    }
    %c16_i32_323 = arith.constant 16 : i32
    %c15_i32_324 = arith.constant 15 : i32
    %850 = arith.minsi %c16_i32_323, %c15_i32_324 : i32
    %851 = arith.index_cast %850 : i32 to index
    %c0_325 = arith.constant 0 : index
    %852 = vector.load %arg12[%851, %c0_325] : memref<16x32xf32, #tpu.memory_space<vmem>>, vector<1x32xf32>
    %853 = vector.extract_strided_slice %845 {offsets = [0, 0], sizes = [1, 32], strides = [1, 1]} : vector<3x32xf32> to vector<1x32xf32>
    %854 = tpu.concatenate %852, %853 in 1 : vector<1x32xf32>, vector<1x32xf32> -> vector<1x64xf32>
    %c0_326 = arith.constant 0 : index
    %c0_327 = arith.constant 0 : index
    %c0_328 = arith.constant 0 : index
    %855 = vector.load %arg7[%c0_326, %c0_327, %c0_328] : memref<3x64x128xf32, #tpu.memory_space<vmem>>, vector<1x64x128xf32>
    %856 = vector.shape_cast %855 : vector<1x64x128xf32> to vector<64x128xf32>
    %cst_329 = arith.constant dense<0.000000e+00> : vector<1x128xf32>
    %857 = tpu.matmul %854, %856, %cst_329 {dimension_numbers = #tpu.dot_dimension_numbers<[1], [0], [0], [1], [0, 0, 1, 1], [], []>} : vector<1x64xf32>, vector<64x128xf32>, vector<1x128xf32> -> vector<1x128xf32>
    %858 = vector.extract_strided_slice %845 {offsets = [0, 0], sizes = [1, 32], strides = [1, 1]} : vector<3x32xf32> to vector<1x32xf32>
    %859 = vector.extract_strided_slice %845 {offsets = [1, 0], sizes = [1, 32], strides = [1, 1]} : vector<3x32xf32> to vector<1x32xf32>
    %860 = tpu.concatenate %858, %859 in 1 : vector<1x32xf32>, vector<1x32xf32> -> vector<1x64xf32>
    %c1_330 = arith.constant 1 : index
    %c0_331 = arith.constant 0 : index
    %c0_332 = arith.constant 0 : index
    %861 = vector.load %arg7[%c1_330, %c0_331, %c0_332] : memref<3x64x128xf32, #tpu.memory_space<vmem>>, vector<1x64x128xf32>
    %862 = vector.shape_cast %861 : vector<1x64x128xf32> to vector<64x128xf32>
    %cst_333 = arith.constant dense<0.000000e+00> : vector<1x128xf32>
    %863 = tpu.matmul %860, %862, %cst_333 {dimension_numbers = #tpu.dot_dimension_numbers<[1], [0], [0], [1], [0, 0, 1, 1], [], []>} : vector<1x64xf32>, vector<64x128xf32>, vector<1x128xf32> -> vector<1x128xf32>
    %864 = vector.extract_strided_slice %845 {offsets = [1, 0], sizes = [1, 32], strides = [1, 1]} : vector<3x32xf32> to vector<1x32xf32>
    %865 = vector.extract_strided_slice %845 {offsets = [2, 0], sizes = [1, 32], strides = [1, 1]} : vector<3x32xf32> to vector<1x32xf32>
    %866 = tpu.concatenate %864, %865 in 1 : vector<1x32xf32>, vector<1x32xf32> -> vector<1x64xf32>
    %c2_334 = arith.constant 2 : index
    %c0_335 = arith.constant 0 : index
    %c0_336 = arith.constant 0 : index
    %867 = vector.load %arg7[%c2_334, %c0_335, %c0_336] : memref<3x64x128xf32, #tpu.memory_space<vmem>>, vector<1x64x128xf32>
    %868 = vector.shape_cast %867 : vector<1x64x128xf32> to vector<64x128xf32>
    %cst_337 = arith.constant dense<0.000000e+00> : vector<1x128xf32>
    %869 = tpu.matmul %866, %868, %cst_337 {dimension_numbers = #tpu.dot_dimension_numbers<[1], [0], [0], [1], [0, 0, 1, 1], [], []>} : vector<1x64xf32>, vector<64x128xf32>, vector<1x128xf32> -> vector<1x128xf32>
    %870 = tpu.concatenate %857, %863, %869 in 0 : vector<1x128xf32>, vector<1x128xf32>, vector<1x128xf32> -> vector<3x128xf32>
    %871 = arith.addf %870, %46 : vector<3x128xf32>
    %872 = vector.extract_strided_slice %871 {offsets = [0, 0], sizes = [3, 96], strides = [1, 1]} : vector<3x128xf32> to vector<3x96xf32>
    %873 = arith.negf %872 : vector<3x96xf32>
    %874 = math.exp %873 : vector<3x96xf32>
    %cst_338 = arith.constant 1.000000e+00 : f32
    %875 = vector.broadcast %cst_338 : f32 to vector<3x96xf32>
    %876 = arith.addf %875, %874 : vector<3x96xf32>
    %877 = arith.divf %875, %876 : vector<3x96xf32>
    %878 = vector.extract_strided_slice %871 {offsets = [0, 96], sizes = [3, 32], strides = [1, 1]} : vector<3x128xf32> to vector<3x32xf32>
    %879 = math.tanh %878 : vector<3x32xf32>
    %880 = vector.extract_strided_slice %877 {offsets = [0, 0], sizes = [3, 32], strides = [1, 1]} : vector<3x96xf32> to vector<3x32xf32>
    %881 = vector.extract_strided_slice %877 {offsets = [0, 32], sizes = [3, 32], strides = [1, 1]} : vector<3x96xf32> to vector<3x32xf32>
    %882 = vector.extract_strided_slice %877 {offsets = [0, 64], sizes = [3, 32], strides = [1, 1]} : vector<3x96xf32> to vector<3x32xf32>
    %883 = arith.mulf %881, %846 : vector<3x32xf32>
    %884 = arith.mulf %880, %879 : vector<3x32xf32>
    %885 = arith.addf %883, %884 : vector<3x32xf32>
    %886 = math.tanh %885 : vector<3x32xf32>
    %887 = arith.mulf %882, %886 : vector<3x32xf32>
    %888 = vector.broadcast %c16_i32_323 : i32 to vector<3x32xi32>
    %889 = arith.subi %888, %47 : vector<3x32xi32>
    %c0_i32_339 = arith.constant 0 : i32
    %890 = vector.broadcast %c0_i32_339 : i32 to vector<3x32xi32>
    %891 = arith.cmpi sge, %889, %890 : vector<3x32xi32>
    %c16_i32_340 = arith.constant 16 : i32
    %892 = vector.broadcast %c16_i32_340 : i32 to vector<3x32xi32>
    %893 = arith.cmpi slt, %889, %892 : vector<3x32xi32>
    %894 = arith.andi %891, %893 : vector<3x32xi1>
    %895 = arith.select %894, %887, %845 : vector<3x32xi1>, vector<3x32xf32>
    %896 = arith.select %894, %885, %846 : vector<3x32xi1>, vector<3x32xf32>
    %c2_i32_341 = arith.constant 2 : i32
    %897 = arith.cmpi sge, %c16_i32_323, %c2_i32_341 : i32
    %898 = arith.extui %897 : i1 to i32
    %c0_i32_342 = arith.constant 0 : i32
    %899 = arith.cmpi ne, %898, %c0_i32_342 : i32
    scf.if %899 {
      %957 = vector.extract_strided_slice %895 {offsets = [2, 0], sizes = [1, 32], strides = [1, 1]} : vector<3x32xf32> to vector<1x32xf32>
      %c2_i32_371 = arith.constant 2 : i32
      %958 = arith.subi %c16_i32_323, %c2_i32_371 : i32
      %959 = arith.index_cast %958 : i32 to index
      %c0_372 = arith.constant 0 : index
      %960 = vector.load %arg13[%959, %c0_372] : memref<16x32xf32, #tpu.memory_space<vmem>>, vector<1x32xf32>
      tpu.vector_store %arg13[%959, %c0_372], %957 {strides = array<i32>} : memref<16x32xf32, #tpu.memory_space<vmem>>, vector<1x32xf32>,
    } else {
    }
    %c17_i32 = arith.constant 17 : i32
    %c15_i32_343 = arith.constant 15 : i32
    %900 = arith.minsi %c17_i32, %c15_i32_343 : i32
    %901 = arith.index_cast %900 : i32 to index
    %c0_344 = arith.constant 0 : index
    %902 = vector.load %arg12[%901, %c0_344] : memref<16x32xf32, #tpu.memory_space<vmem>>, vector<1x32xf32>
    %903 = vector.extract_strided_slice %895 {offsets = [0, 0], sizes = [1, 32], strides = [1, 1]} : vector<3x32xf32> to vector<1x32xf32>
    %904 = tpu.concatenate %902, %903 in 1 : vector<1x32xf32>, vector<1x32xf32> -> vector<1x64xf32>
    %c0_345 = arith.constant 0 : index
    %c0_346 = arith.constant 0 : index
    %c0_347 = arith.constant 0 : index
    %905 = vector.load %arg7[%c0_345, %c0_346, %c0_347] : memref<3x64x128xf32, #tpu.memory_space<vmem>>, vector<1x64x128xf32>
    %906 = vector.shape_cast %905 : vector<1x64x128xf32> to vector<64x128xf32>
    %cst_348 = arith.constant dense<0.000000e+00> : vector<1x128xf32>
    %907 = tpu.matmul %904, %906, %cst_348 {dimension_numbers = #tpu.dot_dimension_numbers<[1], [0], [0], [1], [0, 0, 1, 1], [], []>} : vector<1x64xf32>, vector<64x128xf32>, vector<1x128xf32> -> vector<1x128xf32>
    %908 = vector.extract_strided_slice %895 {offsets = [0, 0], sizes = [1, 32], strides = [1, 1]} : vector<3x32xf32> to vector<1x32xf32>
    %909 = vector.extract_strided_slice %895 {offsets = [1, 0], sizes = [1, 32], strides = [1, 1]} : vector<3x32xf32> to vector<1x32xf32>
    %910 = tpu.concatenate %908, %909 in 1 : vector<1x32xf32>, vector<1x32xf32> -> vector<1x64xf32>
    %c1_349 = arith.constant 1 : index
    %c0_350 = arith.constant 0 : index
    %c0_351 = arith.constant 0 : index
    %911 = vector.load %arg7[%c1_349, %c0_350, %c0_351] : memref<3x64x128xf32, #tpu.memory_space<vmem>>, vector<1x64x128xf32>
    %912 = vector.shape_cast %911 : vector<1x64x128xf32> to vector<64x128xf32>
    %cst_352 = arith.constant dense<0.000000e+00> : vector<1x128xf32>
    %913 = tpu.matmul %910, %912, %cst_352 {dimension_numbers = #tpu.dot_dimension_numbers<[1], [0], [0], [1], [0, 0, 1, 1], [], []>} : vector<1x64xf32>, vector<64x128xf32>, vector<1x128xf32> -> vector<1x128xf32>
    %914 = vector.extract_strided_slice %895 {offsets = [1, 0], sizes = [1, 32], strides = [1, 1]} : vector<3x32xf32> to vector<1x32xf32>
    %915 = vector.extract_strided_slice %895 {offsets = [2, 0], sizes = [1, 32], strides = [1, 1]} : vector<3x32xf32> to vector<1x32xf32>
    %916 = tpu.concatenate %914, %915 in 1 : vector<1x32xf32>, vector<1x32xf32> -> vector<1x64xf32>
    %c2_353 = arith.constant 2 : index
    %c0_354 = arith.constant 0 : index
    %c0_355 = arith.constant 0 : index
    %917 = vector.load %arg7[%c2_353, %c0_354, %c0_355] : memref<3x64x128xf32, #tpu.memory_space<vmem>>, vector<1x64x128xf32>
    %918 = vector.shape_cast %917 : vector<1x64x128xf32> to vector<64x128xf32>
    %cst_356 = arith.constant dense<0.000000e+00> : vector<1x128xf32>
    %919 = tpu.matmul %916, %918, %cst_356 {dimension_numbers = #tpu.dot_dimension_numbers<[1], [0], [0], [1], [0, 0, 1, 1], [], []>} : vector<1x64xf32>, vector<64x128xf32>, vector<1x128xf32> -> vector<1x128xf32>
    %920 = tpu.concatenate %907, %913, %919 in 0 : vector<1x128xf32>, vector<1x128xf32>, vector<1x128xf32> -> vector<3x128xf32>
    %921 = arith.addf %920, %46 : vector<3x128xf32>
    %922 = vector.extract_strided_slice %921 {offsets = [0, 0], sizes = [3, 96], strides = [1, 1]} : vector<3x128xf32> to vector<3x96xf32>
    %923 = arith.negf %922 : vector<3x96xf32>
    %924 = math.exp %923 : vector<3x96xf32>
    %cst_357 = arith.constant 1.000000e+00 : f32
    %925 = vector.broadcast %cst_357 : f32 to vector<3x96xf32>
    %926 = arith.addf %925, %924 : vector<3x96xf32>
    %927 = arith.divf %925, %926 : vector<3x96xf32>
    %928 = vector.extract_strided_slice %921 {offsets = [0, 96], sizes = [3, 32], strides = [1, 1]} : vector<3x128xf32> to vector<3x32xf32>
    %929 = math.tanh %928 : vector<3x32xf32>
    %930 = vector.extract_strided_slice %927 {offsets = [0, 0], sizes = [3, 32], strides = [1, 1]} : vector<3x96xf32> to vector<3x32xf32>
    %931 = vector.extract_strided_slice %927 {offsets = [0, 32], sizes = [3, 32], strides = [1, 1]} : vector<3x96xf32> to vector<3x32xf32>
    %932 = vector.extract_strided_slice %927 {offsets = [0, 64], sizes = [3, 32], strides = [1, 1]} : vector<3x96xf32> to vector<3x32xf32>
    %933 = arith.mulf %931, %896 : vector<3x32xf32>
    %934 = arith.mulf %930, %929 : vector<3x32xf32>
    %935 = arith.addf %933, %934 : vector<3x32xf32>
    %936 = math.tanh %935 : vector<3x32xf32>
    %937 = arith.mulf %932, %936 : vector<3x32xf32>
    %938 = vector.broadcast %c17_i32 : i32 to vector<3x32xi32>
    %939 = arith.subi %938, %47 : vector<3x32xi32>
    %c0_i32_358 = arith.constant 0 : i32
    %940 = vector.broadcast %c0_i32_358 : i32 to vector<3x32xi32>
    %941 = arith.cmpi sge, %939, %940 : vector<3x32xi32>
    %c16_i32_359 = arith.constant 16 : i32
    %942 = vector.broadcast %c16_i32_359 : i32 to vector<3x32xi32>
    %943 = arith.cmpi slt, %939, %942 : vector<3x32xi32>
    %944 = arith.andi %941, %943 : vector<3x32xi1>
    %945 = arith.select %944, %937, %895 : vector<3x32xi1>, vector<3x32xf32>
    %946 = arith.select %944, %935, %896 : vector<3x32xi1>, vector<3x32xf32>
    %c2_i32_360 = arith.constant 2 : i32
    %947 = arith.cmpi sge, %c17_i32, %c2_i32_360 : i32
    %948 = arith.extui %947 : i1 to i32
    %c0_i32_361 = arith.constant 0 : i32
    %949 = arith.cmpi ne, %948, %c0_i32_361 : i32
    scf.if %949 {
      %957 = vector.extract_strided_slice %945 {offsets = [2, 0], sizes = [1, 32], strides = [1, 1]} : vector<3x32xf32> to vector<1x32xf32>
      %c2_i32_371 = arith.constant 2 : i32
      %958 = arith.subi %c17_i32, %c2_i32_371 : i32
      %959 = arith.index_cast %958 : i32 to index
      %c0_372 = arith.constant 0 : index
      %960 = vector.load %arg13[%959, %c0_372] : memref<16x32xf32, #tpu.memory_space<vmem>>, vector<1x32xf32>
      tpu.vector_store %arg13[%959, %c0_372], %957 {strides = array<i32>} : memref<16x32xf32, #tpu.memory_space<vmem>>, vector<1x32xf32>,
    } else {
    }
    %c18_i32 = arith.constant 18 : i32
    %c0_362 = arith.constant 0 : index
    %c0_363 = arith.constant 0 : index
    %950 = vector.load %arg13[%c0_362, %c0_363] : memref<16x32xf32, #tpu.memory_space<vmem>>, vector<16x32xf32>
    %c0_364 = arith.constant 0 : index
    %c0_365 = arith.constant 0 : index
    %951 = vector.load %arg9[%c0_364, %c0_365] : memref<32x2xf32, #tpu.memory_space<vmem>>, vector<32x2xf32>
    %cst_366 = arith.constant dense<0.000000e+00> : vector<16x2xf32>
    %952 = tpu.matmul %950, %951, %cst_366 {dimension_numbers = #tpu.dot_dimension_numbers<[1], [0], [0], [1], [0, 0, 1, 1], [], []>} : vector<16x32xf32>, vector<32x2xf32>, vector<16x2xf32> -> vector<16x2xf32>
    %c0_367 = arith.constant 0 : index
    %c0_368 = arith.constant 0 : index
    %953 = vector.load %arg10[%c0_367, %c0_368] : memref<1x2xf32, #tpu.memory_space<vmem>>, vector<1x2xf32>
    %954 = vector.broadcast %953 : vector<1x2xf32> to vector<16x2xf32>
    %955 = arith.addf %952, %954 : vector<16x2xf32>
    %c0_369 = arith.constant 0 : index
    %c0_370 = arith.constant 0 : index
    %956 = vector.load %arg11[%c0_369, %c0_370] : memref<16x2xf32, #tpu.memory_space<vmem>>, vector<16x2xf32>
    tpu.vector_store %arg11[%c0_369, %c0_370], %955 {strides = array<i32>} : memref<16x2xf32, #tpu.memory_space<vmem>>, vector<16x2xf32>,
    return
  }
  func.func @transform_0(%arg0: i32) -> (i32, i32) {
    %c0_i32 = arith.constant 0 : i32
    %c0_i32_0 = arith.constant 0 : i32
    %c0_i32_1 = arith.constant 0 : i32
    return %c0_i32, %c0_i32_0 : i32, i32
  }
  func.func @transform_1(%arg0: i32) -> (i32, i32) {
    %c0_i32 = arith.constant 0 : i32
    %c0_i32_0 = arith.constant 0 : i32
    %c0_i32_1 = arith.constant 0 : i32
    return %c0_i32, %c0_i32_0 : i32, i32
  }
  func.func @transform_2(%arg0: i32) -> (i32, i32) {
    %c0_i32 = arith.constant 0 : i32
    %c0_i32_0 = arith.constant 0 : i32
    %c0_i32_1 = arith.constant 0 : i32
    return %c0_i32, %c0_i32_0 : i32, i32
  }
  func.func @transform_3(%arg0: i32) -> (i32, i32) {
    %c0_i32 = arith.constant 0 : i32
    %c0_i32_0 = arith.constant 0 : i32
    %c0_i32_1 = arith.constant 0 : i32
    return %c0_i32, %c0_i32_0 : i32, i32
  }
  func.func @transform_4(%arg0: i32) -> (i32, i32) {
    %c0_i32 = arith.constant 0 : i32
    %c0_i32_0 = arith.constant 0 : i32
    %c0_i32_1 = arith.constant 0 : i32
    return %c0_i32, %c0_i32_0 : i32, i32
  }
  func.func @transform_5(%arg0: i32) -> (i32, i32) {
    %c0_i32 = arith.constant 0 : i32
    %c0_i32_0 = arith.constant 0 : i32
    %c0_i32_1 = arith.constant 0 : i32
    return %c0_i32, %c0_i32_0 : i32, i32
  }
  func.func @transform_6(%arg0: i32) -> (i32, i32, i32) {
    %c0_i32 = arith.constant 0 : i32
    %c0_i32_0 = arith.constant 0 : i32
    %c0_i32_1 = arith.constant 0 : i32
    %c0_i32_2 = arith.constant 0 : i32
    return %c0_i32, %c0_i32_0, %c0_i32_1 : i32, i32, i32
  }
  func.func @transform_7(%arg0: i32) -> (i32, i32) {
    %c0_i32 = arith.constant 0 : i32
    %c0_i32_0 = arith.constant 0 : i32
    %c0_i32_1 = arith.constant 0 : i32
    return %c0_i32, %c0_i32_0 : i32, i32
  }
  func.func @transform_8(%arg0: i32) -> (i32, i32) {
    %c0_i32 = arith.constant 0 : i32
    %c0_i32_0 = arith.constant 0 : i32
    %c0_i32_1 = arith.constant 0 : i32
    return %c0_i32, %c0_i32_0 : i32, i32
  }
  func.func @transform_9(%arg0: i32) -> (i32, i32) {
    %c0_i32 = arith.constant 0 : i32
    %c0_i32_0 = arith.constant 0 : i32
    %c0_i32_1 = arith.constant 0 : i32
    return %c0_i32, %c0_i32_0 : i32, i32
  }
  func.func @transform_10(%arg0: i32) -> (i32, i32) {
    %c0_i32 = arith.constant 0 : i32
    %c0_i32_0 = arith.constant 0 : i32
    %c0_i32_1 = arith.constant 0 : i32
    return %c0_i32, %c0_i32_0 : i32, i32
  }
}

</mosaic_0001>

<bundles_post_ra>
// kernel: song_forward.1
= control target key start
LH: loop header
LB: loop body
LE: loop exit
PB: predicated region body
PF: predicated region fallthrough
CT: control target
= control target key end

     0   :  { %v7992_v0 = vmov 0   ;;  %vm39_vm0 = vcmask 1046528   ;;  %vm116_vm1 = vcmask 1045504   ;;  %vm160_vm2 = vcmask 1041408   ;;  %s7994_s19 = smov 64   ;;  %s7995_s20 = smov 32   ;;  %s10331_s0 = inlined_call_operand.vmem [shape: f32[16,1], index: 0, kind: input, shape index: {}]   ;;  %s10332_s4 = inlined_call_operand.vmem [shape: f32[512,32], index: 4, kind: input, shape index: {}]   ;;  %s10333_s1 = inlined_call_operand.vmem [shape: f32[1,32], index: 1, kind: input, shape index: {}]   ;;  %s10334_s2 = inlined_call_operand.vmem [shape: f32[1,32], index: 2, kind: input, shape index: {}]   ;;  %s10335_s3 = inlined_call_operand.vmem [shape: f32[1,32], index: 3, kind: input, shape index: {}]   ;;  %s10336_s6 = inlined_call_operand.vmem [shape: f32[3,64,128], index: 6, kind: input, shape index: {}]   ;;  %s10337_s5 = inlined_call_operand.vmem [shape: f32[1,32], index: 5, kind: input, shape index: {}]   ;;  %s10338_s7 = inlined_call_operand.vmem [shape: f32[3,128], index: 7, kind: input, shape index: {}]   ;;  %s10339_s8 = inlined_call_operand.vmem [shape: f32[32,2], index: 8, kind: input, shape index: {}]   ;;  %s10340_s9 = inlined_call_operand.vmem [shape: f32[1,2], index: 9, kind: input, shape index: {}]   ;;  %s10341_s10 = inlined_call_operand.vmem [shape: f32[16,2], index: 10, kind: output, shape index: {}]  }
   0x1   :  { %7798 = vset.pattern.permute.xlu0 %v7992_v0  ;;  %v35_v1 = vld [vmem:[%s10331_s0] sm:$0xff]  ;;  %v36_v2 = vld [vmem:[%s10331_s0 + $0x8] sm:$0xff]  ;;  %7799 = vset.pattern.permute.xlu1 %v7992_v0  ;;  %v270_v7 = vld [vmem:[%s10332_s4 + $0xf8] sm:$0xff]  ;;  %vm148_vm3 = vcmask 1042432   ;;  %vm128_vm4 = vcmask 1044480   ;;  %vm172_vm5 = vcmask 1040384  }
   0x2   :  { %v41_v3 = vrot.slane %v36_v2, 1  ;;  %47 = vperm.xlu0 %7798, %v35_v1   ;;  %v40_v4 = vrot.slane %v35_v1, 1  ;;  %v254_v8 = vld [vmem:[%s10332_s4 + $0x78] sm:$0xff]  ;;  %v269_v9 = vld [vmem:[%s10332_s4 + $0xf0] sm:$0xff]  ;;  %6187 = vmatprep.subr.mxu0 %v270_v7  ;;  %v268_v11 = vld [vmem:[%s10332_s4 + $0xe8] sm:$0xff]  ;;  %vm140_vm6 = vcmask 1043456  }
   0x3   :  { %v253_v10 = vld [vmem:[%s10332_s4 + $0x70] sm:$0xff]  ;;  %6188 = vmatpush3.msra.mxu0 %v254_v8  ;;  %v302_v12 = vld [vmem:[%s10332_s4 + $0x1f8] sm:$0xff]  ;;  %v252_v14 = vld [vmem:[%s10332_s4 + $0x68] sm:$0xff]  ;;  %vm218_vm7 = vcmask 261120   ;;  %vm221_vm8 = vcmask 523264   ;;  %vm224_vm9 = vcmask 785408  }
   0x4   :  { %v42_v5 = vsel %vm39_vm0, %v40_v4, %v41_v3  ;;  %v44_v6 = vsel %vm39_vm0, %v41_v3, 0.0  ;;  %v286_v13 = vld [vmem:[%s10332_s4 + $0x178] sm:$0xff]  ;;  %6189 = vmatprep.subr.mxu0 %v269_v9  ;;  %6225 = vmatprep.subr.mxu1 %v302_v12  ;;  %v301_v15 = vld [vmem:[%s10332_s4 + $0x1f0] sm:$0xff]  ;;  %v267_v16 = vld [vmem:[%s10332_s4 + $0xe0] sm:$0xff]  ;;  %vm7997_vm10 = vmmov 0   ;;  %vm1297_vm14 = vcmask 256002  }
   0x5   :  { %64 = vperm.xlu1 %7799, %v42_v5   ;;  %6190 = vmatpush3.msra.mxu0 %v253_v10  ;;  %v285_v17 = vld [vmem:[%s10332_s4 + $0x170] sm:$0xff]  ;;  %v300_v18 = vld [vmem:[%s10332_s4 + $0x1e8] sm:$0xff]  ;;  %v251_v19 = vld [vmem:[%s10332_s4 + $0x60] sm:$0xff] }
   0x6   :  { %51 = vperm.xlu0 %7798, %v36_v2   ;;  %6226 = vmatpush3.msra.mxu1 %v286_v13  ;;  %v284_v20 = vld [vmem:[%s10332_s4 + $0x168] sm:$0xff]  ;;  %v266_v21 = vld [vmem:[%s10332_s4 + $0xd8] sm:$0xff]  ;;  %v299_v22 = vld [vmem:[%s10332_s4 + $0x1e0] sm:$0xff] }
   0x7   :  { %6191 = vmatprep.subr.mxu0 %v268_v11  ;;  %6227 = vmatprep.subr.mxu1 %v301_v15  ;;  %v250_v23 = vld [vmem:[%s10332_s4 + $0x58] sm:$0xff]  ;;  %v283_v24 = vld [vmem:[%s10332_s4 + $0x160] sm:$0xff]  ;;  %v265_v25 = vld [vmem:[%s10332_s4 + $0xd0] sm:$0xff] }
   0x8   :  { %6192 = vmatpush3.msra.mxu0 %v252_v14  ;;  %6228 = vmatpush3.msra.mxu1 %v285_v17  ;;  %v298_v26 = vld [vmem:[%s10332_s4 + $0x1d8] sm:$0xff]  ;;  %v249_v27 = vld [vmem:[%s10332_s4 + $0x50] sm:$0xff]  ;;  %v264_v29 = vld [vmem:[%s10332_s4 + $0xc8] sm:$0xff] }
   0x9   :  { %69 = vperm.xlu1 %7799, %v44_v6   ;;  %6193 = vmatprep.subr.mxu0 %v267_v16  ;;  %v282_v28 = vld [vmem:[%s10332_s4 + $0x158] sm:$0xff]  ;;  %v297_v30 = vld [vmem:[%s10332_s4 + $0x1d0] sm:$0xff]  ;;  %v248_v31 = vld [vmem:[%s10332_s4 + $0x48] sm:$0xff] }
   0xa   :  { %6229 = vmatprep.subr.mxu1 %v300_v18  ;;  %6194 = vmatpush3.msra.mxu0 %v251_v19  ;;  %v281_v32 = vld [vmem:[%s10332_s4 + $0x150] sm:$0xff]  ;;  %v263_v33 = vld [vmem:[%s10332_s4 + $0xc0] sm:$0xff]  ;;  %v296_v34 = vld [vmem:[%s10332_s4 + $0x1c8] sm:$0xff] }
   0xb   :  { %6230 = vmatpush3.msra.mxu1 %v284_v20  ;;  %6195 = vmatprep.subr.mxu0 %v266_v21  ;;  %v247_v35 = vld [vmem:[%s10332_s4 + $0x40] sm:$0xff]  ;;  %v280_v36 = vld [vmem:[%s10332_s4 + $0x148] sm:$0xff]  ;;  %v262_v37 = vld [vmem:[%s10332_s4 + $0xb8] sm:$0xff] }
   0xc   :  { %6231 = vmatprep.subr.mxu1 %v299_v22  ;;  %6196 = vmatpush3.msra.mxu0 %v250_v23  ;;  %v295_v38 = vld [vmem:[%s10332_s4 + $0x1c0] sm:$0xff]  ;;  %v246_v39 = vld [vmem:[%s10332_s4 + $0x38] sm:$0xff]  ;;  %v261_v41 = vld [vmem:[%s10332_s4 + $0xb0] sm:$0xff] }
   0xd   :  { %6232 = vmatpush3.msra.mxu1 %v283_v24  ;;  %6197 = vmatprep.subr.mxu0 %v265_v25  ;;  %v279_v40 = vld [vmem:[%s10332_s4 + $0x140] sm:$0xff]  ;;  %v294_v42 = vld [vmem:[%s10332_s4 + $0x1b8] sm:$0xff]  ;;  %v245_v43 = vld [vmem:[%s10332_s4 + $0x30] sm:$0xff] }
   0xe   :  { %6233 = vmatprep.subr.mxu1 %v298_v26  ;;  %6198 = vmatpush3.msra.mxu0 %v249_v27  ;;  %v278_v44 = vld [vmem:[%s10332_s4 + $0x138] sm:$0xff]  ;;  %v260_v45 = vld [vmem:[%s10332_s4 + $0xa8] sm:$0xff]  ;;  %v293_v46 = vld [vmem:[%s10332_s4 + $0x1b0] sm:$0xff] }
   0xf   :  { %6234 = vmatpush3.msra.mxu1 %v282_v28  ;;  %6199 = vmatprep.subr.mxu0 %v264_v29  ;;  %v244_v47 = vld [vmem:[%s10332_s4 + $0x28] sm:$0xff]  ;;  %v259_v48 = vld [vmem:[%s10332_s4 + $0xa0] sm:$0xff]  ;;  %v258_v1 = vld [vmem:[%s10332_s4 + $0x98] sm:$0xff] }
  0x10   :  { %6235 = vmatprep.subr.mxu1 %v297_v30  ;;  %6200 = vmatpush3.msra.mxu0 %v248_v31  ;;  %v243_v49 = vld [vmem:[%s10332_s4 + $0x20] sm:$0xff]  ;;  %v277_v2 = vld [vmem:[%s10332_s4 + $0x130] sm:$0xff]  ;;  %v242_v3 = vld [vmem:[%s10332_s4 + $0x18] sm:$0xff] }
  0x11   :  { %6236 = vmatpush3.msra.mxu1 %v281_v32  ;;  %6201 = vmatprep.subr.mxu0 %v263_v33  ;;  %v5854_v50 = vld [vmem:[%s10333_s1] ss:$0 sm:$0xff]  ;;  %v292_v6 = vld [vmem:[%s10332_s4 + $0x1a8] sm:$0xff]  ;;  %v257_v7 = vld [vmem:[%s10332_s4 + $0x90] sm:$0xff] }
  0x12   :  { %6237 = vmatprep.subr.mxu1 %v296_v34  ;;  %6202 = vmatpush3.msra.mxu0 %v247_v35  ;;  %v5855_v52 = vld [vmem:[%s10334_s2] ss:$0 sm:$0xff]  ;;  %v276_v8 = vld [vmem:[%s10332_s4 + $0x128] sm:$0xff]  ;;  %v241_v9 = vld [vmem:[%s10332_s4 + $0x10] sm:$0xff] }
  0x13   :  { %6238 = vmatpush3.msra.mxu1 %v280_v36  ;;  %6203 = vmatprep.subr.mxu0 %v262_v37  ;;  %v5856_v56 = vld [vmem:[%s10335_s3] ss:$0 sm:$0xff]  ;;  %v256_v13 = vld [vmem:[%s10332_s4 + $0x88] sm:$0xff]  ;;  %v290_v18 = vld [vmem:[%s10332_s4 + $0x198] sm:$0xff] }
  0x14   :  { %6239 = vmatprep.subr.mxu1 %v295_v38  ;;  %6204 = vmatpush3.msra.mxu0 %v246_v39  ;;  %v291_v10 = vld [vmem:[%s10332_s4 + $0x1a0] sm:$0xff]  ;;  %v240_v17 = vld [vmem:[%s10332_s4 + $0x8] sm:$0xff]  ;;  %v274_v23 = vld [vmem:[%s10332_s4 + $0x118] sm:$0xff] }
  0x15   :  { %6240 = vmatpush3.msra.mxu1 %v279_v40  ;;  %6205 = vmatprep.subr.mxu0 %v261_v41  ;;  %v275_v14 = vld [vmem:[%s10332_s4 + $0x120] sm:$0xff]  ;;  %v289_v25 = vld [vmem:[%s10332_s4 + $0x190] sm:$0xff]  ;;  %v288_v35 = vld [vmem:[%s10332_s4 + $0x188] sm:$0xff] }
  0x16   :  { %6241 = vmatprep.subr.mxu1 %v294_v42  ;;  %6206 = vmatpush3.msra.mxu0 %v245_v43  ;;  %v255_v19 = vld [vmem:[%s10332_s4 + $0x80] sm:$0xff]  ;;  %v273_v34 = vld [vmem:[%s10332_s4 + $0x110] sm:$0xff]  ;;  %v272_v40 = vld [vmem:[%s10332_s4 + $0x108] sm:$0xff]  ;;  %v7993_v42 = vmov 0.0  }
  0x17   :  { %6242 = vmatpush3.msra.mxu1 %v278_v44  ;;  %6207 = vmatprep.subr.mxu0 %v260_v45  ;;  %v239_v24 = vld [vmem:[%s10332_s4] sm:$0xff] }
  0x18   :  { %6243 = vmatprep.subr.mxu1 %v293_v46  ;;  %6208 = vmatpush3.msra.mxu0 %v244_v47  ;;  %v287_v41 = vld [vmem:[%s10332_s4 + $0x180] sm:$0xff] }
  0x19   :  { %6209 = vmatprep.subr.mxu0 %v259_v48  ;;  %6244 = vmatpush3.msra.mxu1 %v277_v2 }
  0x1a   :  { %6210 = vmatpush3.msra.mxu0 %v243_v49  ;;  %6245 = vmatprep.subr.mxu1 %v292_v6  ;;  %v195_v6 = vrot.slane %v7993_v42, 3 }
  0x1b   :  { %6211 = vmatprep.subr.mxu0 %v258_v1  ;;  %6246 = vmatpush3.msra.mxu1 %v276_v8 }
  0x1c   :  { %6212 = vmatpush3.msra.mxu0 %v242_v3  ;;  %6247 = vmatprep.subr.mxu1 %v291_v10 }
  0x1d   :  { %6213 = vmatprep.subr.mxu0 %v257_v7  ;;  %6248 = vmatpush3.msra.mxu1 %v275_v14  ;;  %v213_v7 = vrot.slane %v7993_v42, 7 }
  0x1e   :  { %6214 = vmatpush3.msra.mxu0 %v241_v9  ;;  %6249 = vmatprep.subr.mxu1 %v290_v18 }
  0x1f   :  { %6215 = vmatprep.subr.mxu0 %v256_v13  ;;  %6250 = vmatpush3.msra.mxu1 %v274_v23 }
  0x20   :  { %6216 = vmatpush3.msra.mxu0 %v240_v17  ;;  %6251 = vmatprep.subr.mxu1 %v289_v25 }
  0x21   :  { %6217 = vmatprep.subr.mxu0 %v255_v19  ;;  %6252 = vmatpush3.msra.mxu1 %v273_v34 }
  0x22   :  { %6218 = vmatpush3.msra.mxu0 %v239_v24  ;;  %6253 = vmatprep.subr.mxu1 %v288_v35 }
  0x23   :  { %6755 = vmatprep.subr.mxu0 %v7993_v42  ;;  %6254 = vmatpush3.msra.mxu1 %v272_v40 }
  0x24   :  { %6255 = vmatprep.subr.mxu1 %v287_v41 }
  0x7d   :  { %v48_v51 = vpop.permute.xlu0 %47 }
  0x7e   :  { %v60_v53 = vmul.f32 %v5854_v50, %v48_v51 }
  0x80   :  { %v65_v54 = vpop.permute.xlu1 %64 }
  0x81   :  { %v78_v55 = vmul.f32 %v5855_v52, %v65_v54  ;;  %v52_v57 = vpop.permute.xlu0 %51  ;;  %v271_v54 = vld [vmem:[%s10332_s4 + $0x100] sm:$0xff]  ;;  %s7996_s4 = smov 96  }
  0x82   :  { %v61_v61 = vmul.f32 %v5854_v50, %v52_v57  ;;  %6256 = vmatpush3.msra.mxu1 %v271_v54 }
  0x83   :  { %v80_v58 = vadd.f32 %v78_v55, %v60_v53  ;;  %6774 = vmatprep.subr.mxu1 %v7993_v42 }
  0x84   :  { %v70_v59 = vpop.permute.xlu1 %69 }
  0x85   :  { %v89_v60 = vadd.f32 %v5856_v56, %v80_v58  ;;  %v79_v62 = vmul.f32 %v5855_v52, %v70_v59  ;;  %v190_v58 = vrot.slane %v7993_v42, 2  ;;  %v208_v59 = vrot.slane %v7993_v42, 6 }
  0x87   :  { %v91_v63 = vmax.f32 %v89_v60, 0.0  ;;  %v81_v0 = vadd.f32 %v79_v62, %v61_v61  ;;  %v185_v62 = vrot.slane %v7993_v42, 1 }
  0x89   :  { %v95_v4 = vrot.slane %v91_v63, 1  ;;  %v90_v5 = vadd.f32 %v5856_v56, %v81_v0  ;;  %v203_v63 = vrot.slane %v7993_v42, 5 }
  0x8b   :  { %v8224_v11 = vsel %vm39_vm0, 0.0, %v95_v4  ;;  %v92_v12 = vmax.f32 %v90_v5, 0.0 }
  0x8c   :  { %v117_v16 = vrot.slane %v8224_v11, 2  ;;  %v161_v20 = vrot.slane %v8224_v11, 6  ;;  %v105_v21 = vrot.slane %v8224_v11, 1  ;;  %v149_v22 = vrot.slane %v8224_v11, 5 }
  0x8d   :  { %v96_v15 = vrot.slane %v92_v12, 1  ;;  %v129_v28 = vrot.slane %v8224_v11, 3  ;;  %v173_v29 = vrot.slane %v8224_v11, 7 }
  0x8f   :  { %v8255_v26 = vsel %vm39_vm0, %v95_v4, %v96_v15  ;;  %v8258_v27 = vsel %vm39_vm0, %v96_v15, 0.0 }
  0x90   :  { %v118_v30 = vrot.slane %v8255_v26, 2  ;;  %v162_v31 = vrot.slane %v8255_v26, 6  ;;  %v106_v32 = vrot.slane %v8255_v26, 1  ;;  %v150_v33 = vrot.slane %v8255_v26, 5 }
  0x91   :  { %v130_v36 = vrot.slane %v8255_v26, 3  ;;  %v174_v37 = vrot.slane %v8255_v26, 7  ;;  %v108_v38 = vrot.slane %v8258_v27, 1  ;;  %v152_v39 = vrot.slane %v8258_v27, 5 }
  0x92   :  { %v119_v43 = vsel %vm116_vm1, %v117_v16, %v118_v30  ;;  %v163_v44 = vsel %vm160_vm2, %v161_v20, %v162_v31  ;;  %v107_v45 = vsel %vm39_vm0, %v105_v21, %v106_v32  ;;  %v151_v46 = vsel %vm148_vm3, %v149_v22, %v150_v33 }
  0x93   :  { %v7805_v47 = vpack.i.bf16 %v119_v43, %v163_v44  ;;  %v7800_v48 = vpack.i.bf16 %v107_v45, %v151_v46  ;;  %v131_v49 = vsel %vm128_vm4, %v129_v28, %v130_v36  ;;  %v175_v50 = vsel %vm172_vm5, %v173_v29, %v174_v37 }
  0x94   :  { %v109_v51 = vsel %vm39_vm0, %v106_v32, %v108_v38  ;;  %v153_v52 = vsel %vm148_vm3, %v150_v33, %v152_v39  ;;  %v132_v53 = vrot.slane %v8258_v27, 3  ;;  %v176_v55 = vrot.slane %v8258_v27, 7 }
  0x95   :  { %7806 = vrot.lane.b32.xlu1 %v7805_v47, %s7994_s19  ;;  %7801 = vrot.lane.b32.xlu0 %v7800_v48, %s7995_s20  ;;  %v120_v56 = vrot.slane %v8258_v27, 2  ;;  %v164_v57 = vrot.slane %v8258_v27, 6  ;;  %v7815_v60 = vpack.i.bf16 %v131_v49, %v175_v50  ;;  %v7810_v61 = vpack.i.bf16 %v109_v51, %v153_v52 }
  0x96   :  { %v133_v0 = vsel %vm128_vm4, %v130_v36, %v132_v53  ;;  %v177_v1 = vsel %vm172_vm5, %v174_v37, %v176_v55  ;;  %v186_v10 = vsel %vm39_vm0, %v108_v38, %v185_v62  ;;  %v204_v12 = vsel %vm148_vm3, %v152_v39, %v203_v63 }
  0x97   :  { %v121_v2 = vsel %vm116_vm1, %v118_v30, %v120_v56  ;;  %v165_v3 = vsel %vm160_vm2, %v162_v31, %v164_v57  ;;  %v7825_v4 = vpack.i.bf16 %v133_v0, %v177_v1  ;;  %v191_v8 = vsel %vm116_vm1, %v120_v56, %v190_v58 }
  0x98   :  { %v7820_v5 = vpack.i.bf16 %v121_v2, %v165_v3  ;;  %v209_v9 = vsel %vm160_vm2, %v164_v57, %v208_v59  ;;  %v7830_v14 = vpack.i.bf16 %v186_v10, %v204_v12  ;;  %v196_v15 = vsel %vm128_vm4, %v132_v53, %v195_v6  ;;  %v8379_v10 = vld [vmem:[%s10336_s6 + $0x68] sm:$0xff] }
  0x99   :  { %7816 = vrot.lane.b32.xlu1 %v7815_v60, %s7996_s4  ;;  %7811 = vrot.lane.b32.xlu0 %v7810_v61, %s7995_s20  ;;  %v7835_v13 = vpack.i.bf16 %v191_v8, %v209_v9  ;;  %v214_v16 = vsel %vm172_vm5, %v176_v55, %v213_v7  ;;  %v142_v18 = vrot.slane %v8255_v26, 4  ;;  %v141_v21 = vrot.slane %v8224_v11, 4  ;;  %v8355_v7 = vld [vmem:[%s10336_s6 + $0x78] sm:$0xff]  ;;  %v8367_v8 = vld [vmem:[%s10336_s6 + $0x70] sm:$0xff] }
  0x9a   :  { %v7840_v17 = vpack.i.bf16 %v196_v15, %v214_v16  ;;  %v144_v33 = vrot.slane %v8258_v27, 4  ;;  %v200_v51 = vrot.slane %v7993_v42, 4  ;;  %v8372_v9 = vld [vmem:[%s10336_s6 + $0x30] sm:$0xff]  ;;  %v8386_v12 = vld [vmem:[%s10336_s6 + $0x28] sm:$0xff]  ;;  %v8410_v15 = vld [vmem:[%s10336_s6 + $0x58] sm:$0xff] }
  0x9b   :  { %v143_v28 = vsel %vm140_vm6, %v141_v21, %v142_v18  ;;  %v8415_v16 = vld [vmem:[%s10336_s6 + $0x18] sm:$0xff]  ;;  %v8448_v21 = vld [vmem:[%s10336_s6 + $0x40] sm:$0xff] }
  0x9d   :  { %7826 = vrot.lane.b32.xlu1 %v7825_v4, %s7996_s4  ;;  %7821 = vrot.lane.b32.xlu0 %v7820_v5, %s7994_s19 }
  0xa1   :  { %7836 = vrot.lane.b32.xlu1 %v7835_v13, %s7994_s19  ;;  %7831 = vrot.lane.b32.xlu0 %v7830_v14, %s7995_s20  ;;  %v8391_v13 = vld [vmem:[%s10336_s6 + $0x60] sm:$0xff] }
  0xa2   :  { %v8400_v14 = vld [vmem:[%s10336_s6 + $0x20] sm:$0xff] }
  0xa5   :  { %7841 = vrot.lane.b32.xlu0 %v7840_v17, %s7996_s4  ;;  %v8420_v17 = vld [vmem:[%s10336_s6 + $0x50] sm:$0xff] }
 0x107   :  { %v7807_v19 = vpop.permute.xlu1 %7806  ;;  %v7802_v20 = vpop.permute.xlu0 %7801 }
 0x108   :  { %v7804_v22 = vunpack.i.h.bf16 %v7802_v20  ;;  %v7803_v23 = vunpack.i.l.bf16 %v7802_v20  ;;  %v7809_v24 = vunpack.i.h.bf16 %v7807_v19  ;;  %v7808_v25 = vunpack.i.l.bf16 %v7807_v19  ;;  %v8434_v19 = vld [vmem:[%s10336_s6 + $0x48] sm:$0xff] }
 0x109   :  { %v8441_v20 = vld [vmem:[%s10336_s6 + $0x8] sm:$0xff] }
 0x10a   :  { %v227_v29 = vsel %vm218_vm7, %v143_v28, %v7803_v23  ;;  %v219_v30 = vsel %vm218_vm7, %v8224_v11, %v7804_v22  ;;  %v145_v11 = vsel %vm140_vm6, %v142_v18, %v144_v33  ;;  %v8427_v18 = vld [vmem:[%s10336_s6 + $0x10] sm:$0xff]  ;;  %v8455_v22 = vld [vmem:[%s10336_s6] sm:$0xff] }
 0x10b   :  { %v7817_v31 = vpop.permute.xlu1 %7816  ;;  %v7812_v32 = vpop.permute.xlu0 %7811  ;;  %v229_v38 = vsel %vm221_vm8, %v227_v29, %v7808_v25  ;;  %v222_v39 = vsel %vm221_vm8, %v219_v30, %v7809_v24  ;;  %v5857_v28 = vld [vmem:[%s10337_s5] ss:$0 sm:$0xff] }
 0x10c   :  { %v7819_v34 = vunpack.i.h.bf16 %v7817_v31  ;;  %v7818_v35 = vunpack.i.l.bf16 %v7817_v31  ;;  %v7814_v36 = vunpack.i.h.bf16 %v7812_v32  ;;  %v7813_v37 = vunpack.i.l.bf16 %v7812_v32 }
 0x10e   :  { %v231_v40 = vsel %vm224_vm9, %v229_v38, %v7818_v35  ;;  %v225_v41 = vsel %vm224_vm9, %v222_v39, %v7819_v34  ;;  %v228_v49 = vsel %vm218_vm7, %v145_v11, %v7813_v37  ;;  %v220_v50 = vsel %vm218_vm7, %v8255_v26, %v7814_v36 }
 0x10f   :  { %v7827_v43 = vpop.permute.xlu1 %7826  ;;  %v7822_v44 = vpop.permute.xlu0 %7821  ;;  %374 = vmatprep.mubr.f32.mxu0 %v231_v40  ;;  %v201_v26 = vsel %vm140_vm6, %v144_v33, %v200_v51  ;;  %v8532_v51 = vld [vmem:[%s10336_s6 + $0x90] sm:$0xff] }
 0x110   :  { %v7829_v45 = vunpack.i.h.bf16 %v7827_v43  ;;  %v7828_v46 = vunpack.i.l.bf16 %v7827_v43  ;;  %v7824_v47 = vunpack.i.h.bf16 %v7822_v44  ;;  %v7823_v48 = vunpack.i.l.bf16 %v7822_v44  ;;  %375 = vmatmul.mubr.f32.vlgmr.msra.gmra.mxu0 %v225_v41 }
 0x112   :  { %v230_v52 = vsel %vm221_vm8, %v228_v49, %v7823_v48  ;;  %v223_v53 = vsel %vm221_vm8, %v220_v50, %v7824_v47  ;;  %v8502_v47 = vld [vmem:[%s10336_s6 + $0xb0] sm:$0xff]  ;;  %v8511_v48 = vld [vmem:[%s10336_s6 + $0xa8] sm:$0xff]  ;;  %v8518_v49 = vld [vmem:[%s10336_s6 + $0xa0] sm:$0xff] }
 0x113   :  { %v7837_v54 = vpop.permute.xlu1 %7836  ;;  %v7832_v55 = vpop.permute.xlu0 %7831  ;;  %v232_v56 = vsel %vm224_vm9, %v230_v52, %v7828_v46  ;;  %v226_v57 = vsel %vm224_vm9, %v223_v53, %v7829_v45  ;;  %v8495_v45 = vld [vmem:[%s10336_s6 + $0xb8] sm:$0xff]  ;;  %v8539_v52 = vld [vmem:[%s10336_s6 + $0x88] sm:$0xff]  ;;  %v8546_v53 = vld [vmem:[%s10336_s6 + $0x80] sm:$0xff] }
 0x114   :  { %v7834_v58 = vunpack.i.h.bf16 %v7832_v55  ;;  %v7833_v59 = vunpack.i.l.bf16 %v7832_v55  ;;  %379 = vmatprep.mubr.f32.mxu0 %v232_v56  ;;  %449 = vmatprep.mubr.f32.mxu1 %v232_v56  ;;  %v7839_v60 = vunpack.i.h.bf16 %v7837_v54  ;;  %v7838_v61 = vunpack.i.l.bf16 %v7837_v54  ;;  %v8525_v50 = vld [vmem:[%s10336_s6 + $0x98] sm:$0xff] }
 0x115   :  { %380 = vmatmul.mubr.f32.gmra.mxu0 %v226_v57  ;;  %450 = vmatmul.mubr.f32.vlgmr.msra.gmra.mxu1 %v226_v57 }
 0x116   :  { %v236_v62 = vsel %vm218_vm7, %v201_v26, %v7833_v59  ;;  %v233_v63 = vsel %vm218_vm7, %v8258_v27, %v7834_v58  ;;  %6775 = vmatpush3.msra.mxu1 %v8355_v7  ;;  %v8362_v27 = vld [vmem:[%s10336_s6 + $0x38] sm:$0xff]  ;;  %6771 = vmatprep.mubr.msk.f32.mxu0 %vm7997_vm10, %v7993_v42 }
 0x117   :  { %v7842_v0 = vpop.permute.xlu0 %7841  ;;  %v237_v3 = vsel %vm221_vm8, %v236_v62, %v7838_v61  ;;  %v234_v4 = vsel %vm221_vm8, %v233_v63, %v7839_v60  ;;  %6776 = vmatprep.subr.mxu1 %v7993_v42  ;;  %6756 = vmatpush3.msra.mxu0 %v8362_v27  ;;  %v8574_v60 = vld [vmem:[%s10338_s7] sm:$0x7] }
 0x118   :  { %v7844_v1 = vunpack.i.h.bf16 %v7842_v0  ;;  %v7843_v2 = vunpack.i.l.bf16 %v7842_v0  ;;  %6777 = vmatpush3.msra.mxu1 %v8367_v8  ;;  %6757 = vmatprep.subr.mxu0 %v7993_v42 }
 0x119   :  { %6778 = vmatprep.subr.mxu1 %v7993_v42  ;;  %6758 = vmatpush3.msra.mxu0 %v8372_v9 }
 0x11a   :  { %v238_v5 = vsel %vm224_vm9, %v237_v3, %v7843_v2  ;;  %v235_v6 = vsel %vm224_vm9, %v234_v4, %v7844_v1  ;;  %6779 = vmatpush3.msra.mxu1 %v8379_v10  ;;  %6759 = vmatprep.subr.mxu0 %v7993_v42 }
 0x11b   :  { %454 = vmatprep.mubr.f32.mxu1 %v238_v5  ;;  %6780 = vmatprep.subr.mxu1 %v7993_v42 }
 0x11c   :  { %455 = vmatmul.mubr.f32.gmra.mxu1 %v235_v6  ;;  %6760 = vmatpush3.msra.mxu0 %v8386_v12 }
 0x11d   :  { %6781 = vmatpush3.msra.mxu1 %v8391_v13  ;;  %6761 = vmatprep.subr.mxu0 %v7993_v42 }
 0x11e   :  { %6782 = vmatprep.subr.mxu1 %v7993_v42  ;;  %6762 = vmatpush3.msra.mxu0 %v8400_v14 }
 0x11f   :  { %6763 = vmatprep.subr.mxu0 %v7993_v42  ;;  %6783 = vmatpush3.msra.mxu1 %v8410_v15 }
 0x120   :  { %6764 = vmatpush3.msra.mxu0 %v8415_v16  ;;  %6784 = vmatprep.subr.mxu1 %v7993_v42 }
 0x121   :  { %6765 = vmatprep.subr.mxu0 %v7993_v42  ;;  %6785 = vmatpush3.msra.mxu1 %v8420_v17 }
 0x122   :  { %6766 = vmatpush3.msra.mxu0 %v8427_v18  ;;  %6786 = vmatprep.subr.mxu1 %v7993_v42 }
 0x123   :  { %6767 = vmatprep.subr.mxu0 %v7993_v42  ;;  %6787 = vmatpush3.msra.mxu1 %v8434_v19 }
 0x124   :  { %6768 = vmatpush3.msra.mxu0 %v8441_v20  ;;  %6788 = vmatprep.subr.mxu1 %v7993_v42 }
 0x125   :  { %6769 = vmatprep.subr.mxu0 %v7993_v42  ;;  %6789 = vmatpush3.msra.mxu1 %v8448_v21 }
 0x126   :  { %6790 = vmatprep.mubr.msk.f32.mxu1 %vm7997_vm10, %v7993_v42  ;;  %6770 = vmatpush3.msra.mxu0 %v8455_v22 }
 0x127   :  { %6791 = vmatmul.mubr.f32.vlgmr.msra.gmra.mxu1 %v7993_v42  ;;  %6793 = vmatprep.subr.mxu0 %v7993_v42 }
 0x128   :  { %6812 = vmatprep.subr.mxu1 %v7993_v42  ;;  %6828 = vmatprep.mubr.msk.f32.mxu1 %vm7997_vm10, %v7993_v42 }
 0x129   :  { %6813 = vmatpush3.msra.mxu1 %v8362_v27 }
 0x12a   :  { %6814 = vmatprep.subr.mxu1 %v7993_v42 }
 0x12b   :  { %6815 = vmatpush3.msra.mxu1 %v8372_v9 }
 0x12c   :  { %6816 = vmatprep.subr.mxu1 %v7993_v42 }
 0x12d   :  { %6817 = vmatpush3.msra.mxu1 %v8386_v12 }
 0x12e   :  { %6818 = vmatprep.subr.mxu1 %v7993_v42 }
 0x12f   :  { %6819 = vmatpush3.msra.mxu1 %v8400_v14 }
 0x130   :  { %6820 = vmatprep.subr.mxu1 %v7993_v42 }
 0x131   :  { %6821 = vmatpush3.msra.mxu1 %v8415_v16 }
 0x132   :  { %6822 = vmatprep.subr.mxu1 %v7993_v42 }
 0x133   :  { %6823 = vmatpush3.msra.mxu1 %v8427_v18 }
 0x134   :  { %6824 = vmatprep.subr.mxu1 %v7993_v42 }
 0x135   :  { %6825 = vmatpush3.msra.mxu1 %v8441_v20 }
 0x136   :  { %6826 = vmatprep.subr.mxu1 %v7993_v42 }
 0x137   :  { %6827 = vmatpush3.msra.mxu1 %v8455_v22 }
 0x138   :  { %6850 = vmatprep.subr.mxu1 %v7993_v42 }
 0x1d0   :  { %v6219_v23 = vpop.f32.mrf.mxu0 }
 0x1d2   :  { %v6220_v24 = vpop.f32.mrf.mxu0 }
 0x1d3   :  { %v6221_v25 = vadd.f32 %v6220_v24, %v6219_v23 }
 0x1d5   :  { %v6222_v29 = vpop.f32.mrf.mxu0  ;;  %v6257_v30 = vpop.f32.mrf.mxu1  ;;  %v377_v32 = vadd.f32 %v6221_v25, %v5857_v28 }
 0x1d7   :  { %v6258_v31 = vpop.f32.mrf.mxu1  ;;  %v6223_v33 = vpop.f32.mrf.mxu0 }
 0x1d8   :  { %v6259_v34 = vadd.f32 %v6258_v31, %v6257_v30  ;;  %v6224_v36 = vadd.f32 %v6223_v33, %v6222_v29  ;;  %v465_v30 = vlaneseq }
 0x1da   :  { %v452_v35 = vadd.f32 %v6259_v34, %v377_v32  ;;  %v382_v40 = vadd.f32 %v6224_v36, %v5857_v28  ;;  %v8585_v31 = vshrl.u32 %v465_v30, 7 }
 0x1dc   :  { %v460_v37 = vmax.f32 %v452_v35, 0.0  ;;  %v6260_v38 = vpop.f32.mrf.mxu1  ;;  %v743_v32 = vsub.s32 0, %v8585_v31 }
 0x1de   :  { %462 = vst.msk [vmem:[#allocation2] sm:$0xff] %vm218_vm7, %v460_v37  ;;  %v6261_v39 = vpop.f32.mrf.mxu1  ;;  %vm8588_vm11 = vcmp.ge.s32.totalorder %v743_v32, 0  ;;  %v1015_v32 = vsub.s32 1, %v8585_v31 }
 0x1df   :  { %v6262_v41 = vadd.f32 %v6261_v39, %v6260_v38 }
 0x1e0   :  { %vm8677_vm12 = vcmp.ge.s32.totalorder %v1015_v32, 0 }
 0x1e1   :  { %v457_v43 = vadd.f32 %v6262_v41, %v382_v40 }
 0x1e3   :  { %v461_v44 = vmax.f32 %v457_v43, 0.0 }
 0x1e5   :  { %463 = vst.msk [vmem:[#allocation2 + $0x8] sm:$0xff] %vm218_vm7, %v461_v44  ;;  %v467_v11 = vld [vmem:[#allocation2] sm:$0x1]  ;;  %v749_v38 = vld [vmem:[#allocation2 + $0x1] sm:$0x1] }
 0x1e6   :  { %v468_v46 = vsel %vm218_vm7, %v467_v11, 0.0 }
 0x1e7   :  { %6772 = vmatmul.mubr.msk.f32.vlgmr.msra.gmra.mxu0 %vm221_vm8, %v468_v46  ;;  %v627_v54 = vpop.f32.mrf.mxu1 }
 0x1e8   :  { %6794 = vmatpush3.msra.mxu0 %v8495_v45  ;;  %6809 = vmatprep.mubr.msk.f32.mxu0 %vm7997_vm10, %v7993_v42  ;;  %v711_v58 = vrot.slane %v627_v54, 7 }
 0x1e9   :  { %6795 = vmatprep.subr.mxu0 %v7993_v42  ;;  %v6792_v55 = vpop.f32.mrf.mxu1 }
 0x1ea   :  { %6796 = vmatpush3.msra.mxu0 %v8502_v47 }
 0x1eb   :  { %6797 = vmatprep.subr.mxu0 %v7993_v42 }
 0x1ec   :  { %6798 = vmatpush3.msra.mxu0 %v8511_v48 }
 0x1ed   :  { %6799 = vmatprep.subr.mxu0 %v7993_v42 }
 0x1ee   :  { %6800 = vmatpush3.msra.mxu0 %v8518_v49 }
 0x1ef   :  { %6801 = vmatprep.subr.mxu0 %v7993_v42 }
 0x1f0   :  { %6802 = vmatpush3.msra.mxu0 %v8525_v50 }
 0x1f1   :  { %6803 = vmatprep.subr.mxu0 %v7993_v42 }
 0x1f2   :  { %6804 = vmatpush3.msra.mxu0 %v8532_v51 }
 0x1f3   :  { %6805 = vmatprep.subr.mxu0 %v7993_v42 }
 0x1f4   :  { %6806 = vmatpush3.msra.mxu0 %v8539_v52 }
 0x1f5   :  { %6807 = vmatprep.subr.mxu0 %v7993_v42 }
 0x1f6   :  { %6808 = vmatpush3.msra.mxu0 %v8546_v53 }
 0x1f7   :  { %6810 = vmatmul.mubr.f32.vlgmr.msra.gmra.mxu0 %v7993_v42  ;;  %6831 = vmatprep.subr.mxu0 %v7993_v42 }
 0x1f8   :  { %6832 = vmatpush3.msra.mxu0 %v8355_v7  ;;  %6847 = vmatprep.mubr.msk.f32.mxu0 %vm7997_vm10, %v7993_v42 }
 0x1f9   :  { %6833 = vmatprep.subr.mxu0 %v7993_v42 }
 0x1fa   :  { %6834 = vmatpush3.msra.mxu0 %v8367_v8 }
 0x1fb   :  { %6835 = vmatprep.subr.mxu0 %v7993_v42 }
 0x1fc   :  { %6836 = vmatpush3.msra.mxu0 %v8379_v10 }
 0x1fd   :  { %6837 = vmatprep.subr.mxu0 %v7993_v42 }
 0x1fe   :  { %6838 = vmatpush3.msra.mxu0 %v8391_v13 }
 0x1ff   :  { %6839 = vmatprep.subr.mxu0 %v7993_v42 }
 0x200   :  { %6840 = vmatpush3.msra.mxu0 %v8410_v15 }
 0x201   :  { %6841 = vmatprep.subr.mxu0 %v7993_v42 }
 0x202   :  { %6842 = vmatpush3.msra.mxu0 %v8420_v17 }
 0x203   :  { %6843 = vmatprep.subr.mxu0 %v7993_v42 }
 0x204   :  { %6844 = vmatpush3.msra.mxu0 %v8434_v19 }
 0x205   :  { %6845 = vmatprep.subr.mxu0 %v7993_v42 }
 0x206   :  { %6846 = vmatpush3.msra.mxu0 %v8448_v21 }
 0x207   :  { %6869 = vmatprep.subr.mxu0 %v7993_v42 }
 0x2a7   :  { %v546_v56 = vpop.f32.mrf.mxu0 }
 0x2a8   :  { %v716_v26 = vsel %vm172_vm5, %v546_v56, %v711_v58 }
 0x2a9   :  { %v6773_v57 = vpop.f32.mrf.mxu0 }
 0x2b7   :  { %v706_v59 = vpop.f32.mrf.mxu0 }
 0x2b8   :  { %v714_v61 = vrot.slane %v706_v59, 6 }
 0x2b9   :  { %v6811_v62 = vpop.f32.mrf.mxu0 }
 0x2ba   :  { %v717_v63 = vsel %vm160_vm2, %v716_v26, %v714_v61 }
 0x2bb   :  { %v718_v0 = vadd.f32 %v717_v63, %v8574_v60 }
 0x2bd   :  { %7845 = vtanh.f32 %v718_v0  ;;  %v5875_v2 = vmul.f32 -1.442695, %v718_v0 }
 0x2bf   :  { %7847 = vpow2.f32 %v5875_v2 }
 0x2ca   :  { %v7846_v1 = vpop.eup %7845 }
 0x2cb   :  { %728 = vrot.lane.b32.xlu1 %v7846_v1, %s7995_s20 }
 0x2cc   :  { %v7848_v3 = vpop.eup %7847 }
 0x2cd   :  { %v722_v4 = vadd.f32 1.0, %v7848_v3 }
 0x2cf   :  { %7849 = vrcp.f32 %v722_v4 }
 0x2dc   :  { %v7850_v5 = vpop.eup %7849 }
 0x2dd   :  { %v726_v24 = vmul.f32 0.0, %v7850_v5 }
 0x33d   :  { %v729_v6 = vpop.permute.xlu1 %728 }
 0x33e   :  { %v731_v23 = vmul.f32 %v7850_v5, %v729_v6 }
 0x340   :  { %733 = vrot.lane.b32.xlu0 %v731_v23, %s7995_s20 }
 0x3b2   :  { %v734_v25 = vpop.permute.xlu0 %733 }
 0x3b3   :  { %v8581_v28 = vadd.f32 %v734_v25, %v726_v24 }
 0x3b5   :  { %7851 = vtanh.f32 %v8581_v28  ;;  %v8669_v23 = vsel %vm8588_vm11, %v8581_v28, 0.0 }
 0x3c2   :  { %v7852_v29 = vpop.eup %7851 }
 0x3c3   :  { %739 = vrot.lane.b32.xlu1 %v7852_v29, %s7995_s20 }
 0x435   :  { %v740_v33 = vpop.permute.xlu1 %739 }
 0x436   :  { %v742_v34 = vmul.f32 %v7850_v5, %v740_v33 }
 0x438   :  { %v8594_v36 = vsel %vm8588_vm11, %v742_v34, 0.0 }
 0x439   :  { %828 = vrot.lane.b32.xlu1 %v8594_v36, %s7994_s19  ;;  %751 = vrot.lane.b32.xlu0 %v8594_v36, %s7996_s4  ;;  %v831_v37 = vrot.slane %v8594_v36, 1 }
 0x43d   :  { %832 = vrot.lane.b32.xlu0 %v831_v37, %s7996_s4 }
 0x4ab   :  { %v752_v39 = vpop.permute.xlu0 %751  ;;  %v829_v41 = vpop.permute.xlu1 %828 }
 0x4ac   :  { %v754_v40 = vsel %vm218_vm7, %v749_v38, %v752_v39  ;;  %v1021_v38 = vld [vmem:[#allocation2 + $0x2] sm:$0x1] }
 0x4ad   :  { %6829 = vmatmul.mubr.msk.f32.vlgmr.msra.gmra.mxu1 %vm221_vm8, %v754_v40 }
 0x4ae   :  { %6851 = vmatpush3.msra.mxu1 %v8495_v45  ;;  %6866 = vmatprep.mubr.msk.f32.mxu1 %vm7997_vm10, %v7993_v42 }
 0x4af   :  { %6852 = vmatprep.subr.mxu1 %v7993_v42  ;;  %v833_v43 = vpop.permute.xlu0 %832 }
 0x4b0   :  { %6853 = vmatpush3.msra.mxu1 %v8502_v47  ;;  %v835_v44 = vsel %vm218_vm7, %v829_v41, %v833_v43 }
 0x4b1   :  { %6854 = vmatprep.subr.mxu1 %v7993_v42  ;;  %6848 = vmatmul.mubr.msk.f32.vlgmr.msra.gmra.mxu0 %vm221_vm8, %v835_v44  ;;  %v909_v11 = vrot.slane %v835_v44, 1 }
 0x4b2   :  { %6855 = vmatpush3.msra.mxu1 %v8511_v48  ;;  %6870 = vmatpush3.msra.mxu0 %v8362_v27 }
 0x4b3   :  { %6856 = vmatprep.subr.mxu1 %v7993_v42  ;;  %6871 = vmatprep.subr.mxu0 %v7993_v42 }
 0x4b4   :  { %6857 = vmatpush3.msra.mxu1 %v8518_v49  ;;  %6872 = vmatpush3.msra.mxu0 %v8372_v9 }
 0x4b5   :  { %6858 = vmatprep.subr.mxu1 %v7993_v42  ;;  %6873 = vmatprep.subr.mxu0 %v7993_v42 }
 0x4b6   :  { %6859 = vmatpush3.msra.mxu1 %v8525_v50  ;;  %6874 = vmatpush3.msra.mxu0 %v8386_v12 }
 0x4b7   :  { %6860 = vmatprep.subr.mxu1 %v7993_v42  ;;  %6875 = vmatprep.subr.mxu0 %v7993_v42 }
 0x4b8   :  { %6861 = vmatpush3.msra.mxu1 %v8532_v51  ;;  %6876 = vmatpush3.msra.mxu0 %v8400_v14 }
 0x4b9   :  { %6862 = vmatprep.subr.mxu1 %v7993_v42  ;;  %6877 = vmatprep.subr.mxu0 %v7993_v42 }
 0x4ba   :  { %6863 = vmatpush3.msra.mxu1 %v8539_v52  ;;  %6878 = vmatpush3.msra.mxu0 %v8415_v16 }
 0x4bb   :  { %6864 = vmatprep.subr.mxu1 %v7993_v42  ;;  %6879 = vmatprep.subr.mxu0 %v7993_v42 }
 0x4bc   :  { %6865 = vmatpush3.msra.mxu1 %v8546_v53  ;;  %6880 = vmatpush3.msra.mxu0 %v8427_v18 }
 0x4bd   :  { %6867 = vmatmul.mubr.msk.f32.vlgmr.msra.gmra.mxu1 %vm221_vm8, %v909_v11  ;;  %6888 = vmatprep.subr.mxu1 %v7993_v42 }
 0x4be   :  { %6889 = vmatpush3.msra.mxu1 %v8355_v7  ;;  %6881 = vmatprep.subr.mxu0 %v7993_v42 }
 0x4bf   :  { %6890 = vmatprep.subr.mxu1 %v7993_v42  ;;  %6882 = vmatpush3.msra.mxu0 %v8441_v20 }
 0x4c0   :  { %6891 = vmatpush3.msra.mxu1 %v8367_v8  ;;  %6883 = vmatprep.subr.mxu0 %v7993_v42 }
 0x4c1   :  { %6892 = vmatprep.subr.mxu1 %v7993_v42  ;;  %6884 = vmatpush3.msra.mxu0 %v8455_v22 }
 0x4c2   :  { %6893 = vmatpush3.msra.mxu1 %v8379_v10  ;;  %6885 = vmatprep.mubr.msk.f32.mxu0 %vm7997_vm10, %v7993_v42 }
 0x4c3   :  { %6894 = vmatprep.subr.mxu1 %v7993_v42  ;;  %6907 = vmatprep.subr.mxu0 %v7993_v42 }
 0x4c4   :  { %6895 = vmatpush3.msra.mxu1 %v8391_v13  ;;  %6904 = vmatprep.mubr.msk.f32.mxu1 %vm7997_vm10, %v7993_v42 }
 0x4c5   :  { %6896 = vmatprep.subr.mxu1 %v7993_v42 }
 0x4c6   :  { %6897 = vmatpush3.msra.mxu1 %v8410_v15 }
 0x4c7   :  { %6898 = vmatprep.subr.mxu1 %v7993_v42 }
 0x4c8   :  { %6899 = vmatpush3.msra.mxu1 %v8420_v17 }
 0x4c9   :  { %6900 = vmatprep.subr.mxu1 %v7993_v42 }
 0x4ca   :  { %6901 = vmatpush3.msra.mxu1 %v8434_v19 }
 0x4cb   :  { %6902 = vmatprep.subr.mxu1 %v7993_v42 }
 0x4cc   :  { %6903 = vmatpush3.msra.mxu1 %v8448_v21 }
 0x4cd   :  { %6926 = vmatprep.subr.mxu1 %v7993_v42 }
 0x56d   :  { %v824_v46 = vpop.f32.mrf.mxu1 }
 0x56f   :  { %v6830_v54 = vpop.f32.mrf.mxu1 }
 0x571   :  { %v905_v55 = vpop.f32.mrf.mxu0 }
 0x572   :  { %v983_v57 = vrot.slane %v905_v55, 7 }
 0x573   :  { %v6849_v56 = vpop.f32.mrf.mxu0 }
 0x574   :  { %v988_v61 = vsel %vm172_vm5, %v824_v46, %v983_v57 }
 0x57d   :  { %v978_v58 = vpop.f32.mrf.mxu1 }
 0x57e   :  { %v986_v59 = vrot.slane %v978_v58, 6 }
 0x57f   :  { %v6868_v26 = vpop.f32.mrf.mxu1 }
 0x580   :  { %v989_v62 = vsel %vm160_vm2, %v988_v61, %v986_v59 }
 0x581   :  { %v990_v63 = vadd.f32 %v989_v62, %v8574_v60 }
 0x583   :  { %7853 = vtanh.f32 %v990_v63  ;;  %v5879_v1 = vmul.f32 -1.442695, %v990_v63 }
 0x585   :  { %7855 = vpow2.f32 %v5879_v1 }
 0x590   :  { %v7854_v0 = vpop.eup %7853 }
 0x591   :  { %1000 = vrot.lane.b32.xlu1 %v7854_v0, %s7995_s20 }
 0x592   :  { %v7856_v2 = vpop.eup %7855 }
 0x593   :  { %v994_v3 = vadd.f32 1.0, %v7856_v2 }
 0x595   :  { %7857 = vrcp.f32 %v994_v3 }
 0x5a2   :  { %v7858_v4 = vpop.eup %7857 }
 0x5a3   :  { %v998_v24 = vmul.f32 %v7858_v4, %v8669_v23 }
 0x603   :  { %v1001_v5 = vpop.permute.xlu1 %1000 }
 0x604   :  { %v1003_v6 = vmul.f32 %v7858_v4, %v1001_v5 }
 0x606   :  { %1005 = vrot.lane.b32.xlu0 %v1003_v6, %s7995_s20 }
 0x678   :  { %v1006_v25 = vpop.permute.xlu0 %1005 }
 0x679   :  { %v8672_v29 = vadd.f32 %v1006_v25, %v998_v24 }
 0x67b   :  { %7859 = vtanh.f32 %v8672_v29  ;;  %v8760_v6 = vsel %vm8677_vm12, %v8672_v29, %v8669_v23 }
 0x688   :  { %v7860_v30 = vpop.eup %7859 }
 0x689   :  { %1011 = vrot.lane.b32.xlu1 %v7860_v30, %s7995_s20 }
 0x6fb   :  { %v1012_v33 = vpop.permute.xlu1 %1011 }
 0x6fc   :  { %v1014_v34 = vmul.f32 %v7858_v4, %v1012_v33  ;;  %v1287_v33 = vsub.s32 2, %v8585_v31 }
 0x6fe   :  { %v8684_v28 = vsel %vm8677_vm12, %v1014_v34, %v8594_v36  ;;  %vm8768_vm13 = vcmp.ge.s32.totalorder %v1287_v33, 0 }
 0x6ff   :  { %1100 = vrot.lane.b32.xlu1 %v8684_v28, %s7994_s19  ;;  %1023 = vrot.lane.b32.xlu0 %v8684_v28, %s7996_s4  ;;  %v1103_v35 = vrot.slane %v8684_v28, 1 }
 0x703   :  { %1104 = vrot.lane.b32.xlu0 %v1103_v35, %s7996_s4 }
 0x771   :  { %v1024_v39 = vpop.permute.xlu0 %1023  ;;  %v1101_v36 = vpop.permute.xlu1 %1100 }
 0x772   :  { %v1026_v40 = vsel %vm218_vm7, %v1021_v38, %v1024_v39  ;;  %v1299_v39 = vld [vmem:[#allocation2 + $0x3] sm:$0x1] }
 0x773   :  { %6886 = vmatmul.mubr.msk.f32.vlgmr.msra.gmra.mxu0 %vm221_vm8, %v1026_v40 }
 0x774   :  { %6908 = vmatpush3.msra.mxu0 %v8495_v45  ;;  %6923 = vmatprep.mubr.msk.f32.mxu0 %vm7997_vm10, %v7993_v42 }
 0x775   :  { %6909 = vmatprep.subr.mxu0 %v7993_v42  ;;  %v1105_v41 = vpop.permute.xlu0 %1104 }
 0x776   :  { %6910 = vmatpush3.msra.mxu0 %v8502_v47  ;;  %v1107_v43 = vsel %vm218_vm7, %v1101_v36, %v1105_v41 }
 0x777   :  { %6911 = vmatprep.subr.mxu0 %v7993_v42  ;;  %6905 = vmatmul.mubr.msk.f32.vlgmr.msra.gmra.mxu1 %vm221_vm8, %v1107_v43  ;;  %v1181_v44 = vrot.slane %v1107_v43, 1 }
 0x778   :  { %6912 = vmatpush3.msra.mxu0 %v8511_v48  ;;  %6927 = vmatpush3.msra.mxu1 %v8362_v27 }
 0x779   :  { %6913 = vmatprep.subr.mxu0 %v7993_v42  ;;  %6928 = vmatprep.subr.mxu1 %v7993_v42 }
 0x77a   :  { %6914 = vmatpush3.msra.mxu0 %v8518_v49  ;;  %6929 = vmatpush3.msra.mxu1 %v8372_v9 }
 0x77b   :  { %6915 = vmatprep.subr.mxu0 %v7993_v42  ;;  %6930 = vmatprep.subr.mxu1 %v7993_v42 }
 0x77c   :  { %6916 = vmatpush3.msra.mxu0 %v8525_v50  ;;  %6931 = vmatpush3.msra.mxu1 %v8386_v12 }
 0x77d   :  { %6917 = vmatprep.subr.mxu0 %v7993_v42  ;;  %6932 = vmatprep.subr.mxu1 %v7993_v42 }
 0x77e   :  { %6918 = vmatpush3.msra.mxu0 %v8532_v51  ;;  %6933 = vmatpush3.msra.mxu1 %v8400_v14 }
 0x77f   :  { %6919 = vmatprep.subr.mxu0 %v7993_v42  ;;  %6934 = vmatprep.subr.mxu1 %v7993_v42 }
 0x780   :  { %6920 = vmatpush3.msra.mxu0 %v8539_v52  ;;  %6935 = vmatpush3.msra.mxu1 %v8415_v16 }
 0x781   :  { %6921 = vmatprep.subr.mxu0 %v7993_v42  ;;  %6936 = vmatprep.subr.mxu1 %v7993_v42 }
 0x782   :  { %6922 = vmatpush3.msra.mxu0 %v8546_v53  ;;  %6937 = vmatpush3.msra.mxu1 %v8427_v18 }
 0x783   :  { %6924 = vmatmul.mubr.msk.f32.vlgmr.msra.gmra.mxu0 %vm221_vm8, %v1181_v44  ;;  %6945 = vmatprep.subr.mxu0 %v7993_v42 }
 0x784   :  { %6946 = vmatpush3.msra.mxu0 %v8355_v7  ;;  %6938 = vmatprep.subr.mxu1 %v7993_v42 }
 0x785   :  { %6947 = vmatprep.subr.mxu0 %v7993_v42  ;;  %6939 = vmatpush3.msra.mxu1 %v8441_v20 }
 0x786   :  { %6948 = vmatpush3.msra.mxu0 %v8367_v8  ;;  %6940 = vmatprep.subr.mxu1 %v7993_v42 }
 0x787   :  { %6949 = vmatprep.subr.mxu0 %v7993_v42  ;;  %6941 = vmatpush3.msra.mxu1 %v8455_v22 }
 0x788   :  { %6950 = vmatpush3.msra.mxu0 %v8379_v10  ;;  %6942 = vmatprep.mubr.msk.f32.mxu1 %vm7997_vm10, %v7993_v42 }
 0x789   :  { %6951 = vmatprep.subr.mxu0 %v7993_v42  ;;  %6964 = vmatprep.subr.mxu1 %v7993_v42 }
 0x78a   :  { %6952 = vmatpush3.msra.mxu0 %v8391_v13  ;;  %6961 = vmatprep.mubr.msk.f32.mxu0 %vm7997_vm10, %v7993_v42 }
 0x78b   :  { %6953 = vmatprep.subr.mxu0 %v7993_v42 }
 0x78c   :  { %6954 = vmatpush3.msra.mxu0 %v8410_v15 }
 0x78d   :  { %6955 = vmatprep.subr.mxu0 %v7993_v42 }
 0x78e   :  { %6956 = vmatpush3.msra.mxu0 %v8420_v17 }
 0x78f   :  { %6957 = vmatprep.subr.mxu0 %v7993_v42 }
 0x790   :  { %6958 = vmatpush3.msra.mxu0 %v8434_v19 }
 0x791   :  { %6959 = vmatprep.subr.mxu0 %v7993_v42 }
 0x792   :  { %6960 = vmatpush3.msra.mxu0 %v8448_v21 }
 0x793   :  { %6983 = vmatprep.subr.mxu0 %v7993_v42 }
 0x833   :  { %v1096_v11 = vpop.f32.mrf.mxu0 }
 0x835   :  { %v6887_v46 = vpop.f32.mrf.mxu0 }
 0x837   :  { %v1177_v54 = vpop.f32.mrf.mxu1 }
 0x838   :  { %v1255_v56 = vrot.slane %v1177_v54, 7 }
 0x839   :  { %v6906_v55 = vpop.f32.mrf.mxu1 }
 0x83a   :  { %v1260_v59 = vsel %vm172_vm5, %v1096_v11, %v1255_v56 }
 0x843   :  { %v1250_v57 = vpop.f32.mrf.mxu0 }
 0x844   :  { %v1258_v58 = vrot.slane %v1250_v57, 6 }
 0x845   :  { %v6925_v61 = vpop.f32.mrf.mxu0 }
 0x846   :  { %v1261_v26 = vsel %vm160_vm2, %v1260_v59, %v1258_v58  ;;  %v1585_v58 = vsub.s32 3, %v8585_v31 }
 0x847   :  { %v1262_v62 = vadd.f32 %v1261_v26, %v8574_v60  ;;  %v9067_v26 = vld [vmem:[%s10336_s6 + $0xa8] sm:$0xff] }
 0x848   :  { %vm8860_vm15 = vcmp.ge.s32.totalorder %v1585_v58, 0 }
 0x849   :  { %7861 = vtanh.f32 %v1262_v62  ;;  %v5883_v0 = vmul.f32 -1.442695, %v1262_v62 }
 0x84b   :  { %7863 = vpow2.f32 %v5883_v0 }
 0x856   :  { %v7862_v63 = vpop.eup %7861 }
 0x857   :  { %1272 = vrot.lane.b32.xlu1 %v7862_v63, %s7995_s20 }
 0x858   :  { %v7864_v1 = vpop.eup %7863 }
 0x859   :  { %v1266_v2 = vadd.f32 1.0, %v7864_v1  ;;  %v1596_v1 = vld [vmem:[#allocation2 + $0x4] sm:$0x1] }
 0x85b   :  { %7865 = vrcp.f32 %v1266_v2 }
 0x868   :  { %v7866_v3 = vpop.eup %7865 }
 0x869   :  { %v1270_v24 = vmul.f32 %v7866_v3, %v8760_v6 }
 0x8c9   :  { %v1273_v4 = vpop.permute.xlu1 %1272 }
 0x8ca   :  { %v1275_v5 = vmul.f32 %v7866_v3, %v1273_v4 }
 0x8cc   :  { %1277 = vrot.lane.b32.xlu0 %v1275_v5, %s7995_s20 }
 0x93e   :  { %v1278_v25 = vpop.permute.xlu0 %1277 }
 0x93f   :  { %v8763_v30 = vadd.f32 %v1278_v25, %v1270_v24 }
 0x941   :  { %7867 = vtanh.f32 %v8763_v30  ;;  %v8852_v46 = vsel %vm8768_vm13, %v8763_v30, %v8760_v6 }
 0x94e   :  { %v7868_v32 = vpop.eup %7867 }
 0x94f   :  { %1283 = vrot.lane.b32.xlu1 %v7868_v32, %s7995_s20 }
 0x9c1   :  { %v1284_v34 = vpop.permute.xlu1 %1283 }
 0x9c2   :  { %v1286_v35 = vmul.f32 %v7866_v3, %v1284_v34 }
 0x9c4   :  { %v8775_v23 = vsel %vm8768_vm13, %v1286_v35, %v8684_v28 }
 0x9c5   :  { %1294 = vrot.lane.b32.xlu1 %v8775_v23, %s7994_s19  ;;  %1300 = vrot.lane.b32.xlu0 %v8775_v23, %s7996_s4  ;;  %v1385_v29 = vrot.slane %v8775_v23, 1 }
 0x9c9   :  { %1386 = vrot.lane.b32.xlu0 %v1385_v29, %s7996_s4 }
 0xa37   :  { %v1295_v37 = vpop.permute.xlu1 %1294  ;;  %v1301_v40 = vpop.permute.xlu0 %1300 }
 0xa38   :  { %1298 = vst.msk [vmem:[#allocation3 - $0x2] sm:$0x4] %vm1297_vm14, %v1295_v37  ;;  %v1303_v36 = vsel %vm218_vm7, %v1299_v39, %v1301_v40 }
 0xa39   :  { %6943 = vmatmul.mubr.msk.f32.vlgmr.msra.gmra.mxu1 %vm221_vm8, %v1303_v36  ;;  %v8921_v36 = vld [vmem:[%s10336_s6 + $0x38] sm:$0xff] }
 0xa3a   :  { %6965 = vmatpush3.msra.mxu1 %v8495_v45  ;;  %6980 = vmatprep.mubr.msk.f32.mxu1 %vm7997_vm10, %v7993_v42 }
 0xa3b   :  { %6966 = vmatprep.subr.mxu1 %v7993_v42  ;;  %v1387_v28 = vpop.permute.xlu0 %1386 }
 0xa3c   :  { %6967 = vmatpush3.msra.mxu1 %v8502_v47  ;;  %v1389_v41 = vsel %vm218_vm7, %v1295_v37, %v1387_v28  ;;  %v8926_v28 = vld [vmem:[%s10336_s6 + $0x30] sm:$0xff] }
 0xa3d   :  { %6968 = vmatprep.subr.mxu1 %v7993_v42  ;;  %6962 = vmatmul.mubr.msk.f32.vlgmr.msra.gmra.mxu0 %vm221_vm8, %v1389_v41 }
 0xa3e   :  { %6969 = vmatpush3.msra.mxu1 %v8511_v48  ;;  %6984 = vmatpush3.msra.mxu0 %v8362_v27  ;;  %v1479_v27 = vrot.slane %v1389_v41, 1  ;;  %v8932_v41 = vld [vmem:[%s10336_s6 + $0x78] sm:$0xff] }
 0xa3f   :  { %6970 = vmatprep.subr.mxu1 %v7993_v42  ;;  %6985 = vmatprep.subr.mxu0 %v7993_v42 }
 0xa40   :  { %6971 = vmatpush3.msra.mxu1 %v8518_v49  ;;  %6986 = vmatpush3.msra.mxu0 %v8372_v9 }
 0xa41   :  { %6972 = vmatprep.subr.mxu1 %v7993_v42  ;;  %6987 = vmatprep.subr.mxu0 %v7993_v42 }
 0xa42   :  { %6973 = vmatpush3.msra.mxu1 %v8525_v50  ;;  %6988 = vmatpush3.msra.mxu0 %v8386_v12 }
 0xa43   :  { %6974 = vmatprep.subr.mxu1 %v7993_v42  ;;  %6989 = vmatprep.subr.mxu0 %v7993_v42 }
 0xa44   :  { %6975 = vmatpush3.msra.mxu1 %v8532_v51  ;;  %6990 = vmatpush3.msra.mxu0 %v8400_v14 }
 0xa45   :  { %6976 = vmatprep.subr.mxu1 %v7993_v42  ;;  %6991 = vmatprep.subr.mxu0 %v7993_v42 }
 0xa46   :  { %6977 = vmatpush3.msra.mxu1 %v8539_v52  ;;  %6992 = vmatpush3.msra.mxu0 %v8415_v16 }
 0xa47   :  { %6978 = vmatprep.subr.mxu1 %v7993_v42  ;;  %6993 = vmatprep.subr.mxu0 %v7993_v42 }
 0xa48   :  { %6979 = vmatpush3.msra.mxu1 %v8546_v53  ;;  %6994 = vmatpush3.msra.mxu0 %v8427_v18 }
 0xa49   :  { %6981 = vmatmul.mubr.msk.f32.vlgmr.msra.gmra.mxu1 %vm221_vm8, %v1479_v27  ;;  %7002 = vmatprep.subr.mxu1 %v7993_v42  ;;  %v8937_v27 = vld [vmem:[%s10336_s6 + $0x70] sm:$0xff] }
 0xa4a   :  { %7003 = vmatpush3.msra.mxu1 %v8355_v7  ;;  %6995 = vmatprep.subr.mxu0 %v7993_v42 }
 0xa4b   :  { %7004 = vmatprep.subr.mxu1 %v7993_v42  ;;  %6996 = vmatpush3.msra.mxu0 %v8441_v20 }
 0xa4c   :  { %7005 = vmatpush3.msra.mxu1 %v8367_v8  ;;  %6997 = vmatprep.subr.mxu0 %v7993_v42 }
 0xa4d   :  { %7006 = vmatprep.subr.mxu1 %v7993_v42  ;;  %6998 = vmatpush3.msra.mxu0 %v8455_v22 }
 0xa4e   :  { %7007 = vmatpush3.msra.mxu1 %v8379_v10  ;;  %6999 = vmatprep.mubr.msk.f32.mxu0 %vm7997_vm10, %v7993_v42 }
 0xa4f   :  { %7008 = vmatprep.subr.mxu1 %v7993_v42  ;;  %7021 = vmatprep.subr.mxu0 %v7993_v42 }
 0xa50   :  { %7009 = vmatpush3.msra.mxu1 %v8391_v13  ;;  %7018 = vmatprep.mubr.msk.f32.mxu1 %vm7997_vm10, %v7993_v42 }
 0xa51   :  { %7010 = vmatprep.subr.mxu1 %v7993_v42 }
 0xa52   :  { %7011 = vmatpush3.msra.mxu1 %v8410_v15 }
 0xa53   :  { %7012 = vmatprep.subr.mxu1 %v7993_v42 }
 0xa54   :  { %7013 = vmatpush3.msra.mxu1 %v8420_v17 }
 0xa55   :  { %7014 = vmatprep.subr.mxu1 %v7993_v42 }
 0xa56   :  { %7015 = vmatpush3.msra.mxu1 %v8434_v19 }
 0xa57   :  { %7016 = vmatprep.subr.mxu1 %v7993_v42 }
 0xa58   :  { %7017 = vmatpush3.msra.mxu1 %v8448_v21 }
 0xa59   :  { %7040 = vmatprep.subr.mxu1 %v7993_v42 }
 0xaf9   :  { %v1381_v7 = vpop.f32.mrf.mxu1 }
 0xafb   :  { %v6944_v8 = vpop.f32.mrf.mxu1 }
 0xafc   :  { %v8952_v8 = vld [vmem:[%s10336_s6 + $0x20] sm:$0xff] }
 0xafd   :  { %v1467_v9 = vpop.f32.mrf.mxu0 }
 0xafe   :  { %v1553_v12 = vrot.slane %v1467_v9, 7  ;;  %v8958_v9 = vld [vmem:[%s10336_s6 + $0x68] sm:$0xff] }
 0xaff   :  { %v6963_v10 = vpop.f32.mrf.mxu0 }
 0xb00   :  { %v1558_v15 = vsel %vm172_vm5, %v1381_v7, %v1553_v12  ;;  %v8943_v7 = vld [vmem:[%s10336_s6 + $0x28] sm:$0xff]  ;;  %v8967_v12 = vld [vmem:[%s10336_s6 + $0x18] sm:$0xff] }
 0xb09   :  { %v1548_v13 = vpop.f32.mrf.mxu1 }
 0xb0a   :  { %v1556_v14 = vrot.slane %v1548_v13, 6  ;;  %v8972_v13 = vld [vmem:[%s10336_s6 + $0x60] sm:$0xff] }
 0xb0b   :  { %v6982_v16 = vpop.f32.mrf.mxu1 }
 0xb0c   :  { %v1559_v17 = vsel %vm160_vm2, %v1558_v15, %v1556_v14  ;;  %v8980_v14 = vld [vmem:[%s10336_s6 + $0x10] sm:$0xff]  ;;  %v8986_v15 = vld [vmem:[%s10336_s6 + $0x58] sm:$0xff]  ;;  %v8994_v16 = vld [vmem:[%s10336_s6 + $0x8] sm:$0xff] }
 0xb0d   :  { %v1560_v18 = vadd.f32 %v1559_v17, %v8574_v60  ;;  %v9003_v17 = vld [vmem:[%s10336_s6] sm:$0xff] }
 0xb0f   :  { %7869 = vtanh.f32 %v1560_v18  ;;  %v5903_v20 = vmul.f32 -1.442695, %v1560_v18  ;;  %v9013_v18 = vld [vmem:[%s10336_s6 + $0x50] sm:$0xff] }
 0xb11   :  { %7871 = vpow2.f32 %v5903_v20  ;;  %v9027_v20 = vld [vmem:[%s10336_s6 + $0x40] sm:$0xff] }
 0xb1c   :  { %v7870_v19 = vpop.eup %7869 }
 0xb1d   :  { %1570 = vrot.lane.b32.xlu1 %v7870_v19, %s7995_s20  ;;  %v9020_v19 = vld [vmem:[%s10336_s6 + $0x48] sm:$0xff] }
 0xb1e   :  { %v7872_v21 = vpop.eup %7871 }
 0xb1f   :  { %v1564_v22 = vadd.f32 1.0, %v7872_v21  ;;  %v1882_v21 = vsub.s32 4, %v8585_v31 }
 0xb21   :  { %7873 = vrcp.f32 %v1564_v22  ;;  %vm9032_vm0 = vcmp.ge.s32.totalorder %v1882_v21, 0 }
 0xb2e   :  { %v7874_v43 = vpop.eup %7873 }
 0xb2f   :  { %v1568_v54 = vmul.f32 %v7874_v43, %v8852_v46 }
 0xb8f   :  { %v1571_v44 = vpop.permute.xlu1 %1570 }
 0xb90   :  { %v1573_v11 = vmul.f32 %v7874_v43, %v1571_v44 }
 0xb92   :  { %1575 = vrot.lane.b32.xlu0 %v1573_v11, %s7995_s20 }
 0xc04   :  { %v1576_v55 = vpop.permute.xlu0 %1575 }
 0xc05   :  { %v8855_v56 = vadd.f32 %v1576_v55, %v1568_v54  ;;  %v1893_v55 = vld [vmem:[#allocation2 + $0x5] sm:$0x1] }
 0xc07   :  { %7875 = vtanh.f32 %v8855_v56  ;;  %v8912_v37 = vsel %vm8860_vm15, %v8855_v56, %v8852_v46 }
 0xc14   :  { %v7876_v57 = vpop.eup %7875 }
 0xc15   :  { %1581 = vrot.lane.b32.xlu1 %v7876_v57, %s7995_s20  ;;  %v9050_v57 = vld [vmem:[%s10336_s6 + $0xb8] sm:$0xff] }
 0xc87   :  { %v1582_v59 = vpop.permute.xlu1 %1581 }
 0xc88   :  { %v1584_v61 = vmul.f32 %v7874_v43, %v1582_v59  ;;  %v9058_v59 = vld [vmem:[%s10336_s6 + $0xb0] sm:$0xff] }
 0xc8a   :  { %v8867_v62 = vsel %vm8860_vm15, %v1584_v61, %v8775_v23 }
 0xc8b   :  { %1592 = vrot.lane.b32.xlu1 %v8867_v62, %s7994_s19  ;;  %1597 = vrot.lane.b32.xlu0 %v8867_v62, %s7996_s4  ;;  %v1682_v63 = vrot.slane %v8867_v62, 1 }
 0xc8f   :  { %1683 = vrot.lane.b32.xlu0 %v1682_v63, %s7996_s4  ;;  %v9076_v63 = vld [vmem:[%s10336_s6 + $0xa0] sm:$0xff] }
 0xcfd   :  { %v1593_v0 = vpop.permute.xlu1 %1592  ;;  %v1598_v2 = vpop.permute.xlu0 %1597 }
 0xcfe   :  { %1595 = vst.msk [vmem:[#allocation3 - $0x1] sm:$0x4] %vm1297_vm14, %v1593_v0  ;;  %v1600_v3 = vsel %vm218_vm7, %v1596_v1, %v1598_v2  ;;  %v9093_v1 = vld [vmem:[%s10336_s6 + $0x90] sm:$0xff]  ;;  %v9102_v2 = vld [vmem:[%s10336_s6 + $0x88] sm:$0xff] }
 0xcff   :  { %7000 = vmatmul.mubr.msk.f32.vlgmr.msra.gmra.mxu0 %vm221_vm8, %v1600_v3  ;;  %v9111_v3 = vld [vmem:[%s10336_s6 + $0x80] sm:$0xff] }
 0xd00   :  { %7022 = vmatpush3.msra.mxu0 %v8495_v45  ;;  %7037 = vmatprep.mubr.msk.f32.mxu0 %vm7997_vm10, %v7993_v42 }
 0xd01   :  { %7023 = vmatprep.subr.mxu0 %v7993_v42  ;;  %v1684_v4 = vpop.permute.xlu0 %1683 }
 0xd02   :  { %7024 = vmatpush3.msra.mxu0 %v8502_v47  ;;  %v1686_v5 = vsel %vm218_vm7, %v1593_v0, %v1684_v4  ;;  %v9084_v0 = vld [vmem:[%s10336_s6 + $0x98] sm:$0xff] }
 0xd03   :  { %7025 = vmatprep.subr.mxu0 %v7993_v42  ;;  %7019 = vmatmul.mubr.msk.f32.vlgmr.msra.gmra.mxu1 %vm221_vm8, %v1686_v5  ;;  %v1776_v45 = vrot.slane %v1686_v5, 1 }
 0xd04   :  { %7026 = vmatpush3.msra.mxu0 %v8511_v48  ;;  %7056 = vmatprep.mubr.msk.f32.mxu1 %vm7997_vm10, %v7993_v42 }
 0xd05   :  { %7027 = vmatprep.subr.mxu0 %v7993_v42  ;;  %7041 = vmatpush3.msra.mxu1 %v8921_v36 }
 0xd06   :  { %7028 = vmatpush3.msra.mxu0 %v8518_v49  ;;  %7042 = vmatprep.subr.mxu1 %v7993_v42 }
 0xd07   :  { %7029 = vmatprep.subr.mxu0 %v7993_v42  ;;  %7043 = vmatpush3.msra.mxu1 %v8926_v28 }
 0xd08   :  { %7030 = vmatpush3.msra.mxu0 %v8525_v50  ;;  %7044 = vmatprep.subr.mxu1 %v7993_v42 }
 0xd09   :  { %7031 = vmatprep.subr.mxu0 %v7993_v42  ;;  %7045 = vmatpush3.msra.mxu1 %v8943_v7 }
 0xd0a   :  { %7032 = vmatpush3.msra.mxu0 %v8532_v51  ;;  %7046 = vmatprep.subr.mxu1 %v7993_v42 }
 0xd0b   :  { %7033 = vmatprep.subr.mxu0 %v7993_v42  ;;  %7047 = vmatpush3.msra.mxu1 %v8952_v8 }
 0xd0c   :  { %7034 = vmatpush3.msra.mxu0 %v8539_v52  ;;  %7048 = vmatprep.subr.mxu1 %v7993_v42 }
 0xd0d   :  { %7035 = vmatprep.subr.mxu0 %v7993_v42  ;;  %7049 = vmatpush3.msra.mxu1 %v8967_v12 }
 0xd0e   :  { %7036 = vmatpush3.msra.mxu0 %v8546_v53  ;;  %7050 = vmatprep.subr.mxu1 %v7993_v42 }
 0xd0f   :  { %7038 = vmatmul.mubr.msk.f32.vlgmr.msra.gmra.mxu0 %vm221_vm8, %v1776_v45  ;;  %7059 = vmatprep.subr.mxu0 %v7993_v42 }
 0xd10   :  { %7075 = vmatprep.mubr.msk.f32.mxu0 %vm7997_vm10, %v7993_v42  ;;  %7060 = vmatpush3.msra.mxu0 %v8932_v41 }
 0xd11   :  { %7061 = vmatprep.subr.mxu0 %v7993_v42  ;;  %7051 = vmatpush3.msra.mxu1 %v8980_v14 }
 0xd12   :  { %7062 = vmatpush3.msra.mxu0 %v8937_v27  ;;  %7052 = vmatprep.subr.mxu1 %v7993_v42 }
 0xd13   :  { %7063 = vmatprep.subr.mxu0 %v7993_v42  ;;  %7053 = vmatpush3.msra.mxu1 %v8994_v16 }
 0xd14   :  { %7064 = vmatpush3.msra.mxu0 %v8958_v9  ;;  %7054 = vmatprep.subr.mxu1 %v7993_v42 }
 0xd15   :  { %7065 = vmatprep.subr.mxu0 %v7993_v42  ;;  %7055 = vmatpush3.msra.mxu1 %v9003_v17 }
 0xd16   :  { %7066 = vmatpush3.msra.mxu0 %v8972_v13  ;;  %7078 = vmatprep.subr.mxu1 %v7993_v42 }
 0xd17   :  { %7067 = vmatprep.subr.mxu0 %v7993_v42 }
 0xd18   :  { %7068 = vmatpush3.msra.mxu0 %v8986_v15 }
 0xd19   :  { %7069 = vmatprep.subr.mxu0 %v7993_v42 }
 0xd1a   :  { %7070 = vmatpush3.msra.mxu0 %v9013_v18 }
 0xd1b   :  { %7071 = vmatprep.subr.mxu0 %v7993_v42 }
 0xd1c   :  { %7072 = vmatpush3.msra.mxu0 %v9020_v19 }
 0xd1d   :  { %7073 = vmatprep.subr.mxu0 %v7993_v42 }
 0xd1e   :  { %7074 = vmatpush3.msra.mxu0 %v9027_v20 }
 0xd1f   :  { %7097 = vmatprep.subr.mxu0 %v7993_v42 }
 0xdbf   :  { %v1678_v47 = vpop.f32.mrf.mxu0 }
 0xdc1   :  { %v7001_v48 = vpop.f32.mrf.mxu0 }
 0xdc3   :  { %v1764_v49 = vpop.f32.mrf.mxu1 }
 0xdc4   :  { %v1850_v51 = vrot.slane %v1764_v49, 7 }
 0xdc5   :  { %v7020_v50 = vpop.f32.mrf.mxu1 }
 0xdc6   :  { %v1855_v52 = vsel %vm172_vm5, %v1678_v47, %v1850_v51 }
 0xdcf   :  { %v1845_v6 = vpop.f32.mrf.mxu0 }
 0xdd0   :  { %v1853_v24 = vrot.slane %v1845_v6, 6 }
 0xdd1   :  { %v7039_v25 = vpop.f32.mrf.mxu0 }
 0xdd2   :  { %v1856_v30 = vsel %vm160_vm2, %v1855_v52, %v1853_v24  ;;  %v9152_v25 = vld [vmem:[%s10338_s7] sm:$0x7] }
 0xdd3   :  { %v1857_v53 = vadd.f32 %v1856_v30, %v8574_v60 }
 0xdd5   :  { %7877 = vtanh.f32 %v1857_v53  ;;  %v5923_v33 = vmul.f32 -1.442695, %v1857_v53 }
 0xdd7   :  { %7879 = vpow2.f32 %v5923_v33 }
 0xde2   :  { %v7878_v32 = vpop.eup %7877 }
 0xde3   :  { %1867 = vrot.lane.b32.xlu1 %v7878_v32, %s7995_s20 }
 0xde4   :  { %v7880_v34 = vpop.eup %7879 }
 0xde5   :  { %v1861_v35 = vadd.f32 1.0, %v7880_v34 }
 0xde7   :  { %7881 = vrcp.f32 %v1861_v35 }
 0xdf4   :  { %v7882_v38 = vpop.eup %7881 }
 0xdf5   :  { %v1865_v60 = vmul.f32 %v7882_v38, %v8912_v37 }
 0xe55   :  { %v1868_v23 = vpop.permute.xlu1 %1867 }
 0xe56   :  { %v1870_v29 = vmul.f32 %v7882_v38, %v1868_v23 }
 0xe58   :  { %1872 = vrot.lane.b32.xlu0 %v1870_v29, %s7995_s20 }
 0xeca   :  { %v1873_v39 = vpop.permute.xlu0 %1872 }
 0xecb   :  { %v8915_v40 = vadd.f32 %v1873_v39, %v1865_v60 }
 0xecd   :  { %7883 = vtanh.f32 %v8915_v40  ;;  %v9161_v29 = vsel %vm9032_vm0, %v8915_v40, %v8912_v37 }
 0xeda   :  { %v7884_v10 = vpop.eup %7883 }
 0xedb   :  { %1878 = vrot.lane.b32.xlu1 %v7884_v10, %s7995_s20 }
 0xf4d   :  { %v1879_v22 = vpop.permute.xlu1 %1878 }
 0xf4e   :  { %v1881_v43 = vmul.f32 %v7882_v38, %v1879_v22  ;;  %v2179_v22 = vsub.s32 5, %v8585_v31 }
 0xf50   :  { %v9039_v11 = vsel %vm9032_vm0, %v1881_v43, %v8867_v62  ;;  %vm9169_vm1 = vcmp.ge.s32.totalorder %v2179_v22, 0 }
 0xf51   :  { %1889 = vrot.lane.b32.xlu1 %v9039_v11, %s7994_s19  ;;  %1894 = vrot.lane.b32.xlu0 %v9039_v11, %s7996_s4  ;;  %v1979_v46 = vrot.slane %v9039_v11, 1 }
 0xf55   :  { %1980 = vrot.lane.b32.xlu0 %v1979_v46, %s7996_s4 }
 0xfc3   :  { %v1890_v54 = vpop.permute.xlu1 %1889  ;;  %v1895_v56 = vpop.permute.xlu0 %1894 }
 0xfc4   :  { %1892 = vst.msk [vmem:[#allocation3] sm:$0x4] %vm1297_vm14, %v1890_v54  ;;  %v1897_v58 = vsel %vm218_vm7, %v1893_v55, %v1895_v56  ;;  %v2190_v55 = vld [vmem:[#allocation2 + $0x6] sm:$0x1] }
 0xfc5   :  { %7057 = vmatmul.mubr.msk.f32.vlgmr.msra.gmra.mxu1 %vm221_vm8, %v1897_v58 }
 0xfc6   :  { %7079 = vmatpush3.msra.mxu1 %v9050_v57  ;;  %7094 = vmatprep.mubr.msk.f32.mxu1 %vm7997_vm10, %v7993_v42 }
 0xfc7   :  { %7080 = vmatprep.subr.mxu1 %v7993_v42  ;;  %v1981_v61 = vpop.permute.xlu0 %1980 }
 0xfc8   :  { %7081 = vmatpush3.msra.mxu1 %v9058_v59  ;;  %v1983_v62 = vsel %vm218_vm7, %v1890_v54, %v1981_v61 }
 0xfc9   :  { %7082 = vmatprep.subr.mxu1 %v7993_v42  ;;  %7076 = vmatmul.mubr.msk.f32.vlgmr.msra.gmra.mxu0 %vm221_vm8, %v1983_v62  ;;  %v2073_v4 = vrot.slane %v1983_v62, 1 }
 0xfca   :  { %7083 = vmatpush3.msra.mxu1 %v9067_v26  ;;  %7098 = vmatpush3.msra.mxu0 %v8921_v36 }
 0xfcb   :  { %7084 = vmatprep.subr.mxu1 %v7993_v42  ;;  %7099 = vmatprep.subr.mxu0 %v7993_v42 }
 0xfcc   :  { %7085 = vmatpush3.msra.mxu1 %v9076_v63  ;;  %7100 = vmatpush3.msra.mxu0 %v8926_v28 }
 0xfcd   :  { %7086 = vmatprep.subr.mxu1 %v7993_v42  ;;  %7101 = vmatprep.subr.mxu0 %v7993_v42 }
 0xfce   :  { %7087 = vmatpush3.msra.mxu1 %v9084_v0  ;;  %7102 = vmatpush3.msra.mxu0 %v8943_v7 }
 0xfcf   :  { %7088 = vmatprep.subr.mxu1 %v7993_v42  ;;  %7103 = vmatprep.subr.mxu0 %v7993_v42 }
 0xfd0   :  { %7089 = vmatpush3.msra.mxu1 %v9093_v1  ;;  %7104 = vmatpush3.msra.mxu0 %v8952_v8 }
 0xfd1   :  { %7090 = vmatprep.subr.mxu1 %v7993_v42  ;;  %7105 = vmatprep.subr.mxu0 %v7993_v42 }
 0xfd2   :  { %7091 = vmatpush3.msra.mxu1 %v9102_v2  ;;  %7106 = vmatpush3.msra.mxu0 %v8967_v12 }
 0xfd3   :  { %7092 = vmatprep.subr.mxu1 %v7993_v42  ;;  %7107 = vmatprep.subr.mxu0 %v7993_v42 }
 0xfd4   :  { %7093 = vmatpush3.msra.mxu1 %v9111_v3  ;;  %7108 = vmatpush3.msra.mxu0 %v8980_v14 }
 0xfd5   :  { %7095 = vmatmul.mubr.msk.f32.vlgmr.msra.gmra.mxu1 %vm221_vm8, %v2073_v4  ;;  %7116 = vmatprep.subr.mxu1 %v7993_v42 }
 0xfd6   :  { %7117 = vmatpush3.msra.mxu1 %v8932_v41  ;;  %7109 = vmatprep.subr.mxu0 %v7993_v42 }
 0xfd7   :  { %7118 = vmatprep.subr.mxu1 %v7993_v42  ;;  %7110 = vmatpush3.msra.mxu0 %v8994_v16 }
 0xfd8   :  { %7119 = vmatpush3.msra.mxu1 %v8937_v27  ;;  %7111 = vmatprep.subr.mxu0 %v7993_v42 }
 0xfd9   :  { %7120 = vmatprep.subr.mxu1 %v7993_v42  ;;  %7112 = vmatpush3.msra.mxu0 %v9003_v17 }
 0xfda   :  { %7121 = vmatpush3.msra.mxu1 %v8958_v9  ;;  %7113 = vmatprep.mubr.msk.f32.mxu0 %vm7997_vm10, %v7993_v42 }
 0xfdb   :  { %7122 = vmatprep.subr.mxu1 %v7993_v42  ;;  %7135 = vmatprep.subr.mxu0 %v7993_v42 }
 0xfdc   :  { %7123 = vmatpush3.msra.mxu1 %v8972_v13  ;;  %7132 = vmatprep.mubr.msk.f32.mxu1 %vm7997_vm10, %v7993_v42 }
 0xfdd   :  { %7124 = vmatprep.subr.mxu1 %v7993_v42 }
 0xfde   :  { %7125 = vmatpush3.msra.mxu1 %v8986_v15 }
 0xfdf   :  { %7126 = vmatprep.subr.mxu1 %v7993_v42 }
 0xfe0   :  { %7127 = vmatpush3.msra.mxu1 %v9013_v18 }
 0xfe1   :  { %7128 = vmatprep.subr.mxu1 %v7993_v42 }
 0xfe2   :  { %7129 = vmatpush3.msra.mxu1 %v9020_v19 }
 0xfe3   :  { %7130 = vmatprep.subr.mxu1 %v7993_v42 }
 0xfe4   :  { %7131 = vmatpush3.msra.mxu1 %v9027_v20 }
 0xfe5   :  { %7154 = vmatprep.subr.mxu1 %v7993_v42 }
0x1085   :  { %v1975_v5 = vpop.f32.mrf.mxu1 }
0x1087   :  { %v7058_v45 = vpop.f32.mrf.mxu1 }
0x1089   :  { %v2061_v47 = vpop.f32.mrf.mxu0 }
0x108a   :  { %v2147_v49 = vrot.slane %v2061_v47, 7 }
0x108b   :  { %v7077_v48 = vpop.f32.mrf.mxu0 }
0x108c   :  { %v2152_v6 = vsel %vm172_vm5, %v1975_v5, %v2147_v49 }
0x1095   :  { %v2142_v50 = vpop.f32.mrf.mxu1 }
0x1096   :  { %v2150_v51 = vrot.slane %v2142_v50, 6 }
0x1097   :  { %v7096_v24 = vpop.f32.mrf.mxu1 }
0x1098   :  { %v2153_v52 = vsel %vm160_vm2, %v2152_v6, %v2150_v51 }
0x1099   :  { %v2154_v30 = vadd.f32 %v9152_v25, %v2153_v52 }
0x109b   :  { %7885 = vtanh.f32 %v2154_v30  ;;  %v5943_v32 = vmul.f32 -1.442695, %v2154_v30 }
0x109d   :  { %7887 = vpow2.f32 %v5943_v32 }
0x10a8   :  { %v7886_v53 = vpop.eup %7885 }
0x10a9   :  { %2164 = vrot.lane.b32.xlu1 %v7886_v53, %s7995_s20 }
0x10aa   :  { %v7888_v33 = vpop.eup %7887 }
0x10ab   :  { %v2158_v34 = vadd.f32 1.0, %v7888_v33 }
0x10ad   :  { %7889 = vrcp.f32 %v2158_v34 }
0x10ba   :  { %v7890_v35 = vpop.eup %7889 }
0x10bb   :  { %v2162_v60 = vmul.f32 %v7890_v35, %v9161_v29 }
0x111b   :  { %v2165_v38 = vpop.permute.xlu1 %2164 }
0x111c   :  { %v2167_v23 = vmul.f32 %v7890_v35, %v2165_v38 }
0x111e   :  { %2169 = vrot.lane.b32.xlu0 %v2167_v23, %s7995_s20 }
0x1190   :  { %v2170_v39 = vpop.permute.xlu0 %2169 }
0x1191   :  { %v9164_v10 = vadd.f32 %v2170_v39, %v2162_v60 }
0x1193   :  { %7891 = vtanh.f32 %v9164_v10  ;;  %v9253_v23 = vsel %vm9169_vm1, %v9164_v10, %v9161_v29 }
0x11a0   :  { %v7892_v21 = vpop.eup %7891 }
0x11a1   :  { %2175 = vrot.lane.b32.xlu1 %v7892_v21, %s7995_s20 }
0x1213   :  { %v2176_v43 = vpop.permute.xlu1 %2175 }
0x1214   :  { %v2178_v46 = vmul.f32 %v7890_v35, %v2176_v43  ;;  %v2476_v43 = vsub.s32 6, %v8585_v31 }
0x1216   :  { %v9176_v37 = vsel %vm9169_vm1, %v2178_v46, %v9039_v11  ;;  %vm9261_vm3 = vcmp.ge.s32.totalorder %v2476_v43, 0 }
0x1217   :  { %2186 = vrot.lane.b32.xlu1 %v9176_v37, %s7994_s19  ;;  %2191 = vrot.lane.b32.xlu0 %v9176_v37, %s7996_s4  ;;  %v2276_v40 = vrot.slane %v9176_v37, 1 }
0x121b   :  { %2277 = vrot.lane.b32.xlu0 %v2276_v40, %s7996_s4 }
0x1289   :  { %v2187_v44 = vpop.permute.xlu1 %2186  ;;  %v2192_v56 = vpop.permute.xlu0 %2191 }
0x128a   :  { %2189 = vst.msk [vmem:[#allocation3 + $0x1] sm:$0x4] %vm1297_vm14, %v2187_v44  ;;  %v2194_v58 = vsel %vm218_vm7, %v2190_v55, %v2192_v56  ;;  %v2487_v55 = vld [vmem:[#allocation2 + $0x7] sm:$0x1] }
0x128b   :  { %7114 = vmatmul.mubr.msk.f32.vlgmr.msra.gmra.mxu0 %vm221_vm8, %v2194_v58 }
0x128c   :  { %7136 = vmatpush3.msra.mxu0 %v9050_v57  ;;  %7151 = vmatprep.mubr.msk.f32.mxu0 %vm7997_vm10, %v7993_v42 }
0x128d   :  { %7137 = vmatprep.subr.mxu0 %v7993_v42  ;;  %v2278_v11 = vpop.permute.xlu0 %2277 }
0x128e   :  { %7138 = vmatpush3.msra.mxu0 %v9058_v59  ;;  %v2280_v61 = vsel %vm218_vm7, %v2187_v44, %v2278_v11 }
0x128f   :  { %7139 = vmatprep.subr.mxu0 %v7993_v42  ;;  %7133 = vmatmul.mubr.msk.f32.vlgmr.msra.gmra.mxu1 %vm221_vm8, %v2280_v61  ;;  %v2370_v62 = vrot.slane %v2280_v61, 1 }
0x1290   :  { %7140 = vmatpush3.msra.mxu0 %v9067_v26  ;;  %7155 = vmatpush3.msra.mxu1 %v8921_v36 }
0x1291   :  { %7141 = vmatprep.subr.mxu0 %v7993_v42  ;;  %7156 = vmatprep.subr.mxu1 %v7993_v42 }
0x1292   :  { %7142 = vmatpush3.msra.mxu0 %v9076_v63  ;;  %7157 = vmatpush3.msra.mxu1 %v8926_v28 }
0x1293   :  { %7143 = vmatprep.subr.mxu0 %v7993_v42  ;;  %7158 = vmatprep.subr.mxu1 %v7993_v42 }
0x1294   :  { %7144 = vmatpush3.msra.mxu0 %v9084_v0  ;;  %7159 = vmatpush3.msra.mxu1 %v8943_v7 }
0x1295   :  { %7145 = vmatprep.subr.mxu0 %v7993_v42  ;;  %7160 = vmatprep.subr.mxu1 %v7993_v42 }
0x1296   :  { %7146 = vmatpush3.msra.mxu0 %v9093_v1  ;;  %7161 = vmatpush3.msra.mxu1 %v8952_v8 }
0x1297   :  { %7147 = vmatprep.subr.mxu0 %v7993_v42  ;;  %7162 = vmatprep.subr.mxu1 %v7993_v42 }
0x1298   :  { %7148 = vmatpush3.msra.mxu0 %v9102_v2  ;;  %7163 = vmatpush3.msra.mxu1 %v8967_v12 }
0x1299   :  { %7149 = vmatprep.subr.mxu0 %v7993_v42  ;;  %7164 = vmatprep.subr.mxu1 %v7993_v42 }
0x129a   :  { %7150 = vmatpush3.msra.mxu0 %v9111_v3  ;;  %7165 = vmatpush3.msra.mxu1 %v8980_v14 }
0x129b   :  { %7152 = vmatmul.mubr.msk.f32.vlgmr.msra.gmra.mxu0 %vm221_vm8, %v2370_v62  ;;  %7173 = vmatprep.subr.mxu0 %v7993_v42 }
0x129c   :  { %7174 = vmatpush3.msra.mxu0 %v8932_v41  ;;  %7166 = vmatprep.subr.mxu1 %v7993_v42 }
0x129d   :  { %7175 = vmatprep.subr.mxu0 %v7993_v42  ;;  %7167 = vmatpush3.msra.mxu1 %v8994_v16 }
0x129e   :  { %7176 = vmatpush3.msra.mxu0 %v8937_v27  ;;  %7168 = vmatprep.subr.mxu1 %v7993_v42 }
0x129f   :  { %7177 = vmatprep.subr.mxu0 %v7993_v42  ;;  %7169 = vmatpush3.msra.mxu1 %v9003_v17 }
0x12a0   :  { %7178 = vmatpush3.msra.mxu0 %v8958_v9  ;;  %7170 = vmatprep.mubr.msk.f32.mxu1 %vm7997_vm10, %v7993_v42 }
0x12a1   :  { %7179 = vmatprep.subr.mxu0 %v7993_v42  ;;  %7192 = vmatprep.subr.mxu1 %v7993_v42 }
0x12a2   :  { %7180 = vmatpush3.msra.mxu0 %v8972_v13  ;;  %7189 = vmatprep.mubr.msk.f32.mxu0 %vm7997_vm10, %v7993_v42 }
0x12a3   :  { %7181 = vmatprep.subr.mxu0 %v7993_v42 }
0x12a4   :  { %7182 = vmatpush3.msra.mxu0 %v8986_v15 }
0x12a5   :  { %7183 = vmatprep.subr.mxu0 %v7993_v42 }
0x12a6   :  { %7184 = vmatpush3.msra.mxu0 %v9013_v18 }
0x12a7   :  { %7185 = vmatprep.subr.mxu0 %v7993_v42 }
0x12a8   :  { %7186 = vmatpush3.msra.mxu0 %v9020_v19 }
0x12a9   :  { %7187 = vmatprep.subr.mxu0 %v7993_v42 }
0x12aa   :  { %7188 = vmatpush3.msra.mxu0 %v9027_v20 }
0x12ab   :  { %7211 = vmatprep.subr.mxu0 %v7993_v42 }
0x134b   :  { %v2272_v4 = vpop.f32.mrf.mxu0 }
0x134d   :  { %v7115_v5 = vpop.f32.mrf.mxu0 }
0x134f   :  { %v2358_v45 = vpop.f32.mrf.mxu1 }
0x1350   :  { %v2444_v48 = vrot.slane %v2358_v45, 7 }
0x1351   :  { %v7134_v47 = vpop.f32.mrf.mxu1 }
0x1352   :  { %v2449_v51 = vsel %vm172_vm5, %v2272_v4, %v2444_v48 }
0x135b   :  { %v2439_v49 = vpop.f32.mrf.mxu0 }
0x135c   :  { %v2447_v50 = vrot.slane %v2439_v49, 6 }
0x135d   :  { %v7153_v6 = vpop.f32.mrf.mxu0 }
0x135e   :  { %v2450_v24 = vsel %vm160_vm2, %v2449_v51, %v2447_v50 }
0x135f   :  { %v2451_v52 = vadd.f32 %v9152_v25, %v2450_v24 }
0x1361   :  { %7893 = vtanh.f32 %v2451_v52  ;;  %v5963_v53 = vmul.f32 -1.442695, %v2451_v52 }
0x1363   :  { %7895 = vpow2.f32 %v5963_v53 }
0x136e   :  { %v7894_v30 = vpop.eup %7893 }
0x136f   :  { %2461 = vrot.lane.b32.xlu1 %v7894_v30, %s7995_s20 }
0x1370   :  { %v7896_v32 = vpop.eup %7895 }
0x1371   :  { %v2455_v33 = vadd.f32 1.0, %v7896_v32 }
0x1373   :  { %7897 = vrcp.f32 %v2455_v33 }
0x1380   :  { %v7898_v34 = vpop.eup %7897 }
0x1381   :  { %v2459_v60 = vmul.f32 %v7898_v34, %v9253_v23 }
0x13e1   :  { %v2462_v35 = vpop.permute.xlu1 %2461 }
0x13e2   :  { %v2464_v38 = vmul.f32 %v7898_v34, %v2462_v35 }
0x13e4   :  { %2466 = vrot.lane.b32.xlu0 %v2464_v38, %s7995_s20 }
0x1456   :  { %v2467_v39 = vpop.permute.xlu0 %2466 }
0x1457   :  { %v9256_v21 = vadd.f32 %v2467_v39, %v2459_v60 }
0x1459   :  { %7899 = vtanh.f32 %v9256_v21  ;;  %v2481_v38 = vsel %vm9261_vm3, %v9256_v21, %v9253_v23  ;;  %v2784_v23 = vld [vmem:[#allocation2 + $0x8] sm:$0x1] }
0x1466   :  { %v7900_v22 = vpop.eup %7899 }
0x1467   :  { %2472 = vrot.lane.b32.xlu1 %v7900_v22, %s7995_s20 }
0x14d9   :  { %v2473_v46 = vpop.permute.xlu1 %2472 }
0x14da   :  { %v2475_v40 = vmul.f32 %v7898_v34, %v2473_v46 }
0x14dc   :  { %v2480_v29 = vsel %vm9261_vm3, %v2475_v40, %v9176_v37 }
0x14dd   :  { %2483 = vrot.lane.b32.xlu1 %v2480_v29, %s7994_s19  ;;  %2488 = vrot.lane.b32.xlu0 %v2480_v29, %s7996_s4  ;;  %v2573_v10 = vrot.slane %v2480_v29, 1 }
0x14e1   :  { %2574 = vrot.lane.b32.xlu0 %v2573_v10, %s7996_s4 }
0x154f   :  { %v2484_v54 = vpop.permute.xlu1 %2483  ;;  %v2489_v56 = vpop.permute.xlu0 %2488 }
0x1550   :  { %2486 = vst.msk [vmem:[#allocation3 + $0x2] sm:$0x4] %vm1297_vm14, %v2484_v54  ;;  %v2491_v58 = vsel %vm218_vm7, %v2487_v55, %v2489_v56 }
0x1551   :  { %7171 = vmatmul.mubr.msk.f32.vlgmr.msra.gmra.mxu1 %vm221_vm8, %v2491_v58 }
0x1552   :  { %7193 = vmatpush3.msra.mxu1 %v9050_v57  ;;  %7208 = vmatprep.mubr.msk.f32.mxu1 %vm7997_vm10, %v7993_v42 }
0x1553   :  { %7194 = vmatprep.subr.mxu1 %v7993_v42  ;;  %v2575_v37 = vpop.permute.xlu0 %2574 }
0x1554   :  { %7195 = vmatpush3.msra.mxu1 %v9058_v59  ;;  %v2577_v11 = vsel %vm218_vm7, %v2484_v54, %v2575_v37 }
0x1555   :  { %7196 = vmatprep.subr.mxu1 %v7993_v42  ;;  %7190 = vmatmul.mubr.msk.f32.vlgmr.msra.gmra.mxu0 %vm221_vm8, %v2577_v11  ;;  %v2667_v61 = vrot.slane %v2577_v11, 1 }
0x1556   :  { %7197 = vmatpush3.msra.mxu1 %v9067_v26  ;;  %7212 = vmatpush3.msra.mxu0 %v8921_v36 }
0x1557   :  { %7198 = vmatprep.subr.mxu1 %v7993_v42  ;;  %7213 = vmatprep.subr.mxu0 %v7993_v42 }
0x1558   :  { %7199 = vmatpush3.msra.mxu1 %v9076_v63  ;;  %7214 = vmatpush3.msra.mxu0 %v8926_v28 }
0x1559   :  { %7200 = vmatprep.subr.mxu1 %v7993_v42  ;;  %7215 = vmatprep.subr.mxu0 %v7993_v42 }
0x155a   :  { %7201 = vmatpush3.msra.mxu1 %v9084_v0  ;;  %7216 = vmatpush3.msra.mxu0 %v8943_v7 }
0x155b   :  { %7202 = vmatprep.subr.mxu1 %v7993_v42  ;;  %7217 = vmatprep.subr.mxu0 %v7993_v42 }
0x155c   :  { %7203 = vmatpush3.msra.mxu1 %v9093_v1  ;;  %7218 = vmatpush3.msra.mxu0 %v8952_v8 }
0x155d   :  { %7204 = vmatprep.subr.mxu1 %v7993_v42  ;;  %7219 = vmatprep.subr.mxu0 %v7993_v42 }
0x155e   :  { %7205 = vmatpush3.msra.mxu1 %v9102_v2  ;;  %7220 = vmatpush3.msra.mxu0 %v8967_v12 }
0x155f   :  { %7206 = vmatprep.subr.mxu1 %v7993_v42  ;;  %7221 = vmatprep.subr.mxu0 %v7993_v42 }
0x1560   :  { %7207 = vmatpush3.msra.mxu1 %v9111_v3  ;;  %7222 = vmatpush3.msra.mxu0 %v8980_v14 }
0x1561   :  { %7209 = vmatmul.mubr.msk.f32.vlgmr.msra.gmra.mxu1 %vm221_vm8, %v2667_v61  ;;  %7230 = vmatprep.subr.mxu1 %v7993_v42 }
0x1562   :  { %7231 = vmatpush3.msra.mxu1 %v8932_v41  ;;  %7223 = vmatprep.subr.mxu0 %v7993_v42 }
0x1563   :  { %7232 = vmatprep.subr.mxu1 %v7993_v42  ;;  %7224 = vmatpush3.msra.mxu0 %v8994_v16 }
0x1564   :  { %7233 = vmatpush3.msra.mxu1 %v8937_v27  ;;  %7225 = vmatprep.subr.mxu0 %v7993_v42 }
0x1565   :  { %7234 = vmatprep.subr.mxu1 %v7993_v42  ;;  %7226 = vmatpush3.msra.mxu0 %v9003_v17 }
0x1566   :  { %7235 = vmatpush3.msra.mxu1 %v8958_v9  ;;  %7227 = vmatprep.mubr.msk.f32.mxu0 %vm7997_vm10, %v7993_v42 }
0x1567   :  { %7236 = vmatprep.subr.mxu1 %v7993_v42  ;;  %7249 = vmatprep.subr.mxu0 %v7993_v42 }
0x1568   :  { %7237 = vmatpush3.msra.mxu1 %v8972_v13  ;;  %7246 = vmatprep.mubr.msk.f32.mxu1 %vm7997_vm10, %v7993_v42 }
0x1569   :  { %7238 = vmatprep.subr.mxu1 %v7993_v42 }
0x156a   :  { %7239 = vmatpush3.msra.mxu1 %v8986_v15 }
0x156b   :  { %7240 = vmatprep.subr.mxu1 %v7993_v42 }
0x156c   :  { %7241 = vmatpush3.msra.mxu1 %v9013_v18 }
0x156d   :  { %7242 = vmatprep.subr.mxu1 %v7993_v42 }
0x156e   :  { %7243 = vmatpush3.msra.mxu1 %v9020_v19 }
0x156f   :  { %7244 = vmatprep.subr.mxu1 %v7993_v42 }
0x1570   :  { %7245 = vmatpush3.msra.mxu1 %v9027_v20 }
0x1571   :  { %7268 = vmatprep.subr.mxu1 %v7993_v42 }
0x1611   :  { %v2569_v62 = vpop.f32.mrf.mxu1 }
0x1613   :  { %v7172_v4 = vpop.f32.mrf.mxu1 }
0x1615   :  { %v2655_v5 = vpop.f32.mrf.mxu0 }
0x1616   :  { %v2741_v47 = vrot.slane %v2655_v5, 7 }
0x1617   :  { %v7191_v45 = vpop.f32.mrf.mxu0 }
0x1618   :  { %v2746_v50 = vsel %vm172_vm5, %v2569_v62, %v2741_v47 }
0x1621   :  { %v2736_v48 = vpop.f32.mrf.mxu1 }
0x1622   :  { %v2744_v49 = vrot.slane %v2736_v48, 6 }
0x1623   :  { %v7210_v51 = vpop.f32.mrf.mxu1 }
0x1624   :  { %v2747_v6 = vsel %vm160_vm2, %v2746_v50, %v2744_v49  ;;  %v3081_v49 = vld [vmem:[#allocation2 + $0x9] sm:$0x1] }
0x1625   :  { %v2748_v24 = vadd.f32 %v9152_v25, %v2747_v6 }
0x1627   :  { %7901 = vtanh.f32 %v2748_v24  ;;  %v5983_v30 = vmul.f32 -1.442695, %v2748_v24 }
0x1629   :  { %7903 = vpow2.f32 %v5983_v30 }
0x1634   :  { %v7902_v52 = vpop.eup %7901 }
0x1635   :  { %2758 = vrot.lane.b32.xlu1 %v7902_v52, %s7995_s20 }
0x1636   :  { %v7904_v53 = vpop.eup %7903 }
0x1637   :  { %v2752_v32 = vadd.f32 1.0, %v7904_v53 }
0x1639   :  { %7905 = vrcp.f32 %v2752_v32 }
0x1646   :  { %v7906_v33 = vpop.eup %7905 }
0x1647   :  { %v2756_v60 = vmul.f32 %v7906_v33, %v2481_v38 }
0x16a7   :  { %v2759_v34 = vpop.permute.xlu1 %2758 }
0x16a8   :  { %v2761_v35 = vmul.f32 %v7906_v33, %v2759_v34 }
0x16aa   :  { %2763 = vrot.lane.b32.xlu0 %v2761_v35, %s7995_s20 }
0x171c   :  { %v2764_v39 = vpop.permute.xlu0 %2763 }
0x171d   :  { %v9340_v22 = vadd.f32 %v2764_v39, %v2756_v60 }
0x171f   :  { %7907 = vtanh.f32 %v9340_v22 }
0x172c   :  { %v7908_v43 = vpop.eup %7907 }
0x172d   :  { %2769 = vrot.lane.b32.xlu1 %v7908_v43, %s7995_s20 }
0x179f   :  { %v2770_v46 = vpop.permute.xlu1 %2769 }
0x17a0   :  { %v2772_v40 = vmul.f32 %v7906_v33, %v2770_v46 }
0x17a2   :  { %2780 = vrot.lane.b32.xlu1 %v2772_v40, %s7994_s19  ;;  %2785 = vrot.lane.b32.xlu0 %v2772_v40, %s7996_s4  ;;  %v2870_v29 = vrot.slane %v2772_v40, 1 }
0x17a6   :  { %2871 = vrot.lane.b32.xlu0 %v2870_v29, %s7996_s4  ;;  %v9465_v29 = vld [vmem:[%s10336_s6 + $0x30] sm:$0xff] }
0x1814   :  { %v2781_v44 = vpop.permute.xlu1 %2780  ;;  %v2786_v21 = vpop.permute.xlu0 %2785 }
0x1815   :  { %2783 = vst.msk [vmem:[#allocation3 + $0x3] sm:$0x4] %vm1297_vm14, %v2781_v44  ;;  %v2788_v10 = vsel %vm218_vm7, %v2784_v23, %v2786_v21  ;;  %v9476_v23 = vld [vmem:[%s10336_s6 + $0x70] sm:$0xff]  ;;  %v9482_v21 = vld [vmem:[%s10336_s6 + $0x28] sm:$0xff] }
0x1816   :  { %7228 = vmatmul.mubr.msk.f32.vlgmr.msra.gmra.mxu0 %vm221_vm8, %v2788_v10  ;;  %v9490_v10 = vld [vmem:[%s10336_s6 + $0x68] sm:$0xff] }
0x1817   :  { %7250 = vmatpush3.msra.mxu0 %v9050_v57  ;;  %7265 = vmatprep.mubr.msk.f32.mxu0 %vm7997_vm10, %v7993_v42 }
0x1818   :  { %7251 = vmatprep.subr.mxu0 %v7993_v42  ;;  %v2872_v54 = vpop.permute.xlu0 %2871 }
0x1819   :  { %7252 = vmatpush3.msra.mxu0 %v9058_v59  ;;  %v2874_v55 = vsel %vm218_vm7, %v2781_v44, %v2872_v54  ;;  %v9471_v44 = vld [vmem:[%s10336_s6 + $0x78] sm:$0xff]  ;;  %v9496_v54 = vld [vmem:[%s10336_s6 + $0x20] sm:$0xff] }
0x181a   :  { %7253 = vmatprep.subr.mxu0 %v7993_v42  ;;  %7247 = vmatmul.mubr.msk.f32.vlgmr.msra.gmra.mxu1 %vm221_vm8, %v2874_v55 }
0x181b   :  { %7254 = vmatpush3.msra.mxu0 %v9067_v26  ;;  %7269 = vmatpush3.msra.mxu1 %v8921_v36  ;;  %v2964_v36 = vrot.slane %v2874_v55, 1 }
0x181c   :  { %7255 = vmatprep.subr.mxu0 %v7993_v42  ;;  %7270 = vmatprep.subr.mxu1 %v7993_v42 }
0x181d   :  { %7256 = vmatpush3.msra.mxu0 %v9076_v63  ;;  %7271 = vmatpush3.msra.mxu1 %v8926_v28 }
0x181e   :  { %7257 = vmatprep.subr.mxu0 %v7993_v42  ;;  %7272 = vmatprep.subr.mxu1 %v7993_v42 }
0x181f   :  { %7258 = vmatpush3.msra.mxu0 %v9084_v0  ;;  %7273 = vmatpush3.msra.mxu1 %v8943_v7 }
0x1820   :  { %7259 = vmatprep.subr.mxu0 %v7993_v42  ;;  %7274 = vmatprep.subr.mxu1 %v7993_v42 }
0x1821   :  { %7260 = vmatpush3.msra.mxu0 %v9093_v1  ;;  %7275 = vmatpush3.msra.mxu1 %v8952_v8 }
0x1822   :  { %7261 = vmatprep.subr.mxu0 %v7993_v42  ;;  %7276 = vmatprep.subr.mxu1 %v7993_v42 }
0x1823   :  { %7262 = vmatpush3.msra.mxu0 %v9102_v2  ;;  %7277 = vmatpush3.msra.mxu1 %v8967_v12 }
0x1824   :  { %7263 = vmatprep.subr.mxu0 %v7993_v42  ;;  %7278 = vmatprep.subr.mxu1 %v7993_v42 }
0x1825   :  { %7264 = vmatpush3.msra.mxu0 %v9111_v3  ;;  %7279 = vmatpush3.msra.mxu1 %v8980_v14 }
0x1826   :  { %7266 = vmatmul.mubr.msk.f32.vlgmr.msra.gmra.mxu0 %vm221_vm8, %v2964_v36  ;;  %7287 = vmatprep.subr.mxu0 %v7993_v42  ;;  %v9505_v36 = vld [vmem:[%s10336_s6 + $0x18] sm:$0xff] }
0x1827   :  { %7288 = vmatpush3.msra.mxu0 %v8932_v41  ;;  %7280 = vmatprep.subr.mxu1 %v7993_v42 }
0x1828   :  { %7289 = vmatprep.subr.mxu0 %v7993_v42  ;;  %7281 = vmatpush3.msra.mxu1 %v8994_v16 }
0x1829   :  { %7290 = vmatpush3.msra.mxu0 %v8937_v27  ;;  %7282 = vmatprep.subr.mxu1 %v7993_v42 }
0x182a   :  { %7291 = vmatprep.subr.mxu0 %v7993_v42  ;;  %7283 = vmatpush3.msra.mxu1 %v9003_v17 }
0x182b   :  { %7292 = vmatpush3.msra.mxu0 %v8958_v9  ;;  %7284 = vmatprep.mubr.msk.f32.mxu1 %vm7997_vm10, %v7993_v42 }
0x182c   :  { %7293 = vmatprep.subr.mxu0 %v7993_v42  ;;  %7306 = vmatprep.subr.mxu1 %v7993_v42 }
0x182d   :  { %7294 = vmatpush3.msra.mxu0 %v8972_v13  ;;  %7303 = vmatprep.mubr.msk.f32.mxu0 %vm7997_vm10, %v7993_v42 }
0x182e   :  { %7295 = vmatprep.subr.mxu0 %v7993_v42 }
0x182f   :  { %7296 = vmatpush3.msra.mxu0 %v8986_v15 }
0x1830   :  { %7297 = vmatprep.subr.mxu0 %v7993_v42 }
0x1831   :  { %7298 = vmatpush3.msra.mxu0 %v9013_v18 }
0x1832   :  { %7299 = vmatprep.subr.mxu0 %v7993_v42 }
0x1833   :  { %7300 = vmatpush3.msra.mxu0 %v9020_v19 }
0x1834   :  { %7301 = vmatprep.subr.mxu0 %v7993_v42 }
0x1835   :  { %7302 = vmatpush3.msra.mxu0 %v9027_v20 }
0x1836   :  { %7325 = vmatprep.subr.mxu0 %v7993_v42 }
0x18d6   :  { %v2866_v28 = vpop.f32.mrf.mxu0 }
0x18d8   :  { %v7229_v41 = vpop.f32.mrf.mxu0 }
0x18d9   :  { %v9519_v41 = vld [vmem:[%s10336_s6 + $0x10] sm:$0xff] }
0x18da   :  { %v2952_v27 = vpop.f32.mrf.mxu1 }
0x18db   :  { %v3038_v8 = vrot.slane %v2952_v27, 7  ;;  %v9525_v27 = vld [vmem:[%s10336_s6 + $0x58] sm:$0xff] }
0x18dc   :  { %v7248_v7 = vpop.f32.mrf.mxu1 }
0x18dd   :  { %v3043_v13 = vsel %vm172_vm5, %v2866_v28, %v3038_v8  ;;  %v9511_v28 = vld [vmem:[%s10336_s6 + $0x60] sm:$0xff]  ;;  %v9533_v7 = vld [vmem:[%s10336_s6 + $0x8] sm:$0xff] }
0x18de   :  { %v9542_v8 = vld [vmem:[%s10336_s6] sm:$0xff] }
0x18e6   :  { %v3033_v9 = vpop.f32.mrf.mxu0 }
0x18e7   :  { %v3041_v12 = vrot.slane %v3033_v9, 6  ;;  %v9552_v9 = vld [vmem:[%s10336_s6 + $0x50] sm:$0xff] }
0x18e8   :  { %v7267_v14 = vpop.f32.mrf.mxu0 }
0x18e9   :  { %v3044_v15 = vsel %vm160_vm2, %v3043_v13, %v3041_v12  ;;  %v9559_v12 = vld [vmem:[%s10336_s6 + $0x48] sm:$0xff]  ;;  %v9566_v13 = vld [vmem:[%s10336_s6 + $0x40] sm:$0xff] }
0x18ea   :  { %v3045_v16 = vadd.f32 %v9152_v25, %v3044_v15 }
0x18ec   :  { %7909 = vtanh.f32 %v3045_v16  ;;  %v6003_v18 = vmul.f32 -1.442695, %v3045_v16 }
0x18ee   :  { %7911 = vpow2.f32 %v6003_v18  ;;  %v3378_v18 = vld [vmem:[#allocation2 + $0xa] sm:$0x1] }
0x18f9   :  { %v7910_v17 = vpop.eup %7909 }
0x18fa   :  { %3055 = vrot.lane.b32.xlu1 %v7910_v17, %s7995_s20 }
0x18fb   :  { %v7912_v19 = vpop.eup %7911 }
0x18fc   :  { %v3049_v20 = vadd.f32 1.0, %v7912_v19 }
0x18fe   :  { %7913 = vrcp.f32 %v3049_v20  ;;  %v9576_v20 = vld [vmem:[%s10336_s6 + $0xb8] sm:$0xff] }
0x190b   :  { %v7914_v56 = vpop.eup %7913 }
0x190c   :  { %v3053_v11 = vmul.f32 %v7914_v56, %v9340_v22 }
0x196c   :  { %v3056_v58 = vpop.permute.xlu1 %3055 }
0x196d   :  { %v3058_v37 = vmul.f32 %v7914_v56, %v3056_v58  ;;  %v9584_v58 = vld [vmem:[%s10336_s6 + $0xb0] sm:$0xff] }
0x196f   :  { %3060 = vrot.lane.b32.xlu0 %v3058_v37, %s7995_s20 }
0x19e1   :  { %v3061_v61 = vpop.permute.xlu0 %3060 }
0x19e2   :  { %v9413_v62 = vadd.f32 %v3061_v61, %v3053_v11  ;;  %v9593_v11 = vld [vmem:[%s10336_s6 + $0xa8] sm:$0xff] }
0x19e4   :  { %7915 = vtanh.f32 %v9413_v62 }
0x19f1   :  { %v7916_v4 = vpop.eup %7915 }
0x19f2   :  { %3066 = vrot.lane.b32.xlu1 %v7916_v4, %s7995_s20  ;;  %v9610_v4 = vld [vmem:[%s10336_s6 + $0x98] sm:$0xff] }
0x1a64   :  { %v3067_v5 = vpop.permute.xlu1 %3066 }
0x1a65   :  { %v3069_v45 = vmul.f32 %v7914_v56, %v3067_v5  ;;  %v9619_v5 = vld [vmem:[%s10336_s6 + $0x90] sm:$0xff] }
0x1a67   :  { %3077 = vrot.lane.b32.xlu1 %v3069_v45, %s7994_s19  ;;  %3082 = vrot.lane.b32.xlu0 %v3069_v45, %s7996_s4  ;;  %v3167_v47 = vrot.slane %v3069_v45, 1  ;;  %v9628_v45 = vld [vmem:[%s10336_s6 + $0x88] sm:$0xff] }
0x1a6b   :  { %3168 = vrot.lane.b32.xlu0 %v3167_v47, %s7996_s4  ;;  %v9637_v47 = vld [vmem:[%s10336_s6 + $0x80] sm:$0xff] }
0x1ad9   :  { %v3078_v48 = vpop.permute.xlu1 %3077  ;;  %v3083_v50 = vpop.permute.xlu0 %3082 }
0x1ada   :  { %3080 = vst.msk [vmem:[#allocation3 + $0x4] sm:$0x4] %vm1297_vm14, %v3078_v48  ;;  %v3085_v51 = vsel %vm218_vm7, %v3081_v49, %v3083_v50 }
0x1adb   :  { %7285 = vmatmul.mubr.msk.f32.vlgmr.msra.gmra.mxu1 %vm221_vm8, %v3085_v51 }
0x1adc   :  { %7307 = vmatpush3.msra.mxu1 %v9050_v57  ;;  %7322 = vmatprep.mubr.msk.f32.mxu1 %vm7997_vm10, %v7993_v42 }
0x1add   :  { %7308 = vmatprep.subr.mxu1 %v7993_v42  ;;  %v3169_v6 = vpop.permute.xlu0 %3168 }
0x1ade   :  { %7309 = vmatpush3.msra.mxu1 %v9058_v59  ;;  %v3171_v24 = vsel %vm218_vm7, %v3078_v48, %v3169_v6 }
0x1adf   :  { %7310 = vmatprep.subr.mxu1 %v7993_v42  ;;  %7304 = vmatmul.mubr.msk.f32.vlgmr.msra.gmra.mxu0 %vm221_vm8, %v3171_v24  ;;  %v3261_v57 = vrot.slane %v3171_v24, 1 }
0x1ae0   :  { %7311 = vmatpush3.msra.mxu1 %v9067_v26  ;;  %7341 = vmatprep.mubr.msk.f32.mxu0 %vm7997_vm10, %v7993_v42 }
0x1ae1   :  { %7312 = vmatprep.subr.mxu1 %v7993_v42 }
0x1ae2   :  { %7313 = vmatpush3.msra.mxu1 %v9076_v63 }
0x1ae3   :  { %7314 = vmatprep.subr.mxu1 %v7993_v42 }
0x1ae4   :  { %7315 = vmatpush3.msra.mxu1 %v9084_v0 }
0x1ae5   :  { %7316 = vmatprep.subr.mxu1 %v7993_v42 }
0x1ae6   :  { %7317 = vmatpush3.msra.mxu1 %v9093_v1 }
0x1ae7   :  { %7318 = vmatprep.subr.mxu1 %v7993_v42 }
0x1ae8   :  { %7319 = vmatpush3.msra.mxu1 %v9102_v2 }
0x1ae9   :  { %7320 = vmatprep.subr.mxu1 %v7993_v42 }
0x1aea   :  { %7321 = vmatpush3.msra.mxu1 %v9111_v3 }
0x1aeb   :  { %7323 = vmatmul.mubr.msk.f32.vlgmr.msra.gmra.mxu1 %vm221_vm8, %v3261_v57  ;;  %7344 = vmatprep.subr.mxu1 %v7993_v42 }
0x1aec   :  { %7360 = vmatprep.mubr.msk.f32.mxu1 %vm7997_vm10, %v7993_v42  ;;  %7345 = vmatpush3.msra.mxu1 %v9471_v44 }
0x1aed   :  { %7346 = vmatprep.subr.mxu1 %v7993_v42 }
0x1aee   :  { %7347 = vmatpush3.msra.mxu1 %v9476_v23 }
0x1aef   :  { %7348 = vmatprep.subr.mxu1 %v7993_v42 }
0x1af0   :  { %7349 = vmatpush3.msra.mxu1 %v9490_v10 }
0x1af1   :  { %7350 = vmatprep.subr.mxu1 %v7993_v42 }
0x1af2   :  { %7351 = vmatpush3.msra.mxu1 %v9511_v28 }
0x1af3   :  { %7352 = vmatprep.subr.mxu1 %v7993_v42 }
0x1af4   :  { %7353 = vmatpush3.msra.mxu1 %v9525_v27 }
0x1af5   :  { %7354 = vmatprep.subr.mxu1 %v7993_v42 }
0x1af6   :  { %7355 = vmatpush3.msra.mxu1 %v9552_v9 }
0x1af7   :  { %7356 = vmatprep.subr.mxu1 %v7993_v42 }
0x1af8   :  { %7357 = vmatpush3.msra.mxu1 %v9559_v12 }
0x1af9   :  { %7358 = vmatprep.subr.mxu1 %v7993_v42 }
0x1afa   :  { %7359 = vmatpush3.msra.mxu1 %v9566_v13 }
0x1afb   :  { %7382 = vmatprep.subr.mxu1 %v7993_v42 }
0x1b9b   :  { %v3163_v59 = vpop.f32.mrf.mxu1 }
0x1b9d   :  { %v7286_v26 = vpop.f32.mrf.mxu1 }
0x1b9f   :  { %v3249_v63 = vpop.f32.mrf.mxu0 }
0x1ba0   :  { %v3335_v1 = vrot.slane %v3249_v63, 7 }
0x1ba1   :  { %v7305_v0 = vpop.f32.mrf.mxu0 }
0x1ba2   :  { %v3340_v2 = vsel %vm172_vm5, %v3163_v59, %v3335_v1  ;;  %v9678_v1 = vld [vmem:[%s10338_s7] sm:$0x7] }
0x1bab   :  { %v3330_v52 = vpop.f32.mrf.mxu1 }
0x1bac   :  { %v3338_v30 = vrot.slane %v3330_v52, 6 }
0x1bad   :  { %v7324_v53 = vpop.f32.mrf.mxu1 }
0x1bae   :  { %v3341_v32 = vsel %vm160_vm2, %v3340_v2, %v3338_v30 }
0x1baf   :  { %v3342_v3 = vadd.f32 %v9152_v25, %v3341_v32  ;;  %v9460_v25 = vld [vmem:[%s10336_s6 + $0x38] sm:$0xff] }
0x1bb0   :  { %7326 = vmatpush3.msra.mxu0 %v9460_v25 }
0x1bb1   :  { %7917 = vtanh.f32 %v3342_v3  ;;  %v6023_v34 = vmul.f32 -1.442695, %v3342_v3  ;;  %7327 = vmatprep.subr.mxu0 %v7993_v42 }
0x1bb2   :  { %7328 = vmatpush3.msra.mxu0 %v9465_v29 }
0x1bb3   :  { %7919 = vpow2.f32 %v6023_v34  ;;  %7329 = vmatprep.subr.mxu0 %v7993_v42 }
0x1bb4   :  { %7330 = vmatpush3.msra.mxu0 %v9482_v21 }
0x1bb5   :  { %7331 = vmatprep.subr.mxu0 %v7993_v42 }
0x1bb6   :  { %7332 = vmatpush3.msra.mxu0 %v9496_v54 }
0x1bb7   :  { %7333 = vmatprep.subr.mxu0 %v7993_v42 }
0x1bb8   :  { %7334 = vmatpush3.msra.mxu0 %v9505_v36 }
0x1bb9   :  { %7335 = vmatprep.subr.mxu0 %v7993_v42 }
0x1bba   :  { %7336 = vmatpush3.msra.mxu0 %v9519_v41 }
0x1bbb   :  { %7337 = vmatprep.subr.mxu0 %v7993_v42 }
0x1bbc   :  { %7338 = vmatpush3.msra.mxu0 %v9533_v7 }
0x1bbd   :  { %7339 = vmatprep.subr.mxu0 %v7993_v42 }
0x1bbe   :  { %v7918_v33 = vpop.eup %7917  ;;  %7340 = vmatpush3.msra.mxu0 %v9542_v8 }
0x1bbf   :  { %3352 = vrot.lane.b32.xlu1 %v7918_v33, %s7995_s20  ;;  %7363 = vmatprep.subr.mxu0 %v7993_v42 }
0x1bc0   :  { %v7920_v35 = vpop.eup %7919 }
0x1bc1   :  { %v3346_v38 = vadd.f32 1.0, %v7920_v35 }
0x1bc3   :  { %7921 = vrcp.f32 %v3346_v38 }
0x1bd0   :  { %v7922_v60 = vpop.eup %7921 }
0x1bd1   :  { %v3350_v43 = vmul.f32 %v7922_v60, %v9413_v62  ;;  %v9602_v62 = vld [vmem:[%s10336_s6 + $0xa0] sm:$0xff] }
0x1c31   :  { %v3353_v39 = vpop.permute.xlu1 %3352 }
0x1c32   :  { %v3355_v22 = vmul.f32 %v7922_v60, %v3353_v39 }
0x1c34   :  { %3357 = vrot.lane.b32.xlu0 %v3355_v22, %s7995_s20 }
0x1ca6   :  { %v3358_v46 = vpop.permute.xlu0 %3357 }
0x1ca7   :  { %v9454_v40 = vadd.f32 %v3358_v46, %v3350_v43 }
0x1ca9   :  { %7923 = vtanh.f32 %v9454_v40 }
0x1cb6   :  { %v7924_v55 = vpop.eup %7923 }
0x1cb7   :  { %3363 = vrot.lane.b32.xlu1 %v7924_v55, %s7995_s20 }
0x1d29   :  { %v3364_v14 = vpop.permute.xlu1 %3363 }
0x1d2a   :  { %v3366_v15 = vmul.f32 %v7922_v60, %v3364_v14  ;;  %v3675_v14 = vld [vmem:[#allocation2 + $0xb] sm:$0x1] }
0x1d2c   :  { %3374 = vrot.lane.b32.xlu1 %v3366_v15, %s7994_s19  ;;  %3379 = vrot.lane.b32.xlu0 %v3366_v15, %s7996_s4  ;;  %v3464_v16 = vrot.slane %v3366_v15, 1 }
0x1d30   :  { %3465 = vrot.lane.b32.xlu0 %v3464_v16, %s7996_s4 }
0x1d9e   :  { %v3375_v17 = vpop.permute.xlu1 %3374  ;;  %v3380_v19 = vpop.permute.xlu0 %3379 }
0x1d9f   :  { %3377 = vst.msk [vmem:[#allocation3 + $0x5] sm:$0x4] %vm1297_vm14, %v3375_v17  ;;  %v3382_v56 = vsel %vm218_vm7, %v3378_v18, %v3380_v19 }
0x1da0   :  { %7342 = vmatmul.mubr.msk.f32.vlgmr.msra.gmra.mxu0 %vm221_vm8, %v3382_v56 }
0x1da1   :  { %7364 = vmatpush3.msra.mxu0 %v9576_v20  ;;  %7379 = vmatprep.mubr.msk.f32.mxu0 %vm7997_vm10, %v7993_v42 }
0x1da2   :  { %7365 = vmatprep.subr.mxu0 %v7993_v42  ;;  %v3466_v37 = vpop.permute.xlu0 %3465 }
0x1da3   :  { %7366 = vmatpush3.msra.mxu0 %v9584_v58  ;;  %v3468_v61 = vsel %vm218_vm7, %v3375_v17, %v3466_v37 }
0x1da4   :  { %7367 = vmatprep.subr.mxu0 %v7993_v42  ;;  %7361 = vmatmul.mubr.msk.f32.vlgmr.msra.gmra.mxu1 %vm221_vm8, %v3468_v61  ;;  %v3558_v48 = vrot.slane %v3468_v61, 1 }
0x1da5   :  { %7368 = vmatpush3.msra.mxu0 %v9593_v11  ;;  %7383 = vmatpush3.msra.mxu1 %v9460_v25 }
0x1da6   :  { %7369 = vmatprep.subr.mxu0 %v7993_v42  ;;  %7384 = vmatprep.subr.mxu1 %v7993_v42 }
0x1da7   :  { %7370 = vmatpush3.msra.mxu0 %v9602_v62  ;;  %7385 = vmatpush3.msra.mxu1 %v9465_v29 }
0x1da8   :  { %7371 = vmatprep.subr.mxu0 %v7993_v42  ;;  %7386 = vmatprep.subr.mxu1 %v7993_v42 }
0x1da9   :  { %7372 = vmatpush3.msra.mxu0 %v9610_v4  ;;  %7387 = vmatpush3.msra.mxu1 %v9482_v21 }
0x1daa   :  { %7373 = vmatprep.subr.mxu0 %v7993_v42  ;;  %7388 = vmatprep.subr.mxu1 %v7993_v42 }
0x1dab   :  { %7374 = vmatpush3.msra.mxu0 %v9619_v5  ;;  %7389 = vmatpush3.msra.mxu1 %v9496_v54 }
0x1dac   :  { %7375 = vmatprep.subr.mxu0 %v7993_v42  ;;  %7390 = vmatprep.subr.mxu1 %v7993_v42 }
0x1dad   :  { %7376 = vmatpush3.msra.mxu0 %v9628_v45  ;;  %7391 = vmatpush3.msra.mxu1 %v9505_v36 }
0x1dae   :  { %7377 = vmatprep.subr.mxu0 %v7993_v42  ;;  %7392 = vmatprep.subr.mxu1 %v7993_v42 }
0x1daf   :  { %7378 = vmatpush3.msra.mxu0 %v9637_v47  ;;  %7393 = vmatpush3.msra.mxu1 %v9519_v41 }
0x1db0   :  { %7380 = vmatmul.mubr.msk.f32.vlgmr.msra.gmra.mxu0 %vm221_vm8, %v3558_v48  ;;  %7401 = vmatprep.subr.mxu0 %v7993_v42 }
0x1db1   :  { %7402 = vmatpush3.msra.mxu0 %v9471_v44  ;;  %7394 = vmatprep.subr.mxu1 %v7993_v42 }
0x1db2   :  { %7403 = vmatprep.subr.mxu0 %v7993_v42  ;;  %7395 = vmatpush3.msra.mxu1 %v9533_v7 }
0x1db3   :  { %7404 = vmatpush3.msra.mxu0 %v9476_v23  ;;  %7396 = vmatprep.subr.mxu1 %v7993_v42 }
0x1db4   :  { %7405 = vmatprep.subr.mxu0 %v7993_v42  ;;  %7397 = vmatpush3.msra.mxu1 %v9542_v8 }
0x1db5   :  { %7406 = vmatpush3.msra.mxu0 %v9490_v10  ;;  %7398 = vmatprep.mubr.msk.f32.mxu1 %vm7997_vm10, %v7993_v42 }
0x1db6   :  { %7407 = vmatprep.subr.mxu0 %v7993_v42  ;;  %7420 = vmatprep.subr.mxu1 %v7993_v42 }
0x1db7   :  { %7408 = vmatpush3.msra.mxu0 %v9511_v28  ;;  %7417 = vmatprep.mubr.msk.f32.mxu0 %vm7997_vm10, %v7993_v42 }
0x1db8   :  { %7409 = vmatprep.subr.mxu0 %v7993_v42 }
0x1db9   :  { %7410 = vmatpush3.msra.mxu0 %v9525_v27 }
0x1dba   :  { %7411 = vmatprep.subr.mxu0 %v7993_v42 }
0x1dbb   :  { %7412 = vmatpush3.msra.mxu0 %v9552_v9 }
0x1dbc   :  { %7413 = vmatprep.subr.mxu0 %v7993_v42 }
0x1dbd   :  { %7414 = vmatpush3.msra.mxu0 %v9559_v12 }
0x1dbe   :  { %7415 = vmatprep.subr.mxu0 %v7993_v42 }
0x1dbf   :  { %7416 = vmatpush3.msra.mxu0 %v9566_v13 }
0x1dc0   :  { %7439 = vmatprep.subr.mxu0 %v7993_v42 }
0x1e60   :  { %v3460_v49 = vpop.f32.mrf.mxu0 }
0x1e62   :  { %v7343_v50 = vpop.f32.mrf.mxu0 }
0x1e64   :  { %v3546_v51 = vpop.f32.mrf.mxu1 }
0x1e65   :  { %v3632_v24 = vrot.slane %v3546_v51, 7 }
0x1e66   :  { %v7362_v6 = vpop.f32.mrf.mxu1 }
0x1e67   :  { %v3637_v26 = vsel %vm172_vm5, %v3460_v49, %v3632_v24 }
0x1e70   :  { %v3627_v57 = vpop.f32.mrf.mxu0 }
0x1e71   :  { %v3635_v59 = vrot.slane %v3627_v57, 6 }
0x1e72   :  { %v7381_v63 = vpop.f32.mrf.mxu0 }
0x1e73   :  { %v3638_v0 = vsel %vm160_vm2, %v3637_v26, %v3635_v59 }
0x1e74   :  { %v3639_v52 = vadd.f32 %v9678_v1, %v3638_v0 }
0x1e76   :  { %7925 = vtanh.f32 %v3639_v52  ;;  %v6043_v2 = vmul.f32 -1.442695, %v3639_v52 }
0x1e78   :  { %7927 = vpow2.f32 %v6043_v2 }
0x1e83   :  { %v7926_v30 = vpop.eup %7925 }
0x1e84   :  { %3649 = vrot.lane.b32.xlu1 %v7926_v30, %s7995_s20 }
0x1e85   :  { %v7928_v53 = vpop.eup %7927 }
0x1e86   :  { %v3643_v32 = vadd.f32 1.0, %v7928_v53 }
0x1e88   :  { %7929 = vrcp.f32 %v3643_v32 }
0x1e95   :  { %v7930_v3 = vpop.eup %7929 }
0x1e96   :  { %v3647_v35 = vmul.f32 %v7930_v3, %v9454_v40 }
0x1ef6   :  { %v3650_v33 = vpop.permute.xlu1 %3649 }
0x1ef7   :  { %v3652_v34 = vmul.f32 %v7930_v3, %v3650_v33 }
0x1ef9   :  { %3654 = vrot.lane.b32.xlu0 %v3652_v34, %s7995_s20 }
0x1f6b   :  { %v3655_v38 = vpop.permute.xlu0 %3654 }
0x1f6c   :  { %v9684_v60 = vadd.f32 %v3655_v38, %v3647_v35 }
0x1f6e   :  { %7931 = vtanh.f32 %v9684_v60 }
0x1f7b   :  { %v7932_v39 = vpop.eup %7931 }
0x1f7c   :  { %3660 = vrot.lane.b32.xlu1 %v7932_v39, %s7995_s20 }
0x1fee   :  { %v3661_v22 = vpop.permute.xlu1 %3660 }
0x1fef   :  { %v3663_v43 = vmul.f32 %v7930_v3, %v3661_v22  ;;  %v3972_v22 = vld [vmem:[#allocation2 + $0xc] sm:$0x1] }
0x1ff1   :  { %3671 = vrot.lane.b32.xlu1 %v3663_v43, %s7994_s19  ;;  %3676 = vrot.lane.b32.xlu0 %v3663_v43, %s7996_s4  ;;  %v3761_v46 = vrot.slane %v3663_v43, 1 }
0x1ff5   :  { %3762 = vrot.lane.b32.xlu0 %v3761_v46, %s7996_s4 }
0x2063   :  { %v3672_v55 = vpop.permute.xlu1 %3671  ;;  %v3677_v40 = vpop.permute.xlu0 %3676 }
0x2064   :  { %3674 = vst.msk [vmem:[#allocation3 + $0x6] sm:$0x4] %vm1297_vm14, %v3672_v55  ;;  %v3679_v15 = vsel %vm218_vm7, %v3675_v14, %v3677_v40 }
0x2065   :  { %7399 = vmatmul.mubr.msk.f32.vlgmr.msra.gmra.mxu1 %vm221_vm8, %v3679_v15 }
0x2066   :  { %7421 = vmatpush3.msra.mxu1 %v9576_v20  ;;  %7436 = vmatprep.mubr.msk.f32.mxu1 %vm7997_vm10, %v7993_v42 }
0x2067   :  { %7422 = vmatprep.subr.mxu1 %v7993_v42  ;;  %v3763_v16 = vpop.permute.xlu0 %3762 }
0x2068   :  { %7423 = vmatpush3.msra.mxu1 %v9584_v58  ;;  %v3765_v17 = vsel %vm218_vm7, %v3672_v55, %v3763_v16 }
0x2069   :  { %7424 = vmatprep.subr.mxu1 %v7993_v42  ;;  %7418 = vmatmul.mubr.msk.f32.vlgmr.msra.gmra.mxu0 %vm221_vm8, %v3765_v17  ;;  %v3855_v18 = vrot.slane %v3765_v17, 1 }
0x206a   :  { %7425 = vmatpush3.msra.mxu1 %v9593_v11  ;;  %7440 = vmatpush3.msra.mxu0 %v9460_v25 }
0x206b   :  { %7426 = vmatprep.subr.mxu1 %v7993_v42  ;;  %7441 = vmatprep.subr.mxu0 %v7993_v42 }
0x206c   :  { %7427 = vmatpush3.msra.mxu1 %v9602_v62  ;;  %7442 = vmatpush3.msra.mxu0 %v9465_v29 }
0x206d   :  { %7428 = vmatprep.subr.mxu1 %v7993_v42  ;;  %7443 = vmatprep.subr.mxu0 %v7993_v42 }
0x206e   :  { %7429 = vmatpush3.msra.mxu1 %v9610_v4  ;;  %7444 = vmatpush3.msra.mxu0 %v9482_v21 }
0x206f   :  { %7430 = vmatprep.subr.mxu1 %v7993_v42  ;;  %7445 = vmatprep.subr.mxu0 %v7993_v42 }
0x2070   :  { %7431 = vmatpush3.msra.mxu1 %v9619_v5  ;;  %7446 = vmatpush3.msra.mxu0 %v9496_v54 }
0x2071   :  { %7432 = vmatprep.subr.mxu1 %v7993_v42  ;;  %7447 = vmatprep.subr.mxu0 %v7993_v42 }
0x2072   :  { %7433 = vmatpush3.msra.mxu1 %v9628_v45  ;;  %7448 = vmatpush3.msra.mxu0 %v9505_v36 }
0x2073   :  { %7434 = vmatprep.subr.mxu1 %v7993_v42  ;;  %7449 = vmatprep.subr.mxu0 %v7993_v42 }
0x2074   :  { %7435 = vmatpush3.msra.mxu1 %v9637_v47  ;;  %7450 = vmatpush3.msra.mxu0 %v9519_v41 }
0x2075   :  { %7437 = vmatmul.mubr.msk.f32.vlgmr.msra.gmra.mxu1 %vm221_vm8, %v3855_v18  ;;  %7458 = vmatprep.subr.mxu1 %v7993_v42 }
0x2076   :  { %7459 = vmatpush3.msra.mxu1 %v9471_v44  ;;  %7451 = vmatprep.subr.mxu0 %v7993_v42 }
0x2077   :  { %7460 = vmatprep.subr.mxu1 %v7993_v42  ;;  %7452 = vmatpush3.msra.mxu0 %v9533_v7 }
0x2078   :  { %7461 = vmatpush3.msra.mxu1 %v9476_v23  ;;  %7453 = vmatprep.subr.mxu0 %v7993_v42 }
0x2079   :  { %7462 = vmatprep.subr.mxu1 %v7993_v42  ;;  %7454 = vmatpush3.msra.mxu0 %v9542_v8 }
0x207a   :  { %7463 = vmatpush3.msra.mxu1 %v9490_v10  ;;  %7455 = vmatprep.mubr.msk.f32.mxu0 %vm7997_vm10, %v7993_v42 }
0x207b   :  { %7464 = vmatprep.subr.mxu1 %v7993_v42  ;;  %7477 = vmatprep.subr.mxu0 %v7993_v42 }
0x207c   :  { %7465 = vmatpush3.msra.mxu1 %v9511_v28  ;;  %7474 = vmatprep.mubr.msk.f32.mxu1 %vm7997_vm10, %v7993_v42 }
0x207d   :  { %7466 = vmatprep.subr.mxu1 %v7993_v42 }
0x207e   :  { %7467 = vmatpush3.msra.mxu1 %v9525_v27 }
0x207f   :  { %7468 = vmatprep.subr.mxu1 %v7993_v42 }
0x2080   :  { %7469 = vmatpush3.msra.mxu1 %v9552_v9 }
0x2081   :  { %7470 = vmatprep.subr.mxu1 %v7993_v42 }
0x2082   :  { %7471 = vmatpush3.msra.mxu1 %v9559_v12 }
0x2083   :  { %7472 = vmatprep.subr.mxu1 %v7993_v42 }
0x2084   :  { %7473 = vmatpush3.msra.mxu1 %v9566_v13 }
0x2085   :  { %7496 = vmatprep.subr.mxu1 %v7993_v42 }
0x2125   :  { %v3757_v19 = vpop.f32.mrf.mxu1 }
0x2127   :  { %v7400_v56 = vpop.f32.mrf.mxu1 }
0x2129   :  { %v3843_v37 = vpop.f32.mrf.mxu0 }
0x212a   :  { %v3929_v48 = vrot.slane %v3843_v37, 7 }
0x212b   :  { %v7419_v61 = vpop.f32.mrf.mxu0 }
0x212c   :  { %v3934_v51 = vsel %vm172_vm5, %v3757_v19, %v3929_v48 }
0x2135   :  { %v3924_v49 = vpop.f32.mrf.mxu1 }
0x2136   :  { %v3932_v50 = vrot.slane %v3924_v49, 6 }
0x2137   :  { %v7438_v6 = vpop.f32.mrf.mxu1 }
0x2138   :  { %v3935_v24 = vsel %vm160_vm2, %v3934_v51, %v3932_v50 }
0x2139   :  { %v3936_v57 = vadd.f32 %v9678_v1, %v3935_v24 }
0x213b   :  { %7933 = vtanh.f32 %v3936_v57  ;;  %v6063_v26 = vmul.f32 -1.442695, %v3936_v57 }
0x213d   :  { %7935 = vpow2.f32 %v6063_v26 }
0x2148   :  { %v7934_v59 = vpop.eup %7933 }
0x2149   :  { %3946 = vrot.lane.b32.xlu1 %v7934_v59, %s7995_s20 }
0x214a   :  { %v7936_v63 = vpop.eup %7935 }
0x214b   :  { %v3940_v0 = vadd.f32 1.0, %v7936_v63 }
0x214d   :  { %7937 = vrcp.f32 %v3940_v0 }
0x215a   :  { %v7938_v52 = vpop.eup %7937 }
0x215b   :  { %v3944_v53 = vmul.f32 %v7938_v52, %v9684_v60 }
0x21bb   :  { %v3947_v30 = vpop.permute.xlu1 %3946 }
0x21bc   :  { %v3949_v2 = vmul.f32 %v7938_v52, %v3947_v30 }
0x21be   :  { %3951 = vrot.lane.b32.xlu0 %v3949_v2, %s7995_s20 }
0x2230   :  { %v3952_v32 = vpop.permute.xlu0 %3951 }
0x2231   :  { %v9757_v3 = vadd.f32 %v3952_v32, %v3944_v53 }
0x2233   :  { %7939 = vtanh.f32 %v9757_v3 }
0x2240   :  { %v7940_v33 = vpop.eup %7939 }
0x2241   :  { %3957 = vrot.lane.b32.xlu1 %v7940_v33, %s7995_s20 }
0x22b3   :  { %v3958_v34 = vpop.permute.xlu1 %3957 }
0x22b4   :  { %v3960_v35 = vmul.f32 %v7938_v52, %v3958_v34  ;;  %v4269_v34 = vld [vmem:[#allocation2 + $0xd] sm:$0x1] }
0x22b6   :  { %3968 = vrot.lane.b32.xlu1 %v3960_v35, %s7994_s19  ;;  %3973 = vrot.lane.b32.xlu0 %v3960_v35, %s7996_s4  ;;  %v4058_v38 = vrot.slane %v3960_v35, 1 }
0x22ba   :  { %4059 = vrot.lane.b32.xlu0 %v4058_v38, %s7996_s4 }
0x2328   :  { %v3969_v39 = vpop.permute.xlu1 %3968  ;;  %v3974_v60 = vpop.permute.xlu0 %3973 }
0x2329   :  { %3971 = vst.msk [vmem:[#allocation3 + $0x7] sm:$0x4] %vm1297_vm14, %v3969_v39  ;;  %v3976_v43 = vsel %vm218_vm7, %v3972_v22, %v3974_v60 }
0x232a   :  { %7456 = vmatmul.mubr.msk.f32.vlgmr.msra.gmra.mxu0 %vm221_vm8, %v3976_v43 }
0x232b   :  { %7478 = vmatpush3.msra.mxu0 %v9576_v20  ;;  %7493 = vmatprep.mubr.msk.f32.mxu0 %vm7997_vm10, %v7993_v42 }
0x232c   :  { %7479 = vmatprep.subr.mxu0 %v7993_v42  ;;  %v4060_v46 = vpop.permute.xlu0 %4059 }
0x232d   :  { %7480 = vmatpush3.msra.mxu0 %v9584_v58  ;;  %v4062_v55 = vsel %vm218_vm7, %v3969_v39, %v4060_v46 }
0x232e   :  { %7481 = vmatprep.subr.mxu0 %v7993_v42  ;;  %7475 = vmatmul.mubr.msk.f32.vlgmr.msra.gmra.mxu1 %vm221_vm8, %v4062_v55  ;;  %v4152_v14 = vrot.slane %v4062_v55, 1 }
0x232f   :  { %7482 = vmatpush3.msra.mxu0 %v9593_v11  ;;  %7497 = vmatpush3.msra.mxu1 %v9460_v25 }
0x2330   :  { %7483 = vmatprep.subr.mxu0 %v7993_v42  ;;  %7498 = vmatprep.subr.mxu1 %v7993_v42 }
0x2331   :  { %7484 = vmatpush3.msra.mxu0 %v9602_v62  ;;  %7499 = vmatpush3.msra.mxu1 %v9465_v29 }
0x2332   :  { %7485 = vmatprep.subr.mxu0 %v7993_v42  ;;  %7500 = vmatprep.subr.mxu1 %v7993_v42 }
0x2333   :  { %7486 = vmatpush3.msra.mxu0 %v9610_v4  ;;  %7501 = vmatpush3.msra.mxu1 %v9482_v21 }
0x2334   :  { %7487 = vmatprep.subr.mxu0 %v7993_v42  ;;  %7502 = vmatprep.subr.mxu1 %v7993_v42 }
0x2335   :  { %7488 = vmatpush3.msra.mxu0 %v9619_v5  ;;  %7503 = vmatpush3.msra.mxu1 %v9496_v54 }
0x2336   :  { %7489 = vmatprep.subr.mxu0 %v7993_v42  ;;  %7504 = vmatprep.subr.mxu1 %v7993_v42 }
0x2337   :  { %7490 = vmatpush3.msra.mxu0 %v9628_v45  ;;  %7505 = vmatpush3.msra.mxu1 %v9505_v36 }
0x2338   :  { %7491 = vmatprep.subr.mxu0 %v7993_v42  ;;  %7506 = vmatprep.subr.mxu1 %v7993_v42 }
0x2339   :  { %7492 = vmatpush3.msra.mxu0 %v9637_v47  ;;  %7507 = vmatpush3.msra.mxu1 %v9519_v41 }
0x233a   :  { %7494 = vmatmul.mubr.msk.f32.vlgmr.msra.gmra.mxu0 %vm221_vm8, %v4152_v14  ;;  %7515 = vmatprep.subr.mxu0 %v7993_v42 }
0x233b   :  { %7516 = vmatpush3.msra.mxu0 %v9471_v44  ;;  %7508 = vmatprep.subr.mxu1 %v7993_v42 }
0x233c   :  { %7517 = vmatprep.subr.mxu0 %v7993_v42  ;;  %7509 = vmatpush3.msra.mxu1 %v9533_v7 }
0x233d   :  { %7518 = vmatpush3.msra.mxu0 %v9476_v23  ;;  %7510 = vmatprep.subr.mxu1 %v7993_v42 }
0x233e   :  { %7519 = vmatprep.subr.mxu0 %v7993_v42  ;;  %7511 = vmatpush3.msra.mxu1 %v9542_v8 }
0x233f   :  { %7520 = vmatpush3.msra.mxu0 %v9490_v10  ;;  %7512 = vmatprep.mubr.msk.f32.mxu1 %vm7997_vm10, %v7993_v42 }
0x2340   :  { %7521 = vmatprep.subr.mxu0 %v7993_v42  ;;  %7534 = vmatprep.subr.mxu1 %v7993_v42 }
0x2341   :  { %7522 = vmatpush3.msra.mxu0 %v9511_v28  ;;  %7531 = vmatprep.mubr.msk.f32.mxu0 %vm7997_vm10, %v7993_v42 }
0x2342   :  { %7523 = vmatprep.subr.mxu0 %v7993_v42 }
0x2343   :  { %7524 = vmatpush3.msra.mxu0 %v9525_v27 }
0x2344   :  { %7525 = vmatprep.subr.mxu0 %v7993_v42 }
0x2345   :  { %7526 = vmatpush3.msra.mxu0 %v9552_v9 }
0x2346   :  { %7527 = vmatprep.subr.mxu0 %v7993_v42 }
0x2347   :  { %7528 = vmatpush3.msra.mxu0 %v9559_v12 }
0x2348   :  { %7529 = vmatprep.subr.mxu0 %v7993_v42 }
0x2349   :  { %7530 = vmatpush3.msra.mxu0 %v9566_v13 }
0x234a   :  { %7553 = vmatprep.subr.mxu0 %v7993_v42 }
0x23ea   :  { %v4054_v40 = vpop.f32.mrf.mxu0 }
0x23ec   :  { %v7457_v15 = vpop.f32.mrf.mxu0 }
0x23ee   :  { %v4140_v16 = vpop.f32.mrf.mxu1 }
0x23ef   :  { %v4226_v18 = vrot.slane %v4140_v16, 7 }
0x23f0   :  { %v7476_v17 = vpop.f32.mrf.mxu1 }
0x23f1   :  { %v4231_v37 = vsel %vm172_vm5, %v4054_v40, %v4226_v18 }
0x23fa   :  { %v4221_v19 = vpop.f32.mrf.mxu0 }
0x23fb   :  { %v4229_v56 = vrot.slane %v4221_v19, 6  ;;  %v4566_v19 = vld [vmem:[#allocation2 + $0xe] sm:$0x1] }
0x23fc   :  { %v7495_v61 = vpop.f32.mrf.mxu0 }
0x23fd   :  { %v4232_v48 = vsel %vm160_vm2, %v4231_v37, %v4229_v56 }
0x23fe   :  { %v4233_v49 = vadd.f32 %v9678_v1, %v4232_v48 }
0x2400   :  { %7941 = vtanh.f32 %v4233_v49  ;;  %v6083_v51 = vmul.f32 -1.442695, %v4233_v49 }
0x2402   :  { %7943 = vpow2.f32 %v6083_v51 }
0x240d   :  { %v7942_v50 = vpop.eup %7941 }
0x240e   :  { %4243 = vrot.lane.b32.xlu1 %v7942_v50, %s7995_s20 }
0x240f   :  { %v7944_v6 = vpop.eup %7943 }
0x2410   :  { %v4237_v24 = vadd.f32 1.0, %v7944_v6 }
0x2412   :  { %7945 = vrcp.f32 %v4237_v24 }
0x241f   :  { %v7946_v57 = vpop.eup %7945 }
0x2420   :  { %v4241_v63 = vmul.f32 %v7946_v57, %v9757_v3 }
0x2480   :  { %v4244_v59 = vpop.permute.xlu1 %4243 }
0x2481   :  { %v4246_v26 = vmul.f32 %v7946_v57, %v4244_v59 }
0x2483   :  { %4248 = vrot.lane.b32.xlu0 %v4246_v26, %s7995_s20 }
0x24f5   :  { %v4249_v0 = vpop.permute.xlu0 %4248 }
0x24f6   :  { %v9830_v52 = vadd.f32 %v4249_v0, %v4241_v63 }
0x24f8   :  { %7947 = vtanh.f32 %v9830_v52 }
0x2505   :  { %v7948_v30 = vpop.eup %7947 }
0x2506   :  { %4254 = vrot.lane.b32.xlu1 %v7948_v30, %s7995_s20 }
0x2578   :  { %v4255_v2 = vpop.permute.xlu1 %4254 }
0x2579   :  { %v4257_v53 = vmul.f32 %v7946_v57, %v4255_v2 }
0x257b   :  { %4265 = vrot.lane.b32.xlu1 %v4257_v53, %s7994_s19  ;;  %4270 = vrot.lane.b32.xlu0 %v4257_v53, %s7996_s4  ;;  %v4355_v32 = vrot.slane %v4257_v53, 1 }
0x257f   :  { %4356 = vrot.lane.b32.xlu0 %v4355_v32, %s7996_s4  ;;  %v9950_v32 = vld [vmem:[%s10336_s6 + $0x38] sm:$0xff] }
0x25ed   :  { %v4266_v33 = vpop.permute.xlu1 %4265  ;;  %v4271_v3 = vpop.permute.xlu0 %4270 }
0x25ee   :  { %4268 = vst.msk [vmem:[#allocation3 + $0x8] sm:$0x4] %vm1297_vm14, %v4266_v33  ;;  %v4273_v35 = vsel %vm218_vm7, %v4269_v34, %v4271_v3  ;;  %v9961_v34 = vld [vmem:[%s10336_s6 + $0x78] sm:$0xff]  ;;  %v9966_v3 = vld [vmem:[%s10336_s6 + $0x70] sm:$0xff] }
0x25ef   :  { %7513 = vmatmul.mubr.msk.f32.vlgmr.msra.gmra.mxu1 %vm221_vm8, %v4273_v35  ;;  %v9972_v35 = vld [vmem:[%s10336_s6 + $0x28] sm:$0xff] }
0x25f0   :  { %7535 = vmatpush3.msra.mxu1 %v9576_v20  ;;  %7550 = vmatprep.mubr.msk.f32.mxu1 %vm7997_vm10, %v7993_v42 }
0x25f1   :  { %7536 = vmatprep.subr.mxu1 %v7993_v42  ;;  %v4357_v38 = vpop.permute.xlu0 %4356 }
0x25f2   :  { %7537 = vmatpush3.msra.mxu1 %v9584_v58  ;;  %v4359_v39 = vsel %vm218_vm7, %v4266_v33, %v4357_v38  ;;  %v9955_v33 = vld [vmem:[%s10336_s6 + $0x30] sm:$0xff]  ;;  %v9980_v38 = vld [vmem:[%s10336_s6 + $0x68] sm:$0xff] }
0x25f3   :  { %7538 = vmatprep.subr.mxu1 %v7993_v42  ;;  %7532 = vmatmul.mubr.msk.f32.vlgmr.msra.gmra.mxu0 %vm221_vm8, %v4359_v39 }
0x25f4   :  { %7539 = vmatpush3.msra.mxu1 %v9593_v11  ;;  %7554 = vmatpush3.msra.mxu0 %v9460_v25  ;;  %v4449_v25 = vrot.slane %v4359_v39, 1  ;;  %v9986_v39 = vld [vmem:[%s10336_s6 + $0x20] sm:$0xff] }
0x25f5   :  { %7540 = vmatprep.subr.mxu1 %v7993_v42  ;;  %7555 = vmatprep.subr.mxu0 %v7993_v42 }
0x25f6   :  { %7541 = vmatpush3.msra.mxu1 %v9602_v62  ;;  %7556 = vmatpush3.msra.mxu0 %v9465_v29 }
0x25f7   :  { %7542 = vmatprep.subr.mxu1 %v7993_v42  ;;  %7557 = vmatprep.subr.mxu0 %v7993_v42 }
0x25f8   :  { %7543 = vmatpush3.msra.mxu1 %v9610_v4  ;;  %7558 = vmatpush3.msra.mxu0 %v9482_v21 }
0x25f9   :  { %7544 = vmatprep.subr.mxu1 %v7993_v42  ;;  %7559 = vmatprep.subr.mxu0 %v7993_v42 }
0x25fa   :  { %7545 = vmatpush3.msra.mxu1 %v9619_v5  ;;  %7560 = vmatpush3.msra.mxu0 %v9496_v54 }
0x25fb   :  { %7546 = vmatprep.subr.mxu1 %v7993_v42  ;;  %7561 = vmatprep.subr.mxu0 %v7993_v42 }
0x25fc   :  { %7547 = vmatpush3.msra.mxu1 %v9628_v45  ;;  %7562 = vmatpush3.msra.mxu0 %v9505_v36 }
0x25fd   :  { %7548 = vmatprep.subr.mxu1 %v7993_v42  ;;  %7563 = vmatprep.subr.mxu0 %v7993_v42 }
0x25fe   :  { %7549 = vmatpush3.msra.mxu1 %v9637_v47  ;;  %7564 = vmatpush3.msra.mxu0 %v9519_v41 }
0x25ff   :  { %7551 = vmatmul.mubr.msk.f32.vlgmr.msra.gmra.mxu1 %vm221_vm8, %v4449_v25  ;;  %7572 = vmatprep.subr.mxu1 %v7993_v42 }
0x2600   :  { %7573 = vmatpush3.msra.mxu1 %v9471_v44  ;;  %7565 = vmatprep.subr.mxu0 %v7993_v42 }
0x2601   :  { %7574 = vmatprep.subr.mxu1 %v7993_v42  ;;  %7566 = vmatpush3.msra.mxu0 %v9533_v7 }
0x2602   :  { %7575 = vmatpush3.msra.mxu1 %v9476_v23  ;;  %7567 = vmatprep.subr.mxu0 %v7993_v42 }
0x2603   :  { %7576 = vmatprep.subr.mxu1 %v7993_v42  ;;  %7568 = vmatpush3.msra.mxu0 %v9542_v8 }
0x2604   :  { %7577 = vmatpush3.msra.mxu1 %v9490_v10  ;;  %7569 = vmatprep.mubr.msk.f32.mxu0 %vm7997_vm10, %v7993_v42 }
0x2605   :  { %7578 = vmatprep.subr.mxu1 %v7993_v42  ;;  %7591 = vmatprep.subr.mxu0 %v7993_v42 }
0x2606   :  { %7579 = vmatpush3.msra.mxu1 %v9511_v28  ;;  %7588 = vmatprep.mubr.msk.f32.mxu1 %vm7997_vm10, %v7993_v42 }
0x2607   :  { %7580 = vmatprep.subr.mxu1 %v7993_v42 }
0x2608   :  { %7581 = vmatpush3.msra.mxu1 %v9525_v27 }
0x2609   :  { %7582 = vmatprep.subr.mxu1 %v7993_v42 }
0x260a   :  { %7583 = vmatpush3.msra.mxu1 %v9552_v9 }
0x260b   :  { %7584 = vmatprep.subr.mxu1 %v7993_v42 }
0x260c   :  { %7585 = vmatpush3.msra.mxu1 %v9559_v12 }
0x260d   :  { %7586 = vmatprep.subr.mxu1 %v7993_v42 }
0x260e   :  { %7587 = vmatpush3.msra.mxu1 %v9566_v13 }
0x260f   :  { %7610 = vmatprep.subr.mxu1 %v7993_v42 }
0x26af   :  { %v4351_v29 = vpop.f32.mrf.mxu1 }
0x26b1   :  { %v7514_v44 = vpop.f32.mrf.mxu1 }
0x26b2   :  { %v10001_v44 = vld [vmem:[%s10336_s6 + $0x60] sm:$0xff] }
0x26b3   :  { %v4437_v23 = vpop.f32.mrf.mxu0 }
0x26b4   :  { %v4523_v10 = vrot.slane %v4437_v23, 7  ;;  %v10009_v23 = vld [vmem:[%s10336_s6 + $0x10] sm:$0xff] }
0x26b5   :  { %v7533_v21 = vpop.f32.mrf.mxu0 }
0x26b6   :  { %v4528_v28 = vsel %vm172_vm5, %v4351_v29, %v4523_v10  ;;  %v9995_v29 = vld [vmem:[%s10336_s6 + $0x18] sm:$0xff]  ;;  %v10023_v10 = vld [vmem:[%s10336_s6 + $0x8] sm:$0xff] }
0x26b7   :  { %v10015_v21 = vld [vmem:[%s10336_s6 + $0x58] sm:$0xff] }
0x26bf   :  { %v4518_v54 = vpop.f32.mrf.mxu1 }
0x26c0   :  { %v4526_v36 = vrot.slane %v4518_v54, 6  ;;  %v10032_v54 = vld [vmem:[%s10336_s6] sm:$0xff] }
0x26c1   :  { %v7552_v41 = vpop.f32.mrf.mxu1 }
0x26c2   :  { %v4529_v27 = vsel %vm160_vm2, %v4528_v28, %v4526_v36  ;;  %v10042_v36 = vld [vmem:[%s10336_s6 + $0x50] sm:$0xff]  ;;  %v10049_v28 = vld [vmem:[%s10336_s6 + $0x48] sm:$0xff]  ;;  %v10056_v41 = vld [vmem:[%s10336_s6 + $0x40] sm:$0xff] }
0x26c3   :  { %v4530_v7 = vadd.f32 %v9678_v1, %v4529_v27 }
0x26c5   :  { %7949 = vtanh.f32 %v4530_v7  ;;  %v6103_v9 = vmul.f32 -1.442695, %v4530_v7 }
0x26c7   :  { %7951 = vpow2.f32 %v6103_v9 }
0x26d2   :  { %v7950_v8 = vpop.eup %7949 }
0x26d3   :  { %4540 = vrot.lane.b32.xlu1 %v7950_v8, %s7995_s20 }
0x26d4   :  { %v7952_v12 = vpop.eup %7951 }
0x26d5   :  { %v4534_v13 = vadd.f32 1.0, %v7952_v12  ;;  %v4863_v12 = vld [vmem:[#allocation2 + $0xf] sm:$0x1] }
0x26d7   :  { %7953 = vrcp.f32 %v4534_v13 }
0x26e4   :  { %v7954_v22 = vpop.eup %7953 }
0x26e5   :  { %v4538_v46 = vmul.f32 %v7954_v22, %v9830_v52 }
0x2745   :  { %v4541_v60 = vpop.permute.xlu1 %4540 }
0x2746   :  { %v4543_v43 = vmul.f32 %v7954_v22, %v4541_v60 }
0x2748   :  { %4545 = vrot.lane.b32.xlu0 %v4543_v43, %s7995_s20  ;;  %v10074_v43 = vld [vmem:[%s10336_s6 + $0xb0] sm:$0xff] }
0x27ba   :  { %v4546_v55 = vpop.permute.xlu0 %4545 }
0x27bb   :  { %v9903_v14 = vadd.f32 %v4546_v55, %v4538_v46  ;;  %v10083_v55 = vld [vmem:[%s10336_s6 + $0xa8] sm:$0xff] }
0x27bd   :  { %7955 = vtanh.f32 %v9903_v14 }
0x27ca   :  { %v7956_v40 = vpop.eup %7955 }
0x27cb   :  { %4551 = vrot.lane.b32.xlu1 %v7956_v40, %s7995_s20  ;;  %v10092_v40 = vld [vmem:[%s10336_s6 + $0xa0] sm:$0xff] }
0x283d   :  { %v4552_v15 = vpop.permute.xlu1 %4551 }
0x283e   :  { %v4554_v16 = vmul.f32 %v7954_v22, %v4552_v15  ;;  %v10066_v22 = vld [vmem:[%s10336_s6 + $0xb8] sm:$0xff] }
0x283f   :  { %v10100_v15 = vld [vmem:[%s10336_s6 + $0x98] sm:$0xff] }
0x2840   :  { %4562 = vrot.lane.b32.xlu1 %v4554_v16, %s7994_s19  ;;  %4567 = vrot.lane.b32.xlu0 %v4554_v16, %s7996_s4  ;;  %v4652_v17 = vrot.slane %v4554_v16, 1  ;;  %v10109_v16 = vld [vmem:[%s10336_s6 + $0x90] sm:$0xff] }
0x2844   :  { %4653 = vrot.lane.b32.xlu0 %v4652_v17, %s7996_s4  ;;  %v10118_v17 = vld [vmem:[%s10336_s6 + $0x88] sm:$0xff] }
0x28b2   :  { %v4563_v18 = vpop.permute.xlu1 %4562  ;;  %v4568_v56 = vpop.permute.xlu0 %4567 }
0x28b3   :  { %4565 = vst.msk [vmem:[#allocation3 + $0x9] sm:$0x4] %vm1297_vm14, %v4563_v18  ;;  %v4570_v37 = vsel %vm218_vm7, %v4566_v19, %v4568_v56 }
0x28b4   :  { %7570 = vmatmul.mubr.msk.f32.vlgmr.msra.gmra.mxu0 %vm221_vm8, %v4570_v37 }
0x28b5   :  { %7592 = vmatpush3.msra.mxu0 %v9576_v20  ;;  %7607 = vmatprep.mubr.msk.f32.mxu0 %vm7997_vm10, %v7993_v42 }
0x28b6   :  { %7593 = vmatprep.subr.mxu0 %v7993_v42  ;;  %v4654_v61 = vpop.permute.xlu0 %4653 }
0x28b7   :  { %7594 = vmatpush3.msra.mxu0 %v9584_v58  ;;  %v4656_v48 = vsel %vm218_vm7, %v4563_v18, %v4654_v61  ;;  %v10127_v18 = vld [vmem:[%s10336_s6 + $0x80] sm:$0xff] }
0x28b8   :  { %7595 = vmatprep.subr.mxu0 %v7993_v42  ;;  %7589 = vmatmul.mubr.msk.f32.vlgmr.msra.gmra.mxu1 %vm221_vm8, %v4656_v48  ;;  %v4746_v20 = vrot.slane %v4656_v48, 1 }
0x28b9   :  { %7596 = vmatpush3.msra.mxu0 %v9593_v11  ;;  %7626 = vmatprep.mubr.msk.f32.mxu1 %vm7997_vm10, %v7993_v42 }
0x28ba   :  { %7597 = vmatprep.subr.mxu0 %v7993_v42  ;;  %7611 = vmatpush3.msra.mxu1 %v9950_v32 }
0x28bb   :  { %7598 = vmatpush3.msra.mxu0 %v9602_v62  ;;  %7612 = vmatprep.subr.mxu1 %v7993_v42 }
0x28bc   :  { %7599 = vmatprep.subr.mxu0 %v7993_v42  ;;  %7613 = vmatpush3.msra.mxu1 %v9955_v33 }
0x28bd   :  { %7600 = vmatpush3.msra.mxu0 %v9610_v4  ;;  %7614 = vmatprep.subr.mxu1 %v7993_v42 }
0x28be   :  { %7601 = vmatprep.subr.mxu0 %v7993_v42  ;;  %7615 = vmatpush3.msra.mxu1 %v9972_v35 }
0x28bf   :  { %7602 = vmatpush3.msra.mxu0 %v9619_v5  ;;  %7616 = vmatprep.subr.mxu1 %v7993_v42 }
0x28c0   :  { %7603 = vmatprep.subr.mxu0 %v7993_v42  ;;  %7617 = vmatpush3.msra.mxu1 %v9986_v39 }
0x28c1   :  { %7604 = vmatpush3.msra.mxu0 %v9628_v45  ;;  %7618 = vmatprep.subr.mxu1 %v7993_v42 }
0x28c2   :  { %7605 = vmatprep.subr.mxu0 %v7993_v42  ;;  %7619 = vmatpush3.msra.mxu1 %v9995_v29 }
0x28c3   :  { %7606 = vmatpush3.msra.mxu0 %v9637_v47  ;;  %7620 = vmatprep.subr.mxu1 %v7993_v42 }
0x28c4   :  { %7608 = vmatmul.mubr.msk.f32.vlgmr.msra.gmra.mxu0 %vm221_vm8, %v4746_v20  ;;  %7629 = vmatprep.subr.mxu0 %v7993_v42 }
0x28c5   :  { %7645 = vmatprep.mubr.msk.f32.mxu0 %vm7997_vm10, %v7993_v42  ;;  %7630 = vmatpush3.msra.mxu0 %v9961_v34 }
0x28c6   :  { %7631 = vmatprep.subr.mxu0 %v7993_v42  ;;  %7621 = vmatpush3.msra.mxu1 %v10009_v23 }
0x28c7   :  { %7632 = vmatpush3.msra.mxu0 %v9966_v3  ;;  %7622 = vmatprep.subr.mxu1 %v7993_v42 }
0x28c8   :  { %7633 = vmatprep.subr.mxu0 %v7993_v42  ;;  %7623 = vmatpush3.msra.mxu1 %v10023_v10 }
0x28c9   :  { %7634 = vmatpush3.msra.mxu0 %v9980_v38  ;;  %7624 = vmatprep.subr.mxu1 %v7993_v42 }
0x28ca   :  { %7635 = vmatprep.subr.mxu0 %v7993_v42  ;;  %7625 = vmatpush3.msra.mxu1 %v10032_v54 }
0x28cb   :  { %7636 = vmatpush3.msra.mxu0 %v10001_v44  ;;  %7648 = vmatprep.subr.mxu1 %v7993_v42 }
0x28cc   :  { %7637 = vmatprep.subr.mxu0 %v7993_v42 }
0x28cd   :  { %7638 = vmatpush3.msra.mxu0 %v10015_v21 }
0x28ce   :  { %7639 = vmatprep.subr.mxu0 %v7993_v42 }
0x28cf   :  { %7640 = vmatpush3.msra.mxu0 %v10042_v36 }
0x28d0   :  { %7641 = vmatprep.subr.mxu0 %v7993_v42 }
0x28d1   :  { %7642 = vmatpush3.msra.mxu0 %v10049_v28 }
0x28d2   :  { %7643 = vmatprep.subr.mxu0 %v7993_v42 }
0x28d3   :  { %7644 = vmatpush3.msra.mxu0 %v10056_v41 }
0x28d4   :  { %7667 = vmatprep.subr.mxu0 %v7993_v42 }
0x2974   :  { %v4648_v58 = vpop.f32.mrf.mxu0 }
0x2976   :  { %v7571_v11 = vpop.f32.mrf.mxu0 }
0x2978   :  { %v4734_v62 = vpop.f32.mrf.mxu1 }
0x2979   :  { %v4820_v5 = vrot.slane %v4734_v62, 7 }
0x297a   :  { %v7590_v4 = vpop.f32.mrf.mxu1 }
0x297b   :  { %v4825_v45 = vsel %vm172_vm5, %v4648_v58, %v4820_v5 }
0x2984   :  { %v4815_v49 = vpop.f32.mrf.mxu0 }
0x2985   :  { %v4823_v50 = vrot.slane %v4815_v49, 6 }
0x2986   :  { %v7609_v51 = vpop.f32.mrf.mxu0 }
0x2987   :  { %v4826_v6 = vsel %vm160_vm2, %v4825_v45, %v4823_v50 }
0x2988   :  { %v4827_v47 = vadd.f32 %v9678_v1, %v4826_v6 }
0x298a   :  { %7957 = vtanh.f32 %v4827_v47  ;;  %v6123_v57 = vmul.f32 -1.442695, %v4827_v47 }
0x298c   :  { %7959 = vpow2.f32 %v6123_v57 }
0x2997   :  { %v7958_v24 = vpop.eup %7957 }
0x2998   :  { %4837 = vrot.lane.b32.xlu1 %v7958_v24, %s7995_s20 }
0x2999   :  { %v7960_v59 = vpop.eup %7959 }
0x299a   :  { %v4831_v26 = vadd.f32 1.0, %v7960_v59 }
0x299c   :  { %7961 = vrcp.f32 %v4831_v26 }
0x29a9   :  { %v7962_v63 = vpop.eup %7961 }
0x29aa   :  { %v4835_v30 = vmul.f32 %v7962_v63, %v9903_v14 }
0x2a0a   :  { %v4838_v0 = vpop.permute.xlu1 %4837 }
0x2a0b   :  { %v4840_v52 = vmul.f32 %v7962_v63, %v4838_v0 }
0x2a0d   :  { %4842 = vrot.lane.b32.xlu0 %v4840_v52, %s7995_s20 }
0x2a7f   :  { %v4843_v2 = vpop.permute.xlu0 %4842 }
0x2a80   :  { %v9944_v53 = vadd.f32 %v4843_v2, %v4835_v30 }
0x2a82   :  { %7963 = vtanh.f32 %v9944_v53 }
0x2a8f   :  { %v7964_v25 = vpop.eup %7963 }
0x2a90   :  { %4848 = vrot.lane.b32.xlu1 %v7964_v25, %s7995_s20 }
0x2b02   :  { %v4849_v27 = vpop.permute.xlu1 %4848 }
0x2b03   :  { %v4851_v7 = vmul.f32 %v7962_v63, %v4849_v27 }
0x2b05   :  { %4859 = vrot.lane.b32.xlu1 %v4851_v7, %s7994_s19  ;;  %4864 = vrot.lane.b32.xlu0 %v4851_v7, %s7996_s4  ;;  %v4949_v8 = vrot.slane %v4851_v7, 1 }
0x2b09   :  { %4950 = vrot.lane.b32.xlu0 %v4949_v8, %s7996_s4 }
0x2b77   :  { %v4860_v9 = vpop.permute.xlu1 %4859  ;;  %v4865_v13 = vpop.permute.xlu0 %4864 }
0x2b78   :  { %4862 = vst.msk [vmem:[#allocation3 + $0xa] sm:$0x4] %vm1297_vm14, %v4860_v9  ;;  %v4867_v60 = vsel %vm218_vm7, %v4863_v12, %v4865_v13 }
0x2b79   :  { %7627 = vmatmul.mubr.msk.f32.vlgmr.msra.gmra.mxu1 %vm221_vm8, %v4867_v60 }
0x2b7a   :  { %7649 = vmatpush3.msra.mxu1 %v10066_v22  ;;  %7664 = vmatprep.mubr.msk.f32.mxu1 %vm7997_vm10, %v7993_v42 }
0x2b7b   :  { %7650 = vmatprep.subr.mxu1 %v7993_v42  ;;  %v4951_v46 = vpop.permute.xlu0 %4950 }
0x2b7c   :  { %7651 = vmatpush3.msra.mxu1 %v10074_v43  ;;  %v4953_v14 = vsel %vm218_vm7, %v4860_v9, %v4951_v46 }
0x2b7d   :  { %7652 = vmatprep.subr.mxu1 %v7993_v42  ;;  %7646 = vmatmul.mubr.msk.f32.vlgmr.msra.gmra.mxu0 %vm221_vm8, %v4953_v14  ;;  %v5043_v19 = vrot.slane %v4953_v14, 1 }
0x2b7e   :  { %7653 = vmatpush3.msra.mxu1 %v10083_v55  ;;  %7668 = vmatpush3.msra.mxu0 %v9950_v32 }
0x2b7f   :  { %7654 = vmatprep.subr.mxu1 %v7993_v42  ;;  %7669 = vmatprep.subr.mxu0 %v7993_v42 }
0x2b80   :  { %7655 = vmatpush3.msra.mxu1 %v10092_v40  ;;  %7670 = vmatpush3.msra.mxu0 %v9955_v33 }
0x2b81   :  { %7656 = vmatprep.subr.mxu1 %v7993_v42  ;;  %7671 = vmatprep.subr.mxu0 %v7993_v42 }
0x2b82   :  { %7657 = vmatpush3.msra.mxu1 %v10100_v15  ;;  %7672 = vmatpush3.msra.mxu0 %v9972_v35 }
0x2b83   :  { %7658 = vmatprep.subr.mxu1 %v7993_v42  ;;  %7673 = vmatprep.subr.mxu0 %v7993_v42 }
0x2b84   :  { %7659 = vmatpush3.msra.mxu1 %v10109_v16  ;;  %7674 = vmatpush3.msra.mxu0 %v9986_v39 }
0x2b85   :  { %7660 = vmatprep.subr.mxu1 %v7993_v42  ;;  %7675 = vmatprep.subr.mxu0 %v7993_v42 }
0x2b86   :  { %7661 = vmatpush3.msra.mxu1 %v10118_v17  ;;  %7676 = vmatpush3.msra.mxu0 %v9995_v29 }
0x2b87   :  { %7662 = vmatprep.subr.mxu1 %v7993_v42  ;;  %7677 = vmatprep.subr.mxu0 %v7993_v42 }
0x2b88   :  { %7663 = vmatpush3.msra.mxu1 %v10127_v18  ;;  %7678 = vmatpush3.msra.mxu0 %v10009_v23 }
0x2b89   :  { %7665 = vmatmul.mubr.msk.f32.vlgmr.msra.gmra.mxu1 %vm221_vm8, %v5043_v19  ;;  %7686 = vmatprep.subr.mxu1 %v7993_v42 }
0x2b8a   :  { %7687 = vmatpush3.msra.mxu1 %v9961_v34  ;;  %7679 = vmatprep.subr.mxu0 %v7993_v42 }
0x2b8b   :  { %7688 = vmatprep.subr.mxu1 %v7993_v42  ;;  %7680 = vmatpush3.msra.mxu0 %v10023_v10 }
0x2b8c   :  { %7689 = vmatpush3.msra.mxu1 %v9966_v3  ;;  %7681 = vmatprep.subr.mxu0 %v7993_v42 }
0x2b8d   :  { %7690 = vmatprep.subr.mxu1 %v7993_v42  ;;  %7682 = vmatpush3.msra.mxu0 %v10032_v54 }
0x2b8e   :  { %7691 = vmatpush3.msra.mxu1 %v9980_v38  ;;  %7683 = vmatprep.mubr.msk.f32.mxu0 %vm7997_vm10, %v7993_v42 }
0x2b8f   :  { %7692 = vmatprep.subr.mxu1 %v7993_v42  ;;  %7705 = vmatprep.subr.mxu0 %v7993_v42 }
0x2b90   :  { %7693 = vmatpush3.msra.mxu1 %v10001_v44  ;;  %7702 = vmatprep.mubr.msk.f32.mxu1 %vm7997_vm10, %v7993_v42 }
0x2b91   :  { %7694 = vmatprep.subr.mxu1 %v7993_v42 }
0x2b92   :  { %7695 = vmatpush3.msra.mxu1 %v10015_v21 }
0x2b93   :  { %7696 = vmatprep.subr.mxu1 %v7993_v42 }
0x2b94   :  { %7697 = vmatpush3.msra.mxu1 %v10042_v36 }
0x2b95   :  { %7698 = vmatprep.subr.mxu1 %v7993_v42 }
0x2b96   :  { %7699 = vmatpush3.msra.mxu1 %v10049_v28 }
0x2b97   :  { %7700 = vmatprep.subr.mxu1 %v7993_v42 }
0x2b98   :  { %7701 = vmatpush3.msra.mxu1 %v10056_v41 }
0x2b99   :  { %7724 = vmatprep.subr.mxu1 %v7993_v42 }
0x2c39   :  { %v4945_v56 = vpop.f32.mrf.mxu1 }
0x2c3b   :  { %v7628_v37 = vpop.f32.mrf.mxu1 }
0x2c3c   :  { %v5446_v37 = vsub.s32 16, %v8585_v31 }
0x2c3d   :  { %v5031_v61 = vpop.f32.mrf.mxu0 }
0x2c3e   :  { %v5117_v20 = vrot.slane %v5031_v61, 7  ;;  %vm10256_vm4 = vcmp.lt.s32.totalorder %v5446_v37, 16 }
0x2c3f   :  { %v7647_v48 = vpop.f32.mrf.mxu0 }
0x2c40   :  { %v5122_v62 = vsel %vm172_vm5, %v4945_v56, %v5117_v20 }
0x2c49   :  { %v5112_v58 = vpop.f32.mrf.mxu1 }
0x2c4a   :  { %v5120_v11 = vrot.slane %v5112_v58, 6 }
0x2c4b   :  { %v7666_v4 = vpop.f32.mrf.mxu1 }
0x2c4c   :  { %v5123_v5 = vsel %vm160_vm2, %v5122_v62, %v5120_v11  ;;  %v5457_v4 = vld [vmem:[#allocation2 + $0xf] sm:$0x1] }
0x2c4d   :  { %v5124_v49 = vadd.f32 %v9678_v1, %v5123_v5 }
0x2c4f   :  { %7965 = vtanh.f32 %v5124_v49  ;;  %v6143_v45 = vmul.f32 -1.442695, %v5124_v49 }
0x2c51   :  { %7967 = vpow2.f32 %v6143_v45 }
0x2c5c   :  { %v7966_v50 = vpop.eup %7965 }
0x2c5d   :  { %5134 = vrot.lane.b32.xlu1 %v7966_v50, %s7995_s20 }
0x2c5e   :  { %v7968_v51 = vpop.eup %7967 }
0x2c5f   :  { %v5128_v6 = vadd.f32 1.0, %v7968_v51  ;;  %v5753_v51 = vld [vmem:[#allocation3] sm:$0xff] }
0x2c61   :  { %7969 = vrcp.f32 %v5128_v6 }
0x2c6e   :  { %v7970_v47 = vpop.eup %7969 }
0x2c6f   :  { %v5132_v59 = vmul.f32 %v7970_v47, %v9944_v53  ;;  %v5160_v53 = vld [vmem:[#allocation2 + $0xf] sm:$0x1] }
0x2ccf   :  { %v5135_v24 = vpop.permute.xlu1 %5134 }
0x2cd0   :  { %v5137_v57 = vmul.f32 %v7970_v47, %v5135_v24 }
0x2cd2   :  { %5139 = vrot.lane.b32.xlu0 %v5137_v57, %s7995_s20 }
0x2d44   :  { %v5140_v26 = vpop.permute.xlu0 %5139 }
0x2d45   :  { %v10169_v63 = vadd.f32 %v5140_v26, %v5132_v59 }
0x2d47   :  { %7971 = vtanh.f32 %v10169_v63 }
0x2d54   :  { %v7972_v1 = vpop.eup %7971 }
0x2d55   :  { %5145 = vrot.lane.b32.xlu1 %v7972_v1, %s7995_s20 }
0x2dc7   :  { %v5146_v0 = vpop.permute.xlu1 %5145 }
0x2dc8   :  { %v10173_v52 = vmul.f32 %v7970_v47, %v5146_v0 }
0x2dca   :  { %5156 = vrot.lane.b32.xlu1 %v10173_v52, %s7994_s19  ;;  %5161 = vrot.lane.b32.xlu0 %v10173_v52, %s7996_s4  ;;  %v5246_v30 = vrot.slane %v10173_v52, 1 }
0x2dce   :  { %5247 = vrot.lane.b32.xlu0 %v5246_v30, %s7996_s4 }
0x2e3c   :  { %v5157_v2 = vpop.permute.xlu1 %5156  ;;  %v5162_v25 = vpop.permute.xlu0 %5161 }
0x2e3d   :  { %5159 = vst.msk [vmem:[#allocation3 + $0xb] sm:$0x4] %vm1297_vm14, %v5157_v2  ;;  %v5164_v27 = vsel %vm218_vm7, %v5160_v53, %v5162_v25 }
0x2e3e   :  { %7684 = vmatmul.mubr.msk.f32.vlgmr.msra.gmra.mxu0 %vm221_vm8, %v5164_v27 }
0x2e3f   :  { %7706 = vmatpush3.msra.mxu0 %v10066_v22  ;;  %7721 = vmatprep.mubr.msk.f32.mxu0 %vm7997_vm10, %v7993_v42 }
0x2e40   :  { %7707 = vmatprep.subr.mxu0 %v7993_v42  ;;  %v5248_v7 = vpop.permute.xlu0 %5247 }
0x2e41   :  { %7708 = vmatpush3.msra.mxu0 %v10074_v43  ;;  %v5250_v8 = vsel %vm218_vm7, %v5157_v2, %v5248_v7 }
0x2e42   :  { %7709 = vmatprep.subr.mxu0 %v7993_v42  ;;  %7703 = vmatmul.mubr.msk.f32.vlgmr.msra.gmra.mxu1 %vm221_vm8, %v5250_v8 }
0x2e43   :  { %7710 = vmatpush3.msra.mxu0 %v10083_v55  ;;  %7725 = vmatpush3.msra.mxu1 %v9950_v32  ;;  %v5340_v32 = vrot.slane %v5250_v8, 1  ;;  %v5758_v8 = vld [vmem:[%s10339_s8 + $0x18] sm:$0xff] }
0x2e44   :  { %7711 = vmatprep.subr.mxu0 %v7993_v42  ;;  %7726 = vmatprep.subr.mxu1 %v7993_v42 }
0x2e45   :  { %7712 = vmatpush3.msra.mxu0 %v10092_v40  ;;  %7727 = vmatpush3.msra.mxu1 %v9955_v33 }
0x2e46   :  { %7713 = vmatprep.subr.mxu0 %v7993_v42  ;;  %7728 = vmatprep.subr.mxu1 %v7993_v42 }
0x2e47   :  { %7714 = vmatpush3.msra.mxu0 %v10100_v15  ;;  %7729 = vmatpush3.msra.mxu1 %v9972_v35 }
0x2e48   :  { %7715 = vmatprep.subr.mxu0 %v7993_v42  ;;  %7730 = vmatprep.subr.mxu1 %v7993_v42 }
0x2e49   :  { %7716 = vmatpush3.msra.mxu0 %v10109_v16  ;;  %7731 = vmatpush3.msra.mxu1 %v9986_v39 }
0x2e4a   :  { %7717 = vmatprep.subr.mxu0 %v7993_v42  ;;  %7732 = vmatprep.subr.mxu1 %v7993_v42 }
0x2e4b   :  { %7718 = vmatpush3.msra.mxu0 %v10118_v17  ;;  %7733 = vmatpush3.msra.mxu1 %v9995_v29 }
0x2e4c   :  { %7719 = vmatprep.subr.mxu0 %v7993_v42  ;;  %7734 = vmatprep.subr.mxu1 %v7993_v42 }
0x2e4d   :  { %7720 = vmatpush3.msra.mxu0 %v10127_v18  ;;  %7735 = vmatpush3.msra.mxu1 %v10009_v23 }
0x2e4e   :  { %7722 = vmatmul.mubr.msk.f32.vlgmr.msra.gmra.mxu0 %vm221_vm8, %v5340_v32  ;;  %7743 = vmatprep.subr.mxu0 %v7993_v42  ;;  %v5757_v32 = vld [vmem:[%s10339_s8 + $0x10] sm:$0xff] }
0x2e4f   :  { %7744 = vmatpush3.msra.mxu0 %v9961_v34  ;;  %7736 = vmatprep.subr.mxu1 %v7993_v42 }
0x2e50   :  { %7745 = vmatprep.subr.mxu0 %v7993_v42  ;;  %7737 = vmatpush3.msra.mxu1 %v10023_v10  ;;  %v10245_v10 = vld [vmem:[%s10338_s7] sm:$0x7] }
0x2e51   :  { %7746 = vmatpush3.msra.mxu0 %v9966_v3  ;;  %7738 = vmatprep.subr.mxu1 %v7993_v42 }
0x2e52   :  { %7747 = vmatprep.subr.mxu0 %v7993_v42  ;;  %7739 = vmatpush3.msra.mxu1 %v10032_v54 }
0x2e53   :  { %7748 = vmatpush3.msra.mxu0 %v9980_v38  ;;  %7740 = vmatprep.mubr.msk.f32.mxu1 %vm7997_vm10, %v7993_v42 }
0x2e54   :  { %7749 = vmatprep.subr.mxu0 %v7993_v42  ;;  %7762 = vmatprep.subr.mxu1 %v7993_v42 }
0x2e55   :  { %7750 = vmatpush3.msra.mxu0 %v10001_v44  ;;  %7759 = vmatprep.mubr.msk.f32.mxu0 %vm7997_vm10, %v7993_v42 }
0x2e56   :  { %7751 = vmatprep.subr.mxu0 %v7993_v42 }
0x2e57   :  { %7752 = vmatpush3.msra.mxu0 %v10015_v21 }
0x2e58   :  { %7753 = vmatprep.subr.mxu0 %v7993_v42 }
0x2e59   :  { %7754 = vmatpush3.msra.mxu0 %v10042_v36 }
0x2e5a   :  { %7755 = vmatprep.subr.mxu0 %v7993_v42 }
0x2e5b   :  { %7756 = vmatpush3.msra.mxu0 %v10049_v28 }
0x2e5c   :  { %7757 = vmatprep.subr.mxu0 %v7993_v42 }
0x2e5d   :  { %7758 = vmatpush3.msra.mxu0 %v10056_v41 }
0x2e5e   :  { %7781 = vmatprep.subr.mxu0 %v5758_v8 }
0x2efe   :  { %v5242_v33 = vpop.f32.mrf.mxu0 }
0x2f00   :  { %v7685_v34 = vpop.f32.mrf.mxu0 }
0x2f01   :  { %v5743_v34 = vsub.s32 17, %v8585_v31  ;;  %v6184_v31 = vld [vmem:[%s10340_s9] ss:$0 sm:$0xff] }
0x2f02   :  { %v5328_v3 = vpop.f32.mrf.mxu1 }
0x2f03   :  { %v5414_v38 = vrot.slane %v5328_v3, 7 }
0x2f04   :  { %v7704_v35 = vpop.f32.mrf.mxu1 }
0x2f05   :  { %v5419_v44 = vsel %vm172_vm5, %v5242_v33, %v5414_v38  ;;  %v5755_v33 = vld [vmem:[%s10339_s8] sm:$0xff] }
0x2f0e   :  { %v5409_v39 = vpop.f32.mrf.mxu0 }
0x2f0f   :  { %v5417_v29 = vrot.slane %v5409_v39, 6 }
0x2f10   :  { %v7723_v23 = vpop.f32.mrf.mxu0 }
0x2f11   :  { %v5420_v21 = vsel %vm160_vm2, %v5419_v44, %v5417_v29 }
0x2f12   :  { %v5421_v54 = vadd.f32 %v10245_v10, %v5420_v21 }
0x2f14   :  { %7973 = vtanh.f32 %v5421_v54  ;;  %v6163_v28 = vmul.f32 -1.442695, %v5421_v54 }
0x2f16   :  { %7975 = vpow2.f32 %v6163_v28 }
0x2f21   :  { %v7974_v36 = vpop.eup %7973 }
0x2f22   :  { %5431 = vrot.lane.b32.xlu1 %v7974_v36, %s7995_s20 }
0x2f23   :  { %v7976_v41 = vpop.eup %7975 }
0x2f24   :  { %v5425_v9 = vadd.f32 1.0, %v7976_v41 }
0x2f26   :  { %7977 = vrcp.f32 %v5425_v9 }
0x2f33   :  { %v7978_v12 = vpop.eup %7977 }
0x2f34   :  { %v5429_v46 = vmul.f32 %v7978_v12, %v10169_v63 }
0x2f94   :  { %v5432_v13 = vpop.permute.xlu1 %5431 }
0x2f95   :  { %v5434_v60 = vmul.f32 %v7978_v12, %v5432_v13 }
0x2f97   :  { %5436 = vrot.lane.b32.xlu0 %v5434_v60, %s7995_s20 }
0x3009   :  { %v5437_v14 = vpop.permute.xlu0 %5436 }
0x300a   :  { %v10251_v19 = vadd.f32 %v5437_v14, %v5429_v46 }
0x300c   :  { %7979 = vtanh.f32 %v10251_v19  ;;  %v5451_v2 = vsel %vm10256_vm4, %v10251_v19, %v10169_v63  ;;  %v5756_v63 = vld [vmem:[%s10339_s8 + $0x8] sm:$0xff] }
0x3019   :  { %v7980_v56 = vpop.eup %7979 }
0x301a   :  { %5442 = vrot.lane.b32.xlu1 %v7980_v56, %s7995_s20 }
0x308c   :  { %v5443_v61 = vpop.permute.xlu1 %5442 }
0x308d   :  { %v5445_v48 = vmul.f32 %v7978_v12, %v5443_v61 }
0x308f   :  { %v10263_v58 = vsel %vm10256_vm4, %v5445_v48, %v10173_v52 }
0x3090   :  { %5453 = vrot.lane.b32.xlu1 %v10263_v58, %s7994_s19  ;;  %5458 = vrot.lane.b32.xlu0 %v10263_v58, %s7996_s4  ;;  %v5543_v11 = vrot.slane %v10263_v58, 1 }
0x3094   :  { %5544 = vrot.lane.b32.xlu0 %v5543_v11, %s7996_s4 }
0x3102   :  { %v5454_v62 = vpop.permute.xlu1 %5453  ;;  %v5459_v5 = vpop.permute.xlu0 %5458 }
0x3103   :  { %5456 = vst.msk [vmem:[#allocation3 + $0xc] sm:$0x4] %vm1297_vm14, %v5454_v62  ;;  %v5461_v49 = vsel %vm218_vm7, %v5457_v4, %v5459_v5 }
0x3104   :  { %7741 = vmatmul.mubr.msk.f32.vlgmr.msra.gmra.mxu1 %vm221_vm8, %v5461_v49 }
0x3105   :  { %7763 = vmatpush3.msra.mxu1 %v10066_v22  ;;  %7778 = vmatprep.mubr.msk.f32.mxu1 %vm7997_vm10, %v7993_v42 }
0x3106   :  { %7764 = vmatprep.subr.mxu1 %v7993_v42  ;;  %v5545_v50 = vpop.permute.xlu0 %5544 }
0x3107   :  { %7765 = vmatpush3.msra.mxu1 %v10074_v43  ;;  %v5547_v45 = vsel %vm218_vm7, %v5454_v62, %v5545_v50 }
0x3108   :  { %7766 = vmatprep.subr.mxu1 %v7993_v42  ;;  %7760 = vmatmul.mubr.msk.f32.vlgmr.msra.gmra.mxu0 %vm221_vm8, %v5547_v45  ;;  %v5637_v22 = vrot.slane %v5547_v45, 1 }
0x3109   :  { %7767 = vmatpush3.msra.mxu1 %v10083_v55  ;;  %7789 = vmatprep.mubr.msk.f32.mxu0 %vm218_vm7, %v5753_v51 }
0x310a   :  { %7768 = vmatprep.subr.mxu1 %v7993_v42  ;;  %7782 = vmatpush3.msra.mxu0 %v5758_v8 }
0x310b   :  { %7769 = vmatpush3.msra.mxu1 %v10092_v40  ;;  %7783 = vmatprep.subr.mxu0 %v5757_v32 }
0x310c   :  { %7770 = vmatprep.subr.mxu1 %v7993_v42  ;;  %7784 = vmatpush3.msra.mxu0 %v5757_v32 }
0x310d   :  { %7771 = vmatpush3.msra.mxu1 %v10100_v15  ;;  %7785 = vmatprep.subr.mxu0 %v5756_v63 }
0x310e   :  { %7772 = vmatprep.subr.mxu1 %v7993_v42  ;;  %7786 = vmatpush3.msra.mxu0 %v5756_v63 }
0x310f   :  { %7773 = vmatpush3.msra.mxu1 %v10109_v16  ;;  %7787 = vmatprep.subr.mxu0 %v5755_v33 }
0x3110   :  { %7774 = vmatprep.subr.mxu1 %v7993_v42  ;;  %7788 = vmatpush3.msra.mxu0 %v5755_v33 }
0x3111   :  { %7775 = vmatpush3.msra.mxu1 %v10118_v17 }
0x3112   :  { %7776 = vmatprep.subr.mxu1 %v7993_v42 }
0x3113   :  { %7777 = vmatpush3.msra.mxu1 %v10127_v18 }
0x3114   :  { %7779 = vmatmul.mubr.msk.f32.vlgmr.msra.gmra.mxu1 %vm221_vm8, %v5637_v22 }
0x31c4   :  { %v5539_v43 = vpop.f32.mrf.mxu1 }
0x31c6   :  { %v7742_v55 = vpop.f32.mrf.mxu1 }
0x31c8   :  { %v5625_v40 = vpop.f32.mrf.mxu0 }
0x31c9   :  { %v5711_v15 = vrot.slane %v5625_v40, 7 }
0x31ca   :  { %v7761_v6 = vpop.f32.mrf.mxu0 }
0x31cb   :  { %v5716_v16 = vsel %vm172_vm5, %v5539_v43, %v5711_v15  ;;  %vm5847_vm5 = vcmask 15360  }
0x31d4   :  { %v5706_v47 = vpop.f32.mrf.mxu1 }
0x31d5   :  { %v5714_v24 = vrot.slane %v5706_v47, 6 }
0x31d6   :  { %v7780_v57 = vpop.f32.mrf.mxu1 }
0x31d7   :  { %v5717_v59 = vsel %vm160_vm2, %v5716_v16, %v5714_v24  ;;  %vm5745_vm2 = vcmp.lt.s32.totalorder %v5743_v34, 16 }
0x31d8   :  { %v5718_v17 = vadd.f32 %v10245_v10, %v5717_v59 }
0x31da   :  { %7981 = vtanh.f32 %v5718_v17  ;;  %v6183_v18 = vmul.f32 -1.442695, %v5718_v17 }
0x31dc   :  { %7983 = vpow2.f32 %v6183_v18 }
0x31e7   :  { %v7982_v42 = vpop.eup %7981 }
0x31e8   :  { %5728 = vrot.lane.b32.xlu1 %v7982_v42, %s7995_s20 }
0x31e9   :  { %v7984_v26 = vpop.eup %7983 }
0x31ea   :  { %v5722_v1 = vadd.f32 1.0, %v7984_v26 }
0x31ec   :  { %7985 = vrcp.f32 %v5722_v1 }
0x31f9   :  { %v7986_v0 = vpop.eup %7985 }
0x31fa   :  { %v5726_v53 = vmul.f32 %v7986_v0, %v5451_v2 }
0x325a   :  { %v5729_v52 = vpop.permute.xlu1 %5728 }
0x325b   :  { %v5731_v30 = vmul.f32 %v7986_v0, %v5729_v52 }
0x325d   :  { %5733 = vrot.lane.b32.xlu0 %v5731_v30, %s7995_s20 }
0x32cf   :  { %v5734_v25 = vpop.permute.xlu0 %5733 }
0x32d0   :  { %v5736_v27 = vadd.f32 %v5734_v25, %v5726_v53 }
0x32d2   :  { %7987 = vtanh.f32 %v5736_v27 }
0x32df   :  { %v7988_v7 = vpop.eup %7987 }
0x32e0   :  { %5739 = vrot.lane.b32.xlu1 %v7988_v7, %s7995_s20 }
0x3352   :  { %v5740_v3 = vpop.permute.xlu1 %5739 }
0x3353   :  { %v5742_v35 = vmul.f32 %v7986_v0, %v5740_v3 }
0x3355   :  { %v5747_v38 = vsel %vm5745_vm2, %v5742_v35, %v10263_v58 }
0x3356   :  { %5749 = vrot.lane.b32.xlu0 %v5747_v38, %s7994_s19 }
0x33c8   :  { %v5750_v39 = vpop.permute.xlu0 %5749 }
0x33c9   :  { %5752 = vst.msk [vmem:[#allocation3 + $0xd] sm:$0x4] %vm1297_vm14, %v5750_v39 }
0x33d0   :  { %v5754_v29 = vld [vmem:[#allocation3 + $0x8] sm:$0xff] }
0x33d1   :  { %7790 = vmatmul.mubr.msk.f32.vlgmr.msra.gmra.mxu0 %vm218_vm7, %v5754_v29 }
0x3491   :  { %v7791_v44 = vpop.f32.mrf.mxu0 }
0x3492   :  { %v5844_v23 = vadd.f32 %v7791_v44, %v6184_v31 }
0x3493   :  { %v5838_v21 = vpop.f32.mrf.mxu0 }
0x3494   :  { %5849 = vst.msk [vmem:[%s10341_s10 + $0x8] sm:$0xff] %vm5847_vm5, %v5844_v23  ;;  %v5839_v10 = vadd.f32 %v6184_v31, %v5838_v21 }
0x3496   :  { %5848 = vst.msk [vmem:[%s10341_s10] sm:$0xff] %vm5847_vm5, %v5839_v10 }

</bundles_post_ra>
